<compile_context>
chip_gen: v6e
topology: v6e:2x2x1
jax: 0.10.0
libtpu: 0.0.40
codegen_flags: <defaults>
</compile_context>

<pallas_src>
import jax
import jax.numpy as jnp
import numpy as np
from jax.experimental import pallas as pl
from jax.experimental.pallas import tpu as pltpu

NULL_ATTENTION = float(-2 ** 10)  # -1024.0


def hist_att2_kernel(x_ref, hist_ref, click_ref, len_ref,
                     w1_ref, b1_ref, w2_ref, b2_ref, w3_ref, b3_ref,
                     out_ref):
    Bblk, L, D = hist_ref.shape
    H1 = w1_ref.shape[1]   # 200
    H2 = w2_ref.shape[1]   # 80
    M = Bblk * L

    x = x_ref[...]                       # (Bblk, D)
    h = hist_ref[...]                    # (Bblk, L, D)
    hc = click_ref[...]                  # (Bblk, L, D)
    hlen = len_ref[...]                  # (Bblk, 1) int32

    # ---- Layer 1 as a single fused MXU pass:
    #   [x | h | x*h | x-h] @ W1 == [x | h | x*h] @ [[W1a+W1d],[W1b-W1d],[W1c]]
    x_t = jnp.broadcast_to(x[:, None, :], (Bblk, L, D))            # (Bblk, L, D)
    inp = jnp.concatenate([x_t, h, x_t * h], axis=-1)              # (Bblk, L, 3D)
    inp2d = inp.reshape(M, 3 * D)                                   # leading-dim merge
    a1 = jnp.maximum(
        jnp.dot(inp2d, w1_ref[...], preferred_element_type=jnp.float32) + b1_ref[...],
        0.0)                                                        # (M, H1)

    # ---- Layer 2: (M, 200) @ (200, 80)
    a2 = jnp.maximum(
        jnp.dot(a1, w2_ref[...], preferred_element_type=jnp.float32) + b2_ref[...],
        0.0)                                                        # (M, H2)

    # ---- Layer 3 on the VPU: multiply-reduce over the 80 lanes (no N=1 MXU pass).
    score = jnp.sum(a2.reshape(Bblk, L, H2) * w3_ref[...], axis=-1) + b3_ref[...]  # (Bblk, L)

    # Mask positions >= hist_len with NULL_ATTENTION (pre-softmax score is an output).
    valid = jax.lax.broadcasted_iota(jnp.int32, (Bblk, L), 1) < hlen
    score = jnp.where(valid, score, NULL_ATTENTION)

    # Masked softmax along L (lane axis). Exact division: the approx reciprocal
    # perturbed the attention weights by ~2e-3 relative and broke the tolerance.
    m = jnp.max(score, axis=-1, keepdims=True)           # (Bblk, 1)
    p = jnp.exp(score - m)                                # (Bblk, L)
    denom = jnp.sum(p, axis=-1, keepdims=True)            # (Bblk, 1)
    att = (p / denom)[:, :, None]                          # (Bblk, L, 1)
    # Note: fully-masked rows (hist_len==0 / zero-padded batch rows) give uniform
    # 1/L attention via exp(0)=1, matching the reference softmax-over-NULL behavior.

    rep = jnp.sum(h * att, axis=1)                         # (Bblk, D)
    crep = jnp.sum(hc * att, axis=1)                       # (Bblk, D)

    # Pack everything into one lane-dense slab [rep | crep | score | 0-pad] so the
    # per-step HBM writeback is a single dense DMA.
    out_w = out_ref.shape[1]
    out_ref[:, 0:D] = rep
    out_ref[:, D:2 * D] = crep
    out_ref[:, 2 * D:2 * D + L] = score
    pad_w = out_w - (2 * D + L)
    if pad_w > 0:
        out_ref[:, 2 * D + L:] = jnp.zeros((Bblk, pad_w), jnp.float32)


def hist_att2(x_item, user_hist, hist_len, user_hist_click, params, *, block_b=None):
    w1, b1, w2, b2, w3, b3 = params
    B, L, D = user_hist.shape
    H1 = w1.shape[1]
    H2 = w2.shape[1]
    assert w1.shape[0] == 4 * D

    # Pre-fuse the layer-1 weight slabs so the kernel never needs the (L, 4D) concat
    # and runs layer 1 as a single K = 3D contraction.
    w1a, w1b, w1c, w1d = w1[:D], w1[D:2 * D], w1[2 * D:3 * D], w1[3 * D:]
    w1cat = jnp.concatenate([w1a + w1d,    # multiplies x (tiled over L)
                             w1b - w1d,    # multiplies hist
                             w1c],         # multiplies x * hist
                            axis=0)        # (3D, H1)
    w3t = w3.reshape(1, H2)                # row vector for the VPU dot in layer 3

    # Batch block: target 256 rows/step (M = block_b*L MXU rows), but keep >= 2 grid
    # steps whenever possible so v7x's two TensorCores both get work.
    if block_b is None:
        block_b = 256
        while block_b > 16 and B <= block_b:
            block_b //= 2

    num_blocks = pl.cdiv(B, block_b)
    Bp = num_blocks * block_b
    if Bp != B:                      # zero-pad ragged batches; padded rows sliced off below
        pad = Bp - B
        x_item = jnp.pad(x_item, ((0, pad), (0, 0)))
        user_hist = jnp.pad(user_hist, ((0, pad), (0, 0), (0, 0)))
        user_hist_click = jnp.pad(user_hist_click, ((0, pad), (0, 0), (0, 0)))
        hist_len = jnp.pad(hist_len, ((0, pad),))
    hist_len2d = hist_len.reshape(Bp, 1).astype(jnp.int32)

    out_w = ((2 * D + L + 127) // 128) * 128   # lane-dense packed output width

    const = lambda i: (0, 0)
    packed = pl.pallas_call(
        hist_att2_kernel,
        grid=(num_blocks,),
        in_specs=[
            pl.BlockSpec((block_b, D), lambda i: (i, 0)),        # x_item
            pl.BlockSpec((block_b, L, D), lambda i: (i, 0, 0)),  # user_hist
            pl.BlockSpec((block_b, L, D), lambda i: (i, 0, 0)),  # user_hist_click
            pl.BlockSpec((block_b, 1), lambda i: (i, 0)),        # hist_len
            pl.BlockSpec(w1cat.shape, const),                    # fused W1
            pl.BlockSpec(b1.shape, const),                       # b1
            pl.BlockSpec(w2.shape, const),                       # W2
            pl.BlockSpec(b2.shape, const),                       # b2
            pl.BlockSpec(w3t.shape, const),                      # W3 (as row)
            pl.BlockSpec(b3.shape, const),                       # b3
        ],
        out_specs=pl.BlockSpec((block_b, out_w), lambda i: (i, 0)),
        out_shape=jax.ShapeDtypeStruct((Bp, out_w), jnp.float32),
        compiler_params=pltpu.CompilerParams(
            dimension_semantics=("parallel",)),
    )(x_item, user_hist, user_hist_click, hist_len2d,
      w1cat, b1, w2, b2, w3t, b3)

    rep = packed[:B, 0:D]
    crep = packed[:B, D:2 * D]
    score = packed[:B, 2 * D:2 * D + L]
    return rep, crep, score


def hist_att2_reference(x_item, user_hist, hist_len, user_hist_click, params):
    """Pure-JAX reference mirroring the PyTorch forward (eval mode)."""
    w1, b1, w2, b2, w3, b3 = params
    B, L, D = user_hist.shape
    xt = jnp.tile(x_item[:, None, :], (1, L, 1))
    inp = jnp.concatenate([xt, user_hist, xt * user_hist, xt - user_hist], axis=2)
    a1 = jax.nn.relu(inp @ w1 + b1)
    a2 = jax.nn.relu(a1 @ w2 + b2)
    score = a2 @ w3 + b3                                     # (B, L, 1)
    mask = jnp.arange(L)[None, :] < hist_len[:, None]
    score = jnp.where(mask[..., None], score, NULL_ATTENTION)
    att = jax.nn.softmax(score, axis=1)
    rep = jnp.sum(user_hist * att, axis=1)
    crep = jnp.sum(user_hist_click * att, axis=1)
    return rep, crep, score[..., 0]


def init_params(key, q_dim):
    """Deterministic init mimicking torch.nn.Linear (uniform +/- 1/sqrt(fan_in))."""
    dims = [4 * q_dim, 200, 80, 1]
    params = []
    for i in range(3):
        fan_in, fan_out = dims[i], dims[i + 1]
        key, kw, kb = jax.random.split(key, 3)
        bound = 1.0 / np.sqrt(fan_in)
        w = jax.random.uniform(kw, (fan_in, fan_out), jnp.float32, -bound, bound)
        b = jax.random.uniform(kb, (1, fan_out), jnp.float32, -bound, bound)
        params += [w, b]
    return tuple(params)


def _check(got, want, name, atol=2e-3, rtol=1e-3):
    assert np.allclose(np.asarray(got), np.asarray(want), atol=atol, rtol=rtol), \
        f"{name} mismatch (max abs err {np.max(np.abs(np.asarray(got) - np.asarray(want)))})"


if __name__ == "__main__":
    B, L, q_dim = 64, 8, 32   # default block picker -> block_b=32, 2 grid steps

    key = jax.random.PRNGKey(0)
    k1, k2, k3, k4, kp = jax.random.split(key, 5)
    x_item = jax.random.normal(k1, (B, q_dim), jnp.float32)
    user_hist = jax.random.normal(k2, (B, L, q_dim), jnp.float32)
    user_hist_click = jax.random.normal(k3, (B, L, q_dim), jnp.float32)
    hist_len = jax.random.randint(k4, (B,), 0, L + 1, dtype=jnp.int32)  # includes len==0 case

    params = init_params(kp, q_dim)

    rep, crep, score = hist_att2(x_item, user_hist, hist_len, user_hist_click, params)
    jax.block_until_ready((rep, crep, score))

    rep_r, crep_r, score_r = hist_att2_reference(
        x_item, user_hist, hist_len, user_hist_click, params)
    _check(rep, rep_r, "user_hist_rep")
    _check(crep, crep_r, "user_hist_click_rep")
    _check(score, score_r, "score")

    # Small batch that does not fill a block: exercises the zero-padding path.
    Bs = 5
    rep2, crep2, score2 = hist_att2(
        x_item[:Bs], user_hist[:Bs], hist_len[:Bs], user_hist_click[:Bs], params, block_b=8)
    jax.block_until_ready((rep2, crep2, score2))
    rep2_r, crep2_r, score2_r = hist_att2_reference(
        x_item[:Bs], user_hist[:Bs], hist_len[:Bs], user_hist_click[:Bs], params)
    _check(rep2, rep2_r, "user_hist_rep (padded batch)")
    _check(crep2, crep2_r, "user_hist_click_rep (padded batch)")
    _check(score2, score2_r, "score (padded batch)")

    print("KERNEL_OK")
</pallas_src>

<mosaic_0001>
module attributes {stable_mosaic.version = 11 : i64} {
  func.func @hist_att2_kernel(%arg0: i32, %arg1: memref<32x32xf32, #tpu.memory_space<vmem>>, %arg2: memref<32x8x32xf32, #tpu.memory_space<vmem>>, %arg3: memref<32x8x32xf32, #tpu.memory_space<vmem>>, %arg4: memref<32x1xi32, #tpu.memory_space<vmem>>, %arg5: memref<96x200xf32, #tpu.memory_space<vmem>>, %arg6: memref<1x200xf32, #tpu.memory_space<vmem>>, %arg7: memref<200x80xf32, #tpu.memory_space<vmem>>, %arg8: memref<1x80xf32, #tpu.memory_space<vmem>>, %arg9: memref<1x80xf32, #tpu.memory_space<vmem>>, %arg10: memref<1x1xf32, #tpu.memory_space<vmem>>, %arg11: memref<32x128xf32, #tpu.memory_space<vmem>>) attributes {dimension_semantics = [#tpu.dimension_semantics<parallel>], iteration_bounds = array<i64: 2>, scalar_prefetch = 0 : i64, scratch_operands = 0 : i64, tpu.core_type = #tpu.core_type<tc>, window_params = [{transform_indices = @transform_0, window_bounds = array<i64: 32, 32>}, {transform_indices = @transform_1, window_bounds = array<i64: 32, 8, 32>}, {transform_indices = @transform_2, window_bounds = array<i64: 32, 8, 32>}, {transform_indices = @transform_3, window_bounds = array<i64: 32, 1>}, {pipeline_mode = #tpu.pipeline_mode<synchronous>, transform_indices = @transform_4, window_bounds = array<i64: 96, 200>}, {pipeline_mode = #tpu.pipeline_mode<synchronous>, transform_indices = @transform_5, window_bounds = array<i64: 1, 200>}, {pipeline_mode = #tpu.pipeline_mode<synchronous>, transform_indices = @transform_6, window_bounds = array<i64: 200, 80>}, {pipeline_mode = #tpu.pipeline_mode<synchronous>, transform_indices = @transform_7, window_bounds = array<i64: 1, 80>}, {pipeline_mode = #tpu.pipeline_mode<synchronous>, transform_indices = @transform_8, window_bounds = array<i64: 1, 80>}, {pipeline_mode = #tpu.pipeline_mode<synchronous>, transform_indices = @transform_9, window_bounds = array<i64: 1, 1>}, {transform_indices = @transform_10, window_bounds = array<i64: 32, 128>}]} {
    %c0 = arith.constant 0 : index
    %c0_0 = arith.constant 0 : index
    %0 = vector.load %arg1[%c0, %c0_0] : memref<32x32xf32, #tpu.memory_space<vmem>>, vector<32x32xf32>
    %c0_1 = arith.constant 0 : index
    %c0_2 = arith.constant 0 : index
    %c0_3 = arith.constant 0 : index
    %1 = vector.load %arg2[%c0_1, %c0_2, %c0_3] : memref<32x8x32xf32, #tpu.memory_space<vmem>>, vector<32x8x32xf32>
    %c0_4 = arith.constant 0 : index
    %c0_5 = arith.constant 0 : index
    %c0_6 = arith.constant 0 : index
    %2 = vector.load %arg3[%c0_4, %c0_5, %c0_6] : memref<32x8x32xf32, #tpu.memory_space<vmem>>, vector<32x8x32xf32>
    %c0_7 = arith.constant 0 : index
    %c0_8 = arith.constant 0 : index
    %3 = vector.load %arg4[%c0_7, %c0_8] : memref<32x1xi32, #tpu.memory_space<vmem>>, vector<32x1xi32>
    %4 = vector.shape_cast %0 : vector<32x32xf32> to vector<32x1x32xf32>
    %5 = vector.shape_cast %4 : vector<32x1x32xf32> to vector<32x1x32xf32>
    %6 = vector.broadcast %5 : vector<32x1x32xf32> to vector<32x8x32xf32>
    %7 = arith.mulf %6, %1 : vector<32x8x32xf32>
    %8 = tpu.concatenate %6, %1, %7 in 2 : vector<32x8x32xf32>, vector<32x8x32xf32>, vector<32x8x32xf32> -> vector<32x8x96xf32>
    %9 = vector.shape_cast %8 : vector<32x8x96xf32> to vector<256x96xf32>
    %c0_9 = arith.constant 0 : index
    %c0_10 = arith.constant 0 : index
    %10 = vector.load %arg5[%c0_9, %c0_10] : memref<96x200xf32, #tpu.memory_space<vmem>>, vector<96x200xf32>
    %cst = arith.constant dense<0.000000e+00> : vector<256x200xf32>
    %11 = tpu.matmul %9, %10, %cst {dimension_numbers = #tpu.dot_dimension_numbers<[1], [0], [0], [1], [0, 0, 1, 1], [], []>} : vector<256x96xf32>, vector<96x200xf32>, vector<256x200xf32> -> vector<256x200xf32>
    %c0_11 = arith.constant 0 : index
    %c0_12 = arith.constant 0 : index
    %12 = vector.load %arg6[%c0_11, %c0_12] : memref<1x200xf32, #tpu.memory_space<vmem>>, vector<1x200xf32>
    %13 = vector.broadcast %12 : vector<1x200xf32> to vector<256x200xf32>
    %14 = arith.addf %11, %13 : vector<256x200xf32>
    %cst_13 = arith.constant 0.000000e+00 : f32
    %15 = vector.broadcast %cst_13 : f32 to vector<256x200xf32>
    %16 = arith.maximumf %14, %15 : vector<256x200xf32>
    %c0_14 = arith.constant 0 : index
    %c0_15 = arith.constant 0 : index
    %17 = vector.load %arg7[%c0_14, %c0_15] : memref<200x80xf32, #tpu.memory_space<vmem>>, vector<200x80xf32>
    %cst_16 = arith.constant dense<0.000000e+00> : vector<256x80xf32>
    %18 = tpu.matmul %16, %17, %cst_16 {dimension_numbers = #tpu.dot_dimension_numbers<[1], [0], [0], [1], [0, 0, 1, 1], [], []>} : vector<256x200xf32>, vector<200x80xf32>, vector<256x80xf32> -> vector<256x80xf32>
    %c0_17 = arith.constant 0 : index
    %c0_18 = arith.constant 0 : index
    %19 = vector.load %arg8[%c0_17, %c0_18] : memref<1x80xf32, #tpu.memory_space<vmem>>, vector<1x80xf32>
    %20 = vector.broadcast %19 : vector<1x80xf32> to vector<256x80xf32>
    %21 = arith.addf %18, %20 : vector<256x80xf32>
    %cst_19 = arith.constant 0.000000e+00 : f32
    %22 = vector.broadcast %cst_19 : f32 to vector<256x80xf32>
    %23 = arith.maximumf %21, %22 : vector<256x80xf32>
    %24 = vector.shape_cast %23 : vector<256x80xf32> to vector<32x8x80xf32>
    %c0_20 = arith.constant 0 : index
    %c0_21 = arith.constant 0 : index
    %25 = vector.load %arg9[%c0_20, %c0_21] : memref<1x80xf32, #tpu.memory_space<vmem>>, vector<1x80xf32>
    %26 = vector.shape_cast %25 : vector<1x80xf32> to vector<1x1x80xf32>
    %27 = vector.broadcast %26 : vector<1x1x80xf32> to vector<32x8x80xf32>
    %28 = arith.mulf %24, %27 : vector<32x8x80xf32>
    %cst_22 = arith.constant dense<0.000000e+00> : vector<32x8xf32>
    %29 = vector.multi_reduction <add>, %28, %cst_22 [2] : vector<32x8x80xf32> to vector<32x8xf32>
    %c0_23 = arith.constant 0 : index
    %c0_24 = arith.constant 0 : index
    %30 = vector.load %arg10[%c0_23, %c0_24] : memref<1x1xf32, #tpu.memory_space<vmem>>, vector<1x1xf32>
    %31 = vector.broadcast %30 : vector<1x1xf32> to vector<32x8xf32>
    %32 = arith.addf %29, %31 : vector<32x8xf32>
    %33 = tpu.iota {dimensions = array<i32: 1>} : vector<32x8xi32>
    %34 = vector.broadcast %3 : vector<32x1xi32> to vector<32x8xi32>
    %35 = arith.cmpi slt, %33, %34 : vector<32x8xi32>
    %cst_25 = arith.constant -1.024000e+03 : f32
    %36 = vector.broadcast %cst_25 : f32 to vector<32x8xf32>
    %37 = arith.select %35, %32, %36 : vector<32x8xi1>, vector<32x8xf32>
    %cst_26 = arith.constant dense<0xFF800000> : vector<32xf32>
    %38 = vector.multi_reduction <maximumf>, %37, %cst_26 [1] : vector<32x8xf32> to vector<32xf32>
    %39 = vector.shape_cast %38 : vector<32xf32> to vector<32x1xf32>
    %40 = vector.broadcast %39 : vector<32x1xf32> to vector<32x8xf32>
    %41 = arith.subf %37, %40 : vector<32x8xf32>
    %42 = math.exp %41 : vector<32x8xf32>
    %cst_27 = arith.constant dense<0.000000e+00> : vector<32xf32>
    %43 = vector.multi_reduction <add>, %42, %cst_27 [1] : vector<32x8xf32> to vector<32xf32>
    %44 = vector.shape_cast %43 : vector<32xf32> to vector<32x1xf32>
    %45 = vector.broadcast %44 : vector<32x1xf32> to vector<32x8xf32>
    %46 = arith.divf %42, %45 : vector<32x8xf32>
    %47 = vector.shape_cast %46 : vector<32x8xf32> to vector<32x8x1xf32>
    %48 = vector.broadcast %47 : vector<32x8x1xf32> to vector<32x8x32xf32>
    %49 = arith.mulf %1, %48 : vector<32x8x32xf32>
    %cst_28 = arith.constant dense<0.000000e+00> : vector<32x32xf32>
    %50 = vector.multi_reduction <add>, %49, %cst_28 [1] : vector<32x8x32xf32> to vector<32x32xf32>
    %51 = vector.broadcast %47 : vector<32x8x1xf32> to vector<32x8x32xf32>
    %52 = arith.mulf %2, %51 : vector<32x8x32xf32>
    %cst_29 = arith.constant dense<0.000000e+00> : vector<32x32xf32>
    %53 = vector.multi_reduction <add>, %52, %cst_29 [1] : vector<32x8x32xf32> to vector<32x32xf32>
    %c0_30 = arith.constant 0 : index
    %c0_31 = arith.constant 0 : index
    %54 = vector.load %arg11[%c0_30, %c0_31] : memref<32x128xf32, #tpu.memory_space<vmem>>, vector<32x32xf32>
    tpu.vector_store %arg11[%c0_30, %c0_31], %50 {strides = array<i32>} : memref<32x128xf32, #tpu.memory_space<vmem>>, vector<32x32xf32>,
    %c0_32 = arith.constant 0 : index
    %c32 = arith.constant 32 : index
    %55 = vector.load %arg11[%c0_32, %c32] : memref<32x128xf32, #tpu.memory_space<vmem>>, vector<32x32xf32>
    tpu.vector_store %arg11[%c0_32, %c32], %53 {strides = array<i32>} : memref<32x128xf32, #tpu.memory_space<vmem>>, vector<32x32xf32>,
    %c0_33 = arith.constant 0 : index
    %c64 = arith.constant 64 : index
    %56 = vector.load %arg11[%c0_33, %c64] : memref<32x128xf32, #tpu.memory_space<vmem>>, vector<32x8xf32>
    tpu.vector_store %arg11[%c0_33, %c64], %37 {strides = array<i32>} : memref<32x128xf32, #tpu.memory_space<vmem>>, vector<32x8xf32>,
    %cst_34 = arith.constant 0.000000e+00 : f32
    %57 = vector.broadcast %cst_34 : f32 to vector<32x56xf32>
    %c0_35 = arith.constant 0 : index
    %c72 = arith.constant 72 : index
    %58 = vector.load %arg11[%c0_35, %c72] : memref<32x128xf32, #tpu.memory_space<vmem>>, vector<32x56xf32>
    tpu.vector_store %arg11[%c0_35, %c72], %57 {strides = array<i32>} : memref<32x128xf32, #tpu.memory_space<vmem>>, vector<32x56xf32>,
    return
  }
  func.func @transform_0(%arg0: i32) -> (i32, i32) {
    %c0_i32 = arith.constant 0 : i32
    %c0_i32_0 = arith.constant 0 : i32
    return %arg0, %c0_i32 : i32, i32
  }
  func.func @transform_1(%arg0: i32) -> (i32, i32, i32) {
    %c0_i32 = arith.constant 0 : i32
    %c0_i32_0 = arith.constant 0 : i32
    %c0_i32_1 = arith.constant 0 : i32
    return %arg0, %c0_i32, %c0_i32_0 : i32, i32, i32
  }
  func.func @transform_2(%arg0: i32) -> (i32, i32, i32) {
    %c0_i32 = arith.constant 0 : i32
    %c0_i32_0 = arith.constant 0 : i32
    %c0_i32_1 = arith.constant 0 : i32
    return %arg0, %c0_i32, %c0_i32_0 : i32, i32, i32
  }
  func.func @transform_3(%arg0: i32) -> (i32, i32) {
    %c0_i32 = arith.constant 0 : i32
    %c0_i32_0 = arith.constant 0 : i32
    return %arg0, %c0_i32 : i32, i32
  }
  func.func @transform_4(%arg0: i32) -> (i32, i32) {
    %c0_i32 = arith.constant 0 : i32
    %c0_i32_0 = arith.constant 0 : i32
    %c0_i32_1 = arith.constant 0 : i32
    return %c0_i32, %c0_i32_0 : i32, i32
  }
  func.func @transform_5(%arg0: i32) -> (i32, i32) {
    %c0_i32 = arith.constant 0 : i32
    %c0_i32_0 = arith.constant 0 : i32
    %c0_i32_1 = arith.constant 0 : i32
    return %c0_i32, %c0_i32_0 : i32, i32
  }
  func.func @transform_6(%arg0: i32) -> (i32, i32) {
    %c0_i32 = arith.constant 0 : i32
    %c0_i32_0 = arith.constant 0 : i32
    %c0_i32_1 = arith.constant 0 : i32
    return %c0_i32, %c0_i32_0 : i32, i32
  }
  func.func @transform_7(%arg0: i32) -> (i32, i32) {
    %c0_i32 = arith.constant 0 : i32
    %c0_i32_0 = arith.constant 0 : i32
    %c0_i32_1 = arith.constant 0 : i32
    return %c0_i32, %c0_i32_0 : i32, i32
  }
  func.func @transform_8(%arg0: i32) -> (i32, i32) {
    %c0_i32 = arith.constant 0 : i32
    %c0_i32_0 = arith.constant 0 : i32
    %c0_i32_1 = arith.constant 0 : i32
    return %c0_i32, %c0_i32_0 : i32, i32
  }
  func.func @transform_9(%arg0: i32) -> (i32, i32) {
    %c0_i32 = arith.constant 0 : i32
    %c0_i32_0 = arith.constant 0 : i32
    %c0_i32_1 = arith.constant 0 : i32
    return %c0_i32, %c0_i32_0 : i32, i32
  }
  func.func @transform_10(%arg0: i32) -> (i32, i32) {
    %c0_i32 = arith.constant 0 : i32
    %c0_i32_0 = arith.constant 0 : i32
    return %arg0, %c0_i32 : i32, i32
  }
}

</mosaic_0001>

<bundles_post_ra>
// kernel: tpu_custom_call.1
= control target key start
LH: loop header
LB: loop body
LE: loop exit
PB: predicated region body
PF: predicated region fallthrough
CT: control target
= control target key end

     0   :  { %s5393_s0 = inlined_call_operand.vmem [shape: f32[64,32], index: 0, kind: input, shape index: {}]   ;;  %s5394_s1 = inlined_call_operand.vmem [shape: f32[64,8,32], index: 1, kind: input, shape index: {}]   ;;  %s5395_s2 = inlined_call_operand.vmem [shape: f32[64,8,32], index: 2, kind: input, shape index: {}]   ;;  %s5396_s3 = inlined_call_operand.vmem [shape: s32[64,1], index: 3, kind: input, shape index: {}]   ;;  %s5397_s4 = inlined_call_operand.vmem [shape: f32[96,200], index: 4, kind: input, shape index: {}]   ;;  %s5398_s5 = inlined_call_operand.vmem [shape: f32[1,200], index: 5, kind: input, shape index: {}]   ;;  %s5399_s6 = inlined_call_operand.vmem [shape: f32[200,80], index: 6, kind: input, shape index: {}]   ;;  %s5400_s7 = inlined_call_operand.vmem [shape: f32[1,80], index: 7, kind: input, shape index: {}]   ;;  %s5401_s8 = inlined_call_operand.vmem [shape: f32[1,80], index: 8, kind: input, shape index: {}]   ;;  %s5402_s9 = inlined_call_operand.<no memory space> [shape: f32[1,1], index: 9, kind: input, shape index: {}]   ;;  %s5403_s10 = inlined_call_operand.hbm [shape: f32[64,128], index: 10, kind: output, shape index: {}]  }
   0x1   :  { %v15_v0 = vstv %s5402_s9 }
   0x2   :  { %16 = vst [vmem:[#allocation2] sm:$0x1] %v15_v0 }
   0x3   :  { %17 = vsyncpa [#allocation4], 0 }
   0x4   :  { %19 = vsyncpa [#allocation4 + $0x1], 0  ;;  %s3882_s15 = smov 0   ;;  %s3884_s16 = smov 0  }
   0x5   :  { %s3886_s17 = smov 0   ;;  %s3888_s18 = smov 0  }
   0x6 LB: > { %s3903_s9 = sadd.s32 4294967295, %s3814_s18   ;;  %s3518_s19 = sadd.s32 4294967294, %s3814_s18   ;;  %s3814_s18 = sphi %s3888_s18, %s5416_s18   ;;  %s3810_s17 = sphi %s3886_s17, %s5415_s17   ;;  %s3806_s16 = sphi %s3884_s16, %s5414_s16   ;;  %s3802_s15 = sphi %s3882_s15, %s5413_s15  }
   0x7   : > { %s3907_s20 = sadd.s32 1, %s3814_s18   ;;  %s262_s21 = sadd.s32 1, %s3810_s17 }
   0x8   : > { %s259_s22 = ssub.s32 %s3814_s18, %s3907_s20  ;;  %p272_p0 = scmp.ne.s32.totalorder %s3810_s17, %s3806_s16 }
   0x9   : > { %p260_p1 = scmp.eq.s32.totalorder %s259_s22, 0  ;;  %p273_p2 = scmp.eq.s32.totalorder %s3903_s9, 1 }
   0xa   : > { %p278_p3 = scmp.ne.s32.totalorder %s3806_s16, %s3802_s15  ;;  %p279_p4 = scmp.eq.s32.totalorder %s3518_s19, 1 }
   0xb   : > { %s3918_s23 = scalar_select %p260_p1, %s3810_s17, %s262_s21  }
   0xc   : > { %p3920_p5 = por %p273_p2, %p272_p0  ;;  %p3924_p6 = por %p279_p4, %p278_p3 }
   0xd   : > { %p3521_p7 = scmp.ge.s32.totalorder %s3814_s18, 1  ;;  %p351_p8 = scmp.lt.s32.totalorder %s3814_s18, 3 }
   0xf   : > { %p352_p9 = pnand %p3521_p7, %p351_p8 }
  0x10   : > { %s3525_s26 = sshll.u32 (!%p352_p9), %s3903_s9, 5  ;;  %s3523_s27 = sshll.u32 (!%p352_p9), %s3903_s9, 2 }
  0x11   : > { %355 = sbr.rel (%p352_p9) target bundleno = 1532 (0x5fc), region = 60  ;;  %p411_p10 = scmp.lt.s32.totalorder (!%p352_p9), %s3525_s26, 63 }
  0x12   : > { %p405_p11 = scmp.lt.s32.totalorder (!%p352_p9), %s3523_s27, 7  ;;  %s3819_s11 = smov (!%p352_p9), 64  }
  0x13   : > { %s5410_s28 = smov (!%p352_p9), 32   ;;  %s3821_s22 = smov (!%p352_p9), [#allocation3]  }
  0x16   : > { %v509_v1 = vlaneseq  ;;  %v3816_v2 = vmov 1966171168   ;;  %v1238_v4 = vld [vmem:[%s5397_s4 + $0xb8] sm:$0xff]  ;;  %v1237_v5 = vld [vmem:[%s5397_s4 + $0xb0] sm:$0xff]  ;;  %v1236_v6 = vld [vmem:[%s5397_s4 + $0xa8] sm:$0xff]  ;;  %s5418_s26 = smov (!%p411_p10, %s3525_s26), 63 }
  0x17   : > { %v507_v3 = vunpack.c.l.s4 %v3816_v2  ;;  %1356 = vmatprep.subr.mxu0 %v1238_v4  ;;  %v1235_v8 = vld [vmem:[%s5397_s4 + $0xa0] sm:$0xff]  ;;  %v1234_v10 = vld [vmem:[%s5397_s4 + $0x98] sm:$0xff]  ;;  %s5420_s27 = smov (!%p405_p11, %s3523_s27), 7  ;;  %v1233_v11 = vld [vmem:[%s5397_s4 + $0x90] sm:$0xff]  ;;  %v3817_v12 = vmov 0.0   ;;  %s5404_s30 = sshll.u32 %s5418_s26, 3 }
  0x18   : > { %v3942_v7 = vshrl.u32 %v509_v1, 7  ;;  %1357 = vmatpush1.msra.mxu0 %v1237_v5  ;;  %1412 = vmatprep.mubr.f32.mxu0 %v3817_v12  ;;  %s3968_s13 = scalar_lea.vmem %s5394_s1, %s5404_s30  ;;  %s5405_s14 = sshll.u32 %s5420_s27, 3  ;;  %v1232_v14 = vld [vmem:[%s5397_s4 + $0x88] sm:$0xff]  ;;  %v1231_v17 = vld [vmem:[%s5397_s4 + $0x80] sm:$0xff]  ;;  %v1230_v19 = vld [vmem:[%s5397_s4 + $0x78] sm:$0xff]  ;;  %vm1149_vm0 = vcmask 261120  }
  0x19   : > { %v508_v9 = vunpack.c.0.s8 %v507_v3  ;;  %1358 = vmatprep.subr.mxu0 %v1236_v6  ;;  %3604 = vmatprep.subr.mxu1 %v3817_v12  ;;  %v433_v15 = vld [vmem:[%s3968_s13] sm:$0xff]  ;;  %v434_v16 = vld [vmem:[%s3968_s13 + $0x8] sm:$0xff]  ;;  %s3981_s29 = scalar_lea.vmem %s5393_s0, %s5405_s14  ;;  %s5406_s30 = smov 32   ;;  %v1229_v22 = vld [vmem:[%s5397_s4 + $0x70] sm:$0xff]  ;;  %vm1182_vm1 = vcmask 523264   ;;  %vm1251_vm2 = vcmask 785408  }
  0x1a   : > { %1359 = vmatpush1.msra.mxu0 %v1235_v8  ;;  %925 = vrot.lane.b32.xlu0 %v433_v15, %s5406_s30  ;;  %v429_v18 = vld [vmem:[%s3981_s29] sm:$0xff]  ;;  %v3994_v21 = vsub.s32 0, %v3942_v7  ;;  %v1228_v24 = vld [vmem:[%s5397_s4 + $0x68] sm:$0xff]  ;;  %v1226_v28 = vld [vmem:[%s5397_s4 + $0x58] sm:$0xff]  ;;  %vm1701_vm3 = vcmask 588800   ;;  %vm2094_vm4 = vcmask 654336  }
  0x1b   : > { %v3960_v13 = vsub.s32 %v508_v9, %v3942_v7  ;;  %1360 = vmatprep.subr.mxu0 %v1234_v10  ;;  %927 = vrot.lane.b32.xlu1 %v434_v16, %s5406_s30  ;;  %v505_v23 = vcombine.high %v429_v18, %v429_v18  ;;  %v1227_v27 = vld [vmem:[%s5397_s4 + $0x60] sm:$0xff]  ;;  %v1225_v32 = vld [vmem:[%s5397_s4 + $0x50] sm:$0xff]  ;;  %v1224_v38 = vld [vmem:[%s5397_s4 + $0x48] sm:$0xff]  ;;  %vm2411_vm5 = vcmask 1041409   ;;  %vm2413_vm6 = vcmask 1042434   ;;  %s3758_s30 = sshll.u32 %s3821_s22, 4  ;;  %s3759_s30 = int_to_ptr.vmem [resolvable:$false] %s3758_s30 }
  0x1c   : > { %1361 = vmatpush1.msra.mxu0 %v1233_v11  ;;  %v435_v39 = vld [vmem:[%s3968_s13 + $0x10] sm:$0xff]  ;;  %v1223_v41 = vld [vmem:[%s5397_s4 + $0x40] sm:$0xff]  ;;  %v1222_v46 = vld [vmem:[%s5397_s4 + $0x38] sm:$0xff]  ;;  %vm2415_vm7 = vcmask 1043459   ;;  %vm2417_vm8 = vcmask 1044484   ;;  %vm2419_vm9 = vcmask 1045509  }
  0x1d   : > { %v512_v20 = vrot.slane %v429_v18, %v3960_v13  ;;  %1362 = vmatprep.subr.mxu0 %v1232_v14  ;;  %v519_v33 = vrot.slane %v505_v23, %v3960_v13  ;;  %v436_v47 = vld [vmem:[%s3968_s13 + $0x18] sm:$0xff]  ;;  %v1221_v48 = vld [vmem:[%s5397_s4 + $0x30] sm:$0xff]  ;;  %v1220_v52 = vld [vmem:[%s5397_s4 + $0x28] sm:$0xff]  ;;  %vm2421_vm10 = vcmask 1046534   ;;  %vm2423_vm11 = vcmask 1047559  }
  0x1e   : > { %1363 = vmatpush1.msra.mxu0 %v1231_v17  ;;  %v437_v53 = vld [vmem:[%s3968_s13 + $0x20] sm:$0xff]  ;;  %v430_v58 = vld [vmem:[%s3981_s29 + $0x8] sm:$0xff]  ;;  %v432_v59 = vld [vmem:[%s3981_s29 + $0x18] sm:$0xff]  ;;  %vm2454_vm12 = vcmask 64512  }
  0x1f   : > { %v528_v25 = vrot.slane %v512_v20, %v3960_v13  ;;  %v520_v26 = vcombine.high %v512_v20, %v512_v20  ;;  %1364 = vmatprep.subr.mxu0 %v1230_v19  ;;  %v535_v44 = vrot.slane %v519_v33, %v3960_v13  ;;  %v521_v45 = vcombine.high %v519_v33, %v519_v33  ;;  %v1219_v54 = vld [vmem:[%s5397_s4 + $0x20] sm:$0xff]  ;;  %v1218_v60 = vld [vmem:[%s5397_s4 + $0x18] sm:$0xff]  ;;  %v438_v61 = vld [vmem:[%s3968_s13 + $0x28] sm:$0xff] }
  0x20   : > { %1365 = vmatpush1.msra.mxu0 %v1229_v22  ;;  %v1217_v62 = vld [vmem:[%s5397_s4 + $0x10] sm:$0xff]  ;;  %v561_v63 = vrot.slane %v430_v58, %v3960_v13  ;;  %v659_v0 = vrot.slane %v432_v59, %v3960_v13  ;;  %v1216_v2 = vld [vmem:[%s5397_s4 + $0x8] sm:$0xff]  ;;  %v1215_v6 = vld [vmem:[%s5397_s4] sm:$0xff]  ;;  %v652_v11 = vcombine.high %v432_v59, %v432_v59  ;;  %v554_v33 = vcombine.high %v430_v58, %v430_v58 }
  0x21   : > { %v4010_v29 = vrot.slane %v528_v25, %v3994_v21  ;;  %v542_v30 = vrot.slane %v520_v26, %v3960_v13  ;;  %v550_v31 = vcombine.high %v528_v25, %v528_v25  ;;  %1366 = vmatprep.subr.mxu0 %v1228_v24  ;;  %v4050_v50 = vrot.slane %v535_v44, %v3994_v21  ;;  %v439_v8 = vld [vmem:[%s3968_s13 + $0x30] sm:$0xff]  ;;  %v440_v20 = vld [vmem:[%s3968_s13 + $0x38] sm:$0xff] }
  0x22   : > { %1367 = vmatpush1.msra.mxu0 %v1227_v27  ;;  %v549_v51 = vrot.slane %v521_v45, %v3960_v13  ;;  %v551_v57 = vcombine.high %v535_v44, %v535_v44  ;;  %v4091_v9 = vrot.slane %v659_v0, %v3960_v13  ;;  %v667_v10 = vcombine.high %v659_v0, %v659_v0  ;;  %v431_v58 = vld [vmem:[%s3981_s29 + $0x10] sm:$0xff]  ;;  %s5411_s29 = sshll.u32 %s5420_s27, 3  ;;  %s5412_s27 = sshll.u32 %s5418_s26, 3 }
  0x23   : > { %v861_v34 = vmul.f32 %v4010_v29, %v433_v15  ;;  %v4019_v35 = vrot.slane %v542_v30, %v3994_v21  ;;  %v4022_v36 = vrot.slane %v550_v31, %v3994_v21  ;;  %v552_v37 = vcombine.high %v542_v30, %v542_v30  ;;  %1368 = vmatprep.subr.mxu0 %v1226_v28  ;;  %v441_v28 = vld [vmem:[%s3968_s13 + $0x40] sm:$0xff]  ;;  %s4798_s21 = scalar_lea.vmem %s5396_s3, %s5411_s29  ;;  %s4980_s14 = scalar_lea.vmem %s5395_s2, %s5412_s27 }
  0x24   : > { %1369 = vmatpush1.msra.mxu0 %v1225_v32  ;;  %v865_v55 = vmul.f32 %v4050_v50, %v437_v53  ;;  %v4064_v56 = vrot.slane %v549_v51, %v3994_v21  ;;  %v4084_v4 = vrot.slane %v551_v57, %v3994_v21  ;;  %v553_v5 = vcombine.high %v549_v51, %v549_v51  ;;  %v446_v57 = vld [vmem:[%s3968_s13 + $0x68] sm:$0xff]  ;;  %s401_s26 = sand.u32 1, %s3806_s16  }
  0x25   : > { %1053 = vrot.lane.b32.xlu0 %v861_v34, %s3819_s11  ;;  %v862_v40 = vmul.f32 %v4019_v35, %v434_v16  ;;  %1370 = vmatprep.subr.mxu0 %v1224_v38  ;;  %v863_v42 = vmul.f32 %v4022_v36, %v435_v39  ;;  %v4036_v43 = vrot.slane %v552_v37, %v3994_v21  ;;  %v442_v34 = vld [vmem:[%s3968_s13 + $0x48] sm:$0xff] }
  0x26   : > { %1371 = vmatpush1.msra.mxu0 %v1223_v41  ;;  %v866_v3 = vmul.f32 %v4064_v56, %v438_v61  ;;  %v577_v14 = vrot.slane %v561_v63, %v3960_v13  ;;  %v4096_v15 = vrot.slane %v667_v10, %v3960_v13  ;;  %v666_v16 = vrot.slane %v652_v11, %v3960_v13  ;;  %v443_v41 = vld [vmem:[%s3968_s13 + $0x50] sm:$0xff] }
  0x27   : > { %1055 = vrot.lane.b32.xlu1 %v862_v40, %s3819_s11  ;;  %1372 = vmatprep.subr.mxu0 %v1222_v46  ;;  %v864_v49 = vmul.f32 %v4036_v43, %v436_v47  ;;  %v867_v17 = vmul.f32 %v4084_v4, %v439_v8  ;;  %v4102_v18 = vrot.slane %v553_v5, %v3994_v21 }
  0x28   : > { %1373 = vmatpush1.msra.mxu0 %v1221_v48  ;;  %v569_v19 = vcombine.high %v561_v63, %v561_v63  ;;  %v4108_v22 = vrot.slane %v666_v16, %v3960_v13  ;;  %v668_v23 = vcombine.high %v666_v16, %v666_v16  ;;  %v4113_v25 = vrot.slane %v577_v14, %v3994_v21  ;;  %v447_v63 = vld [vmem:[%s3968_s13 + $0x70] sm:$0xff] }
  0x29   : > { %929 = vrot.lane.b32.xlu0 %v435_v39, %s5410_s28  ;;  %1374 = vmatprep.subr.mxu0 %v1220_v52  ;;  %v868_v24 = vmul.f32 %v4102_v18, %v440_v20  ;;  %v599_v32 = vcombine.high %v577_v14, %v577_v14  ;;  %v568_v40 = vrot.slane %v554_v33, %v3960_v13  ;;  %v445_v52 = vld [vmem:[%s3968_s13 + $0x60] sm:$0xff] }
  0x2a   : > { %1375 = vmatpush1.msra.mxu0 %v1219_v54  ;;  %v591_v26 = vrot.slane %v569_v19, %v3960_v13  ;;  %v4117_v27 = vrot.slane %v668_v23, %v3960_v13  ;;  %v869_v30 = vmul.f32 %v4113_v25, %v441_v28  ;;  %v449_v14 = vld [vmem:[%s3968_s13 + $0x80] sm:$0xff]  ;;  %v450_v23 = vld [vmem:[%s3968_s13 + $0x88] sm:$0xff] }
  0x2b   : > { %1057 = vrot.lane.b32.xlu1 %v863_v42, %s3819_s11  ;;  %1376 = vmatprep.subr.mxu0 %v1218_v60  ;;  %v4131_v38 = vrot.slane %v599_v32, %v3994_v21  ;;  %v584_v45 = vrot.slane %v568_v40, %v3960_v13  ;;  %v570_v46 = vcombine.high %v568_v40, %v568_v40  ;;  %v451_v32 = vld [vmem:[%s3968_s13 + $0x90] sm:$0xff]  ;;  %v452_v40 = vld [vmem:[%s3968_s13 + $0x98] sm:$0xff] }
  0x2c   : > { %1377 = vmatpush1.msra.mxu0 %v1217_v62  ;;  %v4124_v31 = vrot.slane %v591_v26, %v3994_v21  ;;  %v601_v39 = vcombine.high %v591_v26, %v591_v26  ;;  %v610_v62 = vrot.slane %v431_v58, %v3960_v13 }
  0x2d   : > { %931 = vrot.lane.b32.xlu0 %v436_v47, %s5410_s28  ;;  %1378 = vmatprep.subr.mxu0 %v1216_v2  ;;  %v871_v42 = vmul.f32 %v4131_v38, %v443_v41  ;;  %v444_v47 = vld [vmem:[%s3968_s13 + $0x58] sm:$0xff]  ;;  %v598_v51 = vrot.slane %v570_v46, %v3960_v13  ;;  %v453_v46 = vld [vmem:[%s3968_s13 + $0xa0] sm:$0xff] }
  0x2e   : > { %1379 = vmatpush1.msra.mxu0 %v1215_v6  ;;  %v870_v37 = vmul.f32 %v4124_v31, %v442_v34  ;;  %v4139_v44 = vrot.slane %v601_v39, %v3994_v21  ;;  %v618_v5 = vcombine.high %v610_v62, %v610_v62  ;;  %v448_v6 = vld [vmem:[%s3968_s13 + $0x78] sm:$0xff] }
  0x2f   : > { %1059 = vrot.lane.b32.xlu1 %v864_v49, %s3819_s11  ;;  %1798 = vmatprep.subr.mxu0 %v3817_v12  ;;  %v4147_v49 = vrot.slane %v584_v45, %v3994_v21  ;;  %v4155_v54 = vrot.slane %v598_v51, %v3994_v21 }
  0x30   : > { %v872_v48 = vmul.f32 %v4139_v44, %v444_v47  ;;  %v640_v11 = vrot.slane %v618_v5, %v3960_v13  ;;  %v4248_v5 = vrot.slane %v4096_v15, %v3994_v21 }
  0x31   : > { %933 = vrot.lane.b32.xlu0 %v437_v53, %s5410_s28  ;;  %v873_v53 = vmul.f32 %v4147_v49, %v445_v52  ;;  %v874_v59 = vmul.f32 %v4155_v54, %v446_v57 }
  0x33   : > { %1061 = vrot.lane.b32.xlu1 %v865_v55, %s3819_s11  ;;  %v600_v55 = vcombine.high %v584_v45, %v584_v45 }
  0x35   : > { %935 = vrot.lane.b32.xlu0 %v438_v61, %s5410_s28  ;;  %v4163_v60 = vrot.slane %v600_v55, %v3994_v21  ;;  %v602_v61 = vcombine.high %v598_v51, %v598_v51 }
  0x37   : > { %1063 = vrot.lane.b32.xlu1 %v866_v3, %s3819_s11  ;;  %v875_v0 = vmul.f32 %v4163_v60, %v447_v63  ;;  %v4171_v2 = vrot.slane %v602_v61, %v3994_v21  ;;  %v626_v3 = vrot.slane %v610_v62, %v3960_v13  ;;  %v456_v61 = vld [vmem:[%s3968_s13 + $0xb8] sm:$0xff] }
  0x39   : > { %937 = vrot.lane.b32.xlu0 %v439_v8, %s5410_s28  ;;  %v876_v8 = vmul.f32 %v4171_v2, %v448_v6  ;;  %v4179_v10 = vrot.slane %v626_v3, %v3994_v21  ;;  %v648_v19 = vcombine.high %v626_v3, %v626_v3 }
  0x3b   : > { %1065 = vrot.lane.b32.xlu1 %v867_v17, %s3819_s11  ;;  %v877_v16 = vmul.f32 %v4179_v10, %v449_v14  ;;  %v4187_v17 = vrot.slane %v640_v11, %v3994_v21  ;;  %v4194_v26 = vrot.slane %v648_v19, %v3994_v21  ;;  %v459_v19 = vld [vmem:[%s3968_s13 + $0xd0] sm:$0xff] }
  0x3d   : > { %939 = vrot.lane.b32.xlu0 %v440_v20, %s5410_s28  ;;  %v603_v20 = vcombine.high %v431_v58, %v431_v58  ;;  %v879_v33 = vmul.f32 %v4194_v26, %v451_v32 }
  0x3f   : > { %1067 = vrot.lane.b32.xlu1 %v868_v24, %s3819_s11  ;;  %v878_v24 = vmul.f32 %v4187_v17, %v450_v23 }
  0x41   : > { %941 = vrot.lane.b32.xlu0 %v441_v28, %s5410_s28  ;;  %v650_v28 = vcombine.high %v640_v11, %v640_v11 }
  0x43   : > { %1069 = vrot.lane.b32.xlu1 %v869_v30, %s3819_s11  ;;  %v617_v30 = vrot.slane %v603_v20, %v3960_v13 }
  0x45   : > { %943 = vrot.lane.b32.xlu0 %v442_v34, %s5410_s28  ;;  %v4202_v34 = vrot.slane %v650_v28, %v3994_v21  ;;  %v619_v39 = vcombine.high %v617_v30, %v617_v30  ;;  %v461_v28 = vld [vmem:[%s3968_s13 + $0xe0] sm:$0xff] }
  0x47   : > { %1071 = vrot.lane.b32.xlu1 %v870_v37, %s3819_s11  ;;  %v633_v37 = vrot.slane %v617_v30, %v3960_v13  ;;  %v647_v45 = vrot.slane %v619_v39, %v3960_v13 }
  0x49   : > { %945 = vrot.lane.b32.xlu0 %v443_v41, %s5410_s28  ;;  %v880_v41 = vmul.f32 %v4202_v34, %v452_v40  ;;  %v649_v51 = vcombine.high %v633_v37, %v633_v37  ;;  %v651_v55 = vcombine.high %v647_v45, %v647_v45 }
  0x4b   : > { %1073 = vrot.lane.b32.xlu1 %v871_v42, %s3819_s11  ;;  %v4210_v42 = vrot.slane %v633_v37, %v3994_v21  ;;  %v462_v37 = vld [vmem:[%s3968_s13 + $0xe8] sm:$0xff] }
  0x4d   : > { %947 = vrot.lane.b32.xlu0 %v444_v47, %s5410_s28  ;;  %v881_v47 = vmul.f32 %v4210_v42, %v453_v46 }
  0x4f   : > { %1075 = vrot.lane.b32.xlu1 %v872_v48, %s3819_s11  ;;  %v4218_v48 = vrot.slane %v647_v45, %v3994_v21 }
  0x51   : > { %949 = vrot.lane.b32.xlu0 %v445_v52, %s5410_s28  ;;  %v454_v52 = vld [vmem:[%s3968_s13 + $0xa8] sm:$0xff] }
  0x52   : > { %v882_v13 = vmul.f32 %v4218_v48, %v454_v52 }
  0x53   : > { %1077 = vrot.lane.b32.xlu1 %v873_v53, %s3819_s11  ;;  %v4225_v53 = vrot.slane %v649_v51, %v3994_v21 }
  0x55   : > { %951 = vrot.lane.b32.xlu0 %v446_v57, %s5410_s28  ;;  %v455_v57 = vld [vmem:[%s3968_s13 + $0xb0] sm:$0xff] }
  0x56   : > { %v883_v58 = vmul.f32 %v4225_v53, %v455_v57 }
  0x57   : > { %1079 = vrot.lane.b32.xlu1 %v874_v59, %s3819_s11  ;;  %v4232_v59 = vrot.slane %v651_v55, %v3994_v21  ;;  %v1683_v55 = vld [vmem:[%s5399_s6 + $0x70] sm:$0xff] }
  0x59   : > { %953 = vrot.lane.b32.xlu0 %v447_v63, %s5410_s28  ;;  %v884_v62 = vmul.f32 %v4232_v59, %v456_v61  ;;  %v4240_v63 = vrot.slane %v4091_v9, %v3994_v21 }
  0x5b   : > { %1081 = vrot.lane.b32.xlu1 %v875_v0, %s3819_s11  ;;  %v457_v0 = vld [vmem:[%s3968_s13 + $0xc0] sm:$0xff] }
  0x5c   : > { %v885_v3 = vmul.f32 %v4240_v63, %v457_v0 }
  0x5d   : > { %955 = vrot.lane.b32.xlu0 %v448_v6, %s5410_s28  ;;  %v697_v6 = vcombine.high %v4091_v9, %v4091_v9 }
  0x5f   : > { %1083 = vrot.lane.b32.xlu1 %v876_v8, %s3819_s11  ;;  %v458_v8 = vld [vmem:[%s3968_s13 + $0xc8] sm:$0xff] }
  0x60   : > { %v886_v11 = vmul.f32 %v4248_v5, %v458_v8 }
  0x61   : > { %957 = vrot.lane.b32.xlu0 %v449_v14, %s5410_s28  ;;  %v4257_v14 = vrot.slane %v697_v6, %v3994_v21  ;;  %v1682_v6 = vld [vmem:[%s5399_s6 + $0x68] sm:$0xff] }
  0x63   : > { %1085 = vrot.lane.b32.xlu1 %v877_v16, %s3819_s11  ;;  %v699_v16 = vcombine.high %v4096_v15, %v4096_v15  ;;  %v887_v9 = vmul.f32 %v4257_v14, %v459_v19  ;;  %v4274_v15 = vrot.slane %v4108_v22, %v3994_v21 }
  0x65   : > { %959 = vrot.lane.b32.xlu0 %v450_v23, %s5410_s28  ;;  %v4266_v20 = vrot.slane %v699_v16, %v3994_v21  ;;  %v460_v23 = vld [vmem:[%s3968_s13 + $0xd8] sm:$0xff]  ;;  %v889_v30 = vmul.f32 %v4274_v15, %v461_v28  ;;  %v1681_v16 = vld [vmem:[%s5399_s6 + $0x60] sm:$0xff] }
  0x67   : > { %1087 = vrot.lane.b32.xlu1 %v878_v24, %s3819_s11  ;;  %v888_v24 = vmul.f32 %v4266_v20, %v460_v23 }
  0x69   : > { %961 = vrot.lane.b32.xlu0 %v451_v32, %s5410_s28  ;;  %v4282_v32 = vrot.slane %v4117_v27, %v3994_v21 }
  0x6b   : > { %1089 = vrot.lane.b32.xlu1 %v879_v33, %s3819_s11  ;;  %v698_v33 = vcombine.high %v4108_v22, %v4108_v22  ;;  %v1684_v22 = vld [vmem:[%s5399_s6 + $0x78] sm:$0xff] }
  0x6c   : > { %3629 = vmatpush1.msra.mxu1 %v1684_v22 }
  0x6d   : > { %963 = vrot.lane.b32.xlu0 %v452_v40, %s5410_s28  ;;  %v4291_v45 = vrot.slane %v698_v33, %v3994_v21  ;;  %3605 = vmatprep.subr.mxu1 %v3817_v12 }
  0x6e   : > { %3630 = vmatpush1.msra.mxu1 %v1683_v55 }
  0x6f   : > { %1091 = vrot.lane.b32.xlu1 %v880_v41, %s3819_s11  ;;  %v890_v41 = vmul.f32 %v4282_v32, %v462_v37  ;;  %3606 = vmatprep.subr.mxu1 %v3817_v12 }
  0x70   : > { %3631 = vmatpush1.msra.mxu1 %v1682_v6 }
  0x71   : > { %965 = vrot.lane.b32.xlu0 %v453_v46, %s5410_s28  ;;  %v700_v46 = vcombine.high %v4117_v27, %v4117_v27  ;;  %3607 = vmatprep.subr.mxu1 %v3817_v12 }
  0x72   : > { %3632 = vmatpush1.msra.mxu1 %v1681_v16 }
  0x73   : > { %1093 = vrot.lane.b32.xlu1 %v881_v47, %s3819_s11  ;;  %v463_v47 = vld [vmem:[%s3968_s13 + $0xf0] sm:$0xff]  ;;  %3608 = vmatprep.subr.mxu1 %v3817_v12 }
  0x74   : > { %v891_v27 = vmul.f32 %v4291_v45, %v463_v47 }
  0x75   : > { %967 = vrot.lane.b32.xlu0 %v454_v52, %s5410_s28 }
  0x77   : > { %1095 = vrot.lane.b32.xlu1 %v882_v13, %s3819_s11  ;;  %v4305_v13 = vrot.slane %v700_v46, %v3994_v21 }
  0x79   : > { %969 = vrot.lane.b32.xlu0 %v455_v57, %s5410_s28 }
  0x7b   : > { %1097 = vrot.lane.b32.xlu1 %v883_v58, %s3819_s11  ;;  %v464_v58 = vld [vmem:[%s3968_s13 + $0xf8] sm:$0xff] }
  0x7d   : > { %971 = vrot.lane.b32.xlu0 %v456_v61, %s5410_s28 }
  0x7f   : > { %1099 = vrot.lane.b32.xlu1 %v884_v62, %s3819_s11 }
  0x81   : > { %973 = vrot.lane.b32.xlu0 %v457_v0, %s5410_s28  ;;  %v892_v0 = vmul.f32 %v4305_v13, %v464_v58 }
  0x83   : > { %1101 = vrot.lane.b32.xlu1 %v885_v3, %s3819_s11 }
  0x85   : > { %975 = vrot.lane.b32.xlu0 %v458_v8, %s5410_s28 }
  0x87   : > { %1103 = vrot.lane.b32.xlu1 %v886_v11, %s3819_s11 }
  0x89   : > { %977 = vrot.lane.b32.xlu0 %v459_v19, %s5410_s28 }
  0x8b   : > { %1105 = vrot.lane.b32.xlu1 %v887_v9, %s3819_s11 }
  0x8c   : > { %v926_v39 = vpop.permute.xlu0 %925 }
  0x8d   : > { %979 = vrot.lane.b32.xlu0 %v460_v23, %s5410_s28  ;;  %v928_v40 = vpop.permute.xlu1 %927  ;;  %v1150_v51 = vsel %vm1149_vm0, %v4010_v29, %v926_v39  ;;  %v1680_v23 = vld [vmem:[%s5399_s6 + $0x58] sm:$0xff] }
  0x8e   : > { %v1151_v29 = vsel %vm1149_vm0, %v4019_v35, %v928_v40  ;;  %3633 = vmatpush1.msra.mxu1 %v1680_v23 }
  0x8f   : > { %1107 = vrot.lane.b32.xlu1 %v888_v24, %s3819_s11  ;;  %3609 = vmatprep.subr.mxu1 %v3817_v12 }
  0x91   : > { %981 = vrot.lane.b32.xlu0 %v461_v28, %s5410_s28 }
  0x93   : > { %1109 = vrot.lane.b32.xlu1 %v889_v30, %s3819_s11 }
  0x95   : > { %983 = vrot.lane.b32.xlu0 %v462_v37, %s5410_s28  ;;  %v1678_v37 = vld [vmem:[%s5399_s6 + $0x48] sm:$0xff] }
  0x97   : > { %v1054_v52 = vpop.permute.xlu0 %1053  ;;  %1111 = vrot.lane.b32.xlu1 %v890_v41, %s3819_s11 }
  0x98   : > { %v1183_v57 = vsel %vm1182_vm1, %v1150_v51, %v1054_v52 }
  0x99   : > { %3531 = vmatmul.mubr.msk.f32.vlgmr.msra.gmra.mxu0 %vm1251_vm2, %v1183_v57  ;;  %v1056_v61 = vpop.permute.xlu1 %1055  ;;  %985 = vrot.lane.b32.xlu0 %v463_v47, %s5410_s28  ;;  %v1676_v47 = vld [vmem:[%s5399_s6 + $0x38] sm:$0xff] }
  0x9a   : > { %1418 = vmatprep.mubr.f32.mxu0 %v3817_v12  ;;  %1799 = vmatpush1.msra.mxu0 %v1684_v22  ;;  %v1184_v3 = vsel %vm1182_vm1, %v1151_v29, %v1056_v61 }
  0x9b   : > { %1113 = vrot.lane.b32.xlu1 %v891_v27, %s3819_s11  ;;  %v930_v62 = vpop.permute.xlu0 %929  ;;  %1800 = vmatprep.subr.mxu0 %v3817_v12 }
  0x9c   : > { %v1152_v35 = vsel %vm1149_vm0, %v4022_v36, %v930_v62  ;;  %1801 = vmatpush1.msra.mxu0 %v1683_v55  ;;  %v1674_v55 = vld [vmem:[%s5399_s6 + $0x28] sm:$0xff]  ;;  %v1672_v62 = vld [vmem:[%s5399_s6 + $0x18] sm:$0xff] }
  0x9d   : > { %3532 = vmatmul.mubr.msk.f32.gmra.mxu0 %vm1251_vm2, %v1184_v3  ;;  %v1058_v8 = vpop.permute.xlu1 %1057  ;;  %987 = vrot.lane.b32.xlu0 %v464_v58, %s5410_s28 }
  0x9e   : > { %v1185_v11 = vsel %vm1182_vm1, %v1152_v35, %v1058_v8  ;;  %1424 = vmatprep.mubr.f32.mxu0 %v3817_v12  ;;  %1802 = vmatprep.subr.mxu0 %v3817_v12  ;;  %v1670_v8 = vld [vmem:[%s5399_s6 + $0x8] sm:$0xff] }
  0x9f   : > { %1115 = vrot.lane.b32.xlu1 %v892_v0, %s3819_s11  ;;  %v932_v36 = vpop.permute.xlu0 %931  ;;  %1803 = vmatpush1.msra.mxu0 %v1682_v6 }
  0xa0   : > { %v1153_v19 = vsel %vm1149_vm0, %v4036_v43, %v932_v36  ;;  %1804 = vmatprep.subr.mxu0 %v3817_v12  ;;  %v1679_v43 = vld [vmem:[%s5399_s6 + $0x50] sm:$0xff] }
  0xa1   : > { %3533 = vmatmul.mubr.msk.f32.gmra.mxu0 %vm1251_vm2, %v1185_v11  ;;  %v1060_v9 = vpop.permute.xlu1 %1059  ;;  %3634 = vmatpush1.msra.mxu1 %v1679_v43 }
  0xa2   : > { %v1186_v24 = vsel %vm1182_vm1, %v1153_v19, %v1060_v9  ;;  %1430 = vmatprep.mubr.f32.mxu0 %v3817_v12  ;;  %1805 = vmatpush1.msra.mxu0 %v1681_v16  ;;  %v1669_v16 = vld [vmem:[%s5399_s6] sm:$0xff] }
  0xa3   : > { %v934_v28 = vpop.permute.xlu0 %933  ;;  %1806 = vmatprep.subr.mxu0 %v3817_v12  ;;  %3610 = vmatprep.subr.mxu1 %v3817_v12 }
  0xa4   : > { %v1154_v30 = vsel %vm1149_vm0, %v4050_v50, %v934_v28  ;;  %1807 = vmatpush1.msra.mxu0 %v1680_v23  ;;  %v1677_v50 = vld [vmem:[%s5399_s6 + $0x40] sm:$0xff]  ;;  %3635 = vmatpush1.msra.mxu1 %v1678_v37 }
  0xa5   : > { %3534 = vmatmul.mubr.msk.f32.gmra.mxu0 %vm1251_vm2, %v1186_v24  ;;  %v1062_v33 = vpop.permute.xlu1 %1061  ;;  %1808 = vmatprep.subr.mxu0 %v3817_v12 }
  0xa6   : > { %v1187_v39 = vsel %vm1182_vm1, %v1154_v30, %v1062_v33  ;;  %1436 = vmatprep.mubr.f32.mxu0 %v3817_v12  ;;  %1809 = vmatpush1.msra.mxu0 %v1679_v43  ;;  %v1692_v43 = vld [vmem:[%s5399_s6 + $0xb8] sm:$0xff] }
  0xa7   : > { %v936_v40 = vpop.permute.xlu0 %935  ;;  %1810 = vmatprep.subr.mxu0 %v3817_v12  ;;  %3611 = vmatprep.subr.mxu1 %v3817_v12 }
  0xa8   : > { %v1155_v41 = vsel %vm1149_vm0, %v4064_v56, %v936_v40  ;;  %1811 = vmatpush1.msra.mxu0 %v1678_v37  ;;  %v1675_v56 = vld [vmem:[%s5399_s6 + $0x30] sm:$0xff]  ;;  %3636 = vmatpush1.msra.mxu1 %v1677_v50 }
  0xa9   : > { %3535 = vmatmul.mubr.msk.f32.gmra.mxu0 %vm1251_vm2, %v1187_v39  ;;  %v1064_v46 = vpop.permute.xlu1 %1063  ;;  %1812 = vmatprep.subr.mxu0 %v3817_v12  ;;  %v1691_v37 = vld [vmem:[%s5399_s6 + $0xb0] sm:$0xff] }
  0xaa   : > { %v1188_v22 = vsel %vm1182_vm1, %v1155_v41, %v1064_v46  ;;  %1442 = vmatprep.mubr.f32.mxu0 %v3817_v12  ;;  %1813 = vmatpush1.msra.mxu0 %v1677_v50 }
  0xab   : > { %v938_v51 = vpop.permute.xlu0 %937  ;;  %1814 = vmatprep.subr.mxu0 %v3817_v12  ;;  %3612 = vmatprep.subr.mxu1 %v3817_v12 }
  0xac   : > { %v1156_v52 = vsel %vm1149_vm0, %v4084_v4, %v938_v51  ;;  %1815 = vmatpush1.msra.mxu0 %v1676_v47  ;;  %v1673_v4 = vld [vmem:[%s5399_s6 + $0x20] sm:$0xff]  ;;  %3637 = vmatpush1.msra.mxu1 %v1676_v47 }
  0xad   : > { %3536 = vmatmul.mubr.msk.f32.gmra.mxu0 %vm1251_vm2, %v1188_v22  ;;  %v1066_v27 = vpop.permute.xlu1 %1065  ;;  %1816 = vmatprep.subr.mxu0 %v3817_v12  ;;  %v1689_v47 = vld [vmem:[%s5399_s6 + $0xa0] sm:$0xff] }
  0xae   : > { %v1189_v57 = vsel %vm1182_vm1, %v1156_v52, %v1066_v27  ;;  %1448 = vmatprep.mubr.f32.mxu0 %v3817_v12  ;;  %1817 = vmatpush1.msra.mxu0 %v1675_v56 }
  0xaf   : > { %v940_v58 = vpop.permute.xlu0 %939  ;;  %1818 = vmatprep.subr.mxu0 %v3817_v12  ;;  %3613 = vmatprep.subr.mxu1 %v3817_v12 }
  0xb0   : > { %v1157_v29 = vsel %vm1149_vm0, %v4102_v18, %v940_v58  ;;  %1819 = vmatpush1.msra.mxu0 %v1674_v55  ;;  %v1671_v18 = vld [vmem:[%s5399_s6 + $0x10] sm:$0xff]  ;;  %3638 = vmatpush1.msra.mxu1 %v1675_v56 }
  0xb1   : > { %3537 = vmatmul.mubr.msk.f32.gmra.mxu0 %vm1251_vm2, %v1189_v57  ;;  %v1068_v61 = vpop.permute.xlu1 %1067  ;;  %1820 = vmatprep.subr.mxu0 %v3817_v12 }
  0xb2   : > { %v1190_v0 = vsel %vm1182_vm1, %v1157_v29, %v1068_v61  ;;  %1454 = vmatprep.mubr.f32.mxu0 %v3817_v12  ;;  %1821 = vmatpush1.msra.mxu0 %v1673_v4 }
  0xb3   : > { %v942_v3 = vpop.permute.xlu0 %941  ;;  %1822 = vmatprep.subr.mxu0 %v3817_v12  ;;  %3614 = vmatprep.subr.mxu1 %v3817_v12 }
  0xb4   : > { %v1158_v35 = vsel %vm1149_vm0, %v4113_v25, %v942_v3  ;;  %1823 = vmatpush1.msra.mxu0 %v1672_v62  ;;  %3639 = vmatpush1.msra.mxu1 %v1674_v55 }
  0xb5   : > { %3538 = vmatmul.mubr.msk.f32.gmra.mxu0 %vm1251_vm2, %v1190_v0  ;;  %v1070_v6 = vpop.permute.xlu1 %1069  ;;  %1824 = vmatprep.subr.mxu0 %v3817_v12 }
  0xb6   : > { %v1191_v11 = vsel %vm1182_vm1, %v1158_v35, %v1070_v6  ;;  %1460 = vmatprep.mubr.f32.mxu0 %v3817_v12  ;;  %1825 = vmatpush1.msra.mxu0 %v1671_v18 }
  0xb7   : > { %v944_v36 = vpop.permute.xlu0 %943  ;;  %1826 = vmatprep.subr.mxu0 %v3817_v12  ;;  %3615 = vmatprep.subr.mxu1 %v3817_v12 }
  0xb8   : > { %v1159_v25 = vsel %vm1149_vm0, %v4124_v31, %v944_v36  ;;  %1827 = vmatpush1.msra.mxu0 %v1670_v8  ;;  %v1693_v31 = vld [vmem:[%s5399_s6 + $0xc0] sm:$0xff]  ;;  %3640 = vmatpush1.msra.mxu1 %v1673_v4 }
  0xb9   : > { %3539 = vmatmul.mubr.msk.f32.gmra.mxu0 %vm1251_vm2, %v1191_v11  ;;  %v1072_v19 = vpop.permute.xlu1 %1071  ;;  %1828 = vmatprep.subr.mxu0 %v3817_v12  ;;  %v1687_v11 = vld [vmem:[%s5399_s6 + $0x90] sm:$0xff] }
  0xba   : > { %v1192_v9 = vsel %vm1182_vm1, %v1159_v25, %v1072_v19  ;;  %1466 = vmatprep.mubr.f32.mxu0 %v3817_v12  ;;  %1829 = vmatpush1.msra.mxu0 %v1669_v16  ;;  %v1686_v25 = vld [vmem:[%s5399_s6 + $0x88] sm:$0xff] }
  0xbb   : > { %v946_v23 = vpop.permute.xlu0 %945  ;;  %1844 = vmatprep.subr.mxu0 %v3817_v12  ;;  %3616 = vmatprep.subr.mxu1 %v3817_v12 }
  0xbc   : > { %v1160_v24 = vsel %vm1149_vm0, %v4131_v38, %v946_v23  ;;  %1845 = vmatpush2.msra.mxu0 %v1693_v31  ;;  %3641 = vmatpush1.msra.mxu1 %v1672_v62 }
  0xbd   : > { %3540 = vmatmul.mubr.msk.f32.gmra.mxu0 %vm1251_vm2, %v1192_v9  ;;  %v1074_v28 = vpop.permute.xlu1 %1073  ;;  %1846 = vmatprep.subr.mxu0 %v3817_v12 }
  0xbe   : > { %v1193_v30 = vsel %vm1182_vm1, %v1160_v24, %v1074_v28  ;;  %1472 = vmatprep.mubr.f32.mxu0 %v3817_v12  ;;  %1847 = vmatpush2.msra.mxu0 %v1692_v43 }
  0xbf   : > { %v948_v33 = vpop.permute.xlu0 %947  ;;  %1848 = vmatprep.subr.mxu0 %v3817_v12  ;;  %3617 = vmatprep.subr.mxu1 %v3817_v12 }
  0xc0   : > { %v1161_v38 = vsel %vm1149_vm0, %v4139_v44, %v948_v33  ;;  %1849 = vmatpush2.msra.mxu0 %v1691_v37  ;;  %v1690_v44 = vld [vmem:[%s5399_s6 + $0xa8] sm:$0xff]  ;;  %3642 = vmatpush1.msra.mxu1 %v1671_v18 }
  0xc1   : > { %3541 = vmatmul.mubr.msk.f32.gmra.mxu0 %vm1251_vm2, %v1193_v30  ;;  %v1076_v39 = vpop.permute.xlu1 %1075  ;;  %1850 = vmatprep.subr.mxu0 %v3817_v12 }
  0xc2   : > { %v1194_v40 = vsel %vm1182_vm1, %v1161_v38, %v1076_v39  ;;  %1478 = vmatprep.mubr.f32.mxu0 %v3817_v12  ;;  %3618 = vmatprep.subr.mxu1 %v3817_v12 }
  0xc3   : > { %v950_v50 = vpop.permute.xlu0 %949  ;;  %1851 = vmatpush2.msra.mxu0 %v1690_v44  ;;  %3643 = vmatpush1.msra.mxu1 %v1670_v8 }
  0xc4   : > { %v1162_v41 = vsel %vm1149_vm0, %v4147_v49, %v950_v50  ;;  %1852 = vmatprep.subr.mxu0 %v3817_v12  ;;  %3619 = vmatprep.subr.mxu1 %v3817_v12 }
  0xc5   : > { %3542 = vmatmul.mubr.msk.f32.gmra.mxu0 %vm1251_vm2, %v1194_v40  ;;  %v1078_v46 = vpop.permute.xlu1 %1077  ;;  %3644 = vmatpush1.msra.mxu1 %v1669_v16 }
  0xc6   : > { %v1195_v22 = vsel %vm1182_vm1, %v1162_v41, %v1078_v46  ;;  %1484 = vmatprep.mubr.f32.mxu0 %v3817_v12  ;;  %1853 = vmatpush2.msra.mxu0 %v1689_v47 }
  0xc7   : > { %v952_v51 = vpop.permute.xlu0 %951  ;;  %1854 = vmatprep.subr.mxu0 %v3817_v12  ;;  %3620 = vmatprep.subr.mxu1 %v3817_v12 }
  0xc8   : > { %v1163_v49 = vsel %vm1149_vm0, %v4155_v54, %v952_v51  ;;  %3645 = vmatpush2.msra.mxu1 %v1693_v31 }
  0xc9   : > { %3543 = vmatmul.mubr.msk.f32.gmra.mxu0 %vm1251_vm2, %v1195_v22  ;;  %v1080_v56 = vpop.permute.xlu1 %1079  ;;  %3621 = vmatprep.subr.mxu1 %v3817_v12 }
  0xca   : > { %v1196_v52 = vsel %vm1182_vm1, %v1163_v49, %v1080_v56  ;;  %1490 = vmatprep.mubr.f32.mxu0 %v3817_v12  ;;  %3646 = vmatpush2.msra.mxu1 %v1692_v43 }
  0xcb   : > { %v954_v27 = vpop.permute.xlu0 %953  ;;  %3622 = vmatprep.subr.mxu1 %v3817_v12 }
  0xcc   : > { %v1164_v55 = vsel %vm1149_vm0, %v4163_v60, %v954_v27  ;;  %3647 = vmatpush2.msra.mxu1 %v1691_v37 }
  0xcd   : > { %3544 = vmatmul.mubr.msk.f32.gmra.mxu0 %vm1251_vm2, %v1196_v52  ;;  %v1082_v54 = vpop.permute.xlu1 %1081  ;;  %3623 = vmatprep.subr.mxu1 %v3817_v12 }
  0xce   : > { %v1197_v57 = vsel %vm1182_vm1, %v1164_v55, %v1082_v54  ;;  %1496 = vmatprep.mubr.f32.mxu0 %v3817_v12  ;;  %3648 = vmatpush2.msra.mxu1 %v1690_v44 }
  0xcf   : > { %v956_v58 = vpop.permute.xlu0 %955  ;;  %3624 = vmatprep.subr.mxu1 %v3817_v12 }
  0xd0   : > { %v1165_v4 = vsel %vm1149_vm0, %v4171_v2, %v956_v58  ;;  %3649 = vmatpush2.msra.mxu1 %v1689_v47 }
  0xd1   : > { %3545 = vmatmul.mubr.msk.f32.gmra.mxu0 %vm1251_vm2, %v1197_v57  ;;  %v1084_v60 = vpop.permute.xlu1 %1083  ;;  %3625 = vmatprep.subr.mxu1 %v3817_v12 }
  0xd2   : > { %v1198_v29 = vsel %vm1182_vm1, %v1165_v4, %v1084_v60  ;;  %1502 = vmatprep.mubr.f32.mxu0 %v3817_v12 }
  0xd3   : > { %v958_v61 = vpop.permute.xlu0 %957 }
  0xd4   : > { %v1166_v62 = vsel %vm1149_vm0, %v4179_v10, %v958_v61  ;;  %v1688_v10 = vld [vmem:[%s5399_s6 + $0x98] sm:$0xff] }
  0xd5   : > { %3546 = vmatmul.mubr.msk.f32.gmra.mxu0 %vm1251_vm2, %v1198_v29  ;;  %v1086_v2 = vpop.permute.xlu1 %1085  ;;  %3650 = vmatpush2.msra.mxu1 %v1688_v10 }
  0xd6   : > { %v1199_v0 = vsel %vm1182_vm1, %v1166_v62, %v1086_v2  ;;  %1508 = vmatprep.mubr.f32.mxu0 %v3817_v12  ;;  %1855 = vmatpush2.msra.mxu0 %v1688_v10 }
  0xd7   : > { %v960_v3 = vpop.permute.xlu0 %959  ;;  %1856 = vmatprep.subr.mxu0 %v3817_v12  ;;  %3626 = vmatprep.subr.mxu1 %v3817_v12 }
  0xd8   : > { %v1167_v18 = vsel %vm1149_vm0, %v4187_v17, %v960_v3  ;;  %1857 = vmatpush2.msra.mxu0 %v1687_v11  ;;  %3651 = vmatpush2.msra.mxu1 %v1687_v11  ;;  %v4594_v11 = vsub.s32 1, %v3942_v7 }
  0xd9   : > { %3547 = vmatmul.mubr.msk.f32.gmra.mxu0 %vm1251_vm2, %v1199_v0  ;;  %v1088_v35 = vpop.permute.xlu1 %1087  ;;  %1858 = vmatprep.subr.mxu0 %v3817_v12 }
  0xda   : > { %v1200_v6 = vsel %vm1182_vm1, %v1167_v18, %v1088_v35  ;;  %1514 = vmatprep.mubr.f32.mxu0 %v3817_v12  ;;  %1859 = vmatpush2.msra.mxu0 %v1686_v25 }
  0xdb   : > { %v962_v8 = vpop.permute.xlu0 %961  ;;  %1860 = vmatprep.subr.mxu0 %v3817_v12  ;;  %3627 = vmatprep.subr.mxu1 %v3817_v12 }
  0xdc   : > { %v1168_v17 = vsel %vm1149_vm0, %v4194_v26, %v962_v8  ;;  %v1685_v26 = vld [vmem:[%s5399_s6 + $0x80] sm:$0xff]  ;;  %3652 = vmatpush2.msra.mxu1 %v1686_v25 }
  0xdd   : > { %3548 = vmatmul.mubr.msk.f32.gmra.mxu0 %vm1251_vm2, %v1200_v6  ;;  %v1090_v36 = vpop.permute.xlu1 %1089  ;;  %3628 = vmatprep.subr.mxu1 %v3817_v12 }
  0xde   : > { %v1201_v16 = vsel %vm1182_vm1, %v1168_v17, %v1090_v36  ;;  %1520 = vmatprep.mubr.f32.mxu0 %v3817_v12  ;;  %1861 = vmatpush2.msra.mxu0 %v1685_v26 }
  0xdf   : > { %v964_v19 = vpop.permute.xlu0 %963  ;;  %3653 = vmatpush2.msra.mxu1 %v1685_v26 }
  0xe0   : > { %v1169_v9 = vsel %vm1149_vm0, %v4202_v34, %v964_v19 }
  0xe1   : > { %3549 = vmatmul.mubr.msk.f32.gmra.mxu0 %vm1251_vm2, %v1201_v16  ;;  %v1092_v23 = vpop.permute.xlu1 %1091 }
  0xe2   : > { %v1202_v31 = vsel %vm1182_vm1, %v1169_v9, %v1092_v23  ;;  %1526 = vmatprep.mubr.f32.mxu0 %v3817_v12  ;;  %v3597_v9 = vld [vmem:[#allocation2] ss:$0 sm:$0xff] }
  0xe3   : > { %v966_v24 = vpop.permute.xlu0 %965 }
  0xe4   : > { %v1170_v28 = vsel %vm1149_vm0, %v4210_v42, %v966_v24 }
  0xe5   : > { %3550 = vmatmul.mubr.msk.f32.gmra.mxu0 %vm1251_vm2, %v1202_v31  ;;  %v1094_v34 = vpop.permute.xlu1 %1093  ;;  %v3820_v31 = vmov 0  }
  0xe6   : > { %v1203_v43 = vsel %vm1182_vm1, %v1170_v28, %v1094_v34  ;;  %1532 = vmatprep.mubr.f32.mxu0 %v3817_v12  ;;  %3700 = vset.pattern.permute.xlu1 %v3820_v31 }
  0xe7   : > { %v968_v30 = vpop.permute.xlu0 %967  ;;  %3701 = vset.pattern.permute.xlu0 %v3820_v31  ;;  %2198 = vperm.xlu1 %3700, %v3597_v9  }
  0xe8   : > { %v1171_v33 = vsel %vm1149_vm0, %v4218_v48, %v968_v30 }
  0xe9   : > { %3551 = vmatmul.mubr.msk.f32.gmra.mxu0 %vm1251_vm2, %v1203_v43  ;;  %v1096_v38 = vpop.permute.xlu1 %1095 }
  0xea   : > { %v1204_v37 = vsel %vm1182_vm1, %v1171_v33, %v1096_v38  ;;  %1538 = vmatprep.mubr.f32.mxu0 %v3817_v12 }
  0xeb   : > { %v970_v39 = vpop.permute.xlu0 %969 }
  0xec   : > { %v1172_v42 = vsel %vm1149_vm0, %v4225_v53, %v970_v39 }
  0xed   : > { %3552 = vmatmul.mubr.msk.f32.gmra.mxu0 %vm1251_vm2, %v1204_v37  ;;  %v1098_v40 = vpop.permute.xlu1 %1097 }
  0xee   : > { %v1205_v50 = vsel %vm1182_vm1, %v1172_v42, %v1098_v40  ;;  %1544 = vmatprep.mubr.f32.mxu0 %v3817_v12 }
  0xef   : > { %v972_v44 = vpop.permute.xlu0 %971 }
  0xf0   : > { %v1173_v48 = vsel %vm1149_vm0, %v4232_v59, %v972_v44 }
  0xf1   : > { %3553 = vmatmul.mubr.msk.f32.gmra.mxu0 %vm1251_vm2, %v1205_v50  ;;  %v1100_v41 = vpop.permute.xlu1 %1099 }
  0xf2   : > { %v1206_v46 = vsel %vm1182_vm1, %v1173_v48, %v1100_v41  ;;  %1550 = vmatprep.mubr.f32.mxu0 %v3817_v12 }
  0xf3   : > { %v974_v47 = vpop.permute.xlu0 %973 }
  0xf4   : > { %v1174_v53 = vsel %vm1149_vm0, %v4240_v63, %v974_v47 }
  0xf5   : > { %3554 = vmatmul.mubr.msk.f32.gmra.mxu0 %vm1251_vm2, %v1206_v46  ;;  %v1102_v22 = vpop.permute.xlu1 %1101 }
  0xf6   : > { %v1207_v51 = vsel %vm1182_vm1, %v1174_v53, %v1102_v22  ;;  %1556 = vmatprep.mubr.f32.mxu0 %v3817_v12 }
  0xf7   : > { %v976_v49 = vpop.permute.xlu0 %975 }
  0xf8   : > { %v1175_v59 = vsel %vm1149_vm0, %v4248_v5, %v976_v49 }
  0xf9   : > { %3555 = vmatmul.mubr.msk.f32.gmra.mxu0 %vm1251_vm2, %v1207_v51  ;;  %v1104_v56 = vpop.permute.xlu1 %1103 }
  0xfa   : > { %v1208_v52 = vsel %vm1182_vm1, %v1175_v59, %v1104_v56  ;;  %1562 = vmatprep.mubr.f32.mxu0 %v3817_v12 }
  0xfb   : > { %v978_v27 = vpop.permute.xlu0 %977 }
  0xfc   : > { %v1176_v63 = vsel %vm1149_vm0, %v4257_v14, %v978_v27 }
  0xfd   : > { %3556 = vmatmul.mubr.msk.f32.gmra.mxu0 %vm1251_vm2, %v1208_v52  ;;  %v1106_v55 = vpop.permute.xlu1 %1105 }
  0xfe   : > { %v1209_v54 = vsel %vm1182_vm1, %v1176_v63, %v1106_v55  ;;  %1568 = vmatprep.mubr.f32.mxu0 %v3817_v12 }
  0xff   : > { %v980_v57 = vpop.permute.xlu0 %979 }
 0x100   : > { %v1177_v5 = vsel %vm1149_vm0, %v4266_v20, %v980_v57 }
 0x101   : > { %3557 = vmatmul.mubr.msk.f32.gmra.mxu0 %vm1251_vm2, %v1209_v54  ;;  %v1108_v58 = vpop.permute.xlu1 %1107 }
 0x102   : > { %v1210_v4 = vsel %vm1182_vm1, %v1177_v5, %v1108_v58  ;;  %1574 = vmatprep.mubr.f32.mxu0 %v3817_v12 }
 0x103   : > { %v982_v60 = vpop.permute.xlu0 %981 }
 0x104   : > { %v1178_v14 = vsel %vm1149_vm0, %v4274_v15, %v982_v60 }
 0x105   : > { %3558 = vmatmul.mubr.msk.f32.gmra.mxu0 %vm1251_vm2, %v1210_v4  ;;  %v1110_v29 = vpop.permute.xlu1 %1109 }
 0x106   : > { %v1211_v61 = vsel %vm1182_vm1, %v1178_v14, %v1110_v29  ;;  %1580 = vmatprep.mubr.f32.mxu0 %v3817_v12 }
 0x107   : > { %v984_v62 = vpop.permute.xlu0 %983 }
 0x108   : > { %v1179_v20 = vsel %vm1149_vm0, %v4282_v32, %v984_v62 }
 0x109   : > { %3559 = vmatmul.mubr.msk.f32.gmra.mxu0 %vm1251_vm2, %v1211_v61  ;;  %v1112_v2 = vpop.permute.xlu1 %1111 }
 0x10a   : > { %v1212_v0 = vsel %vm1182_vm1, %v1179_v20, %v1112_v2  ;;  %1586 = vmatprep.mubr.f32.mxu0 %v3817_v12 }
 0x10b   : > { %v986_v3 = vpop.permute.xlu0 %985 }
 0x10c   : > { %v1180_v15 = vsel %vm1149_vm0, %v4291_v45, %v986_v3  ;;  %v1239_v45 = vld [vmem:[%s5398_s5] sm:$0x3] }
 0x10d   : > { %3560 = vmatmul.mubr.msk.f32.gmra.mxu0 %vm1251_vm2, %v1212_v0  ;;  %v1114_v18 = vpop.permute.xlu1 %1113  ;;  %v4597_v17 = vrot.slane %v1239_v45, %v3994_v21 }
 0x10e   : > { %v1213_v35 = vsel %vm1182_vm1, %v1180_v15, %v1114_v18  ;;  %1592 = vmatprep.mubr.f32.mxu0 %v3817_v12 }
 0x10f   : > { %v988_v10 = vpop.permute.xlu0 %987 }
 0x110   : > { %v1181_v32 = vsel %vm1149_vm0, %v4305_v13, %v988_v10  ;;  %v4600_v13 = vrot.slane %v1239_v45, %v4594_v11 }
 0x111   : > { %3561 = vmatmul.mubr.msk.f32.gmra.mxu0 %vm1251_vm2, %v1213_v35  ;;  %v1116_v6 = vpop.permute.xlu1 %1115 }
 0x112   : > { %v1214_v8 = vsel %vm1182_vm1, %v1181_v32, %v1116_v6  ;;  %1598 = vmatprep.mubr.f32.mxu0 %v3817_v12 }
 0x115   : > { %3562 = vmatmul.mubr.msk.f32.gmra.mxu0 %vm1251_vm2, %v1214_v8  ;;  %vm3375_vm2 = vcmask 523520  }
 0x159   : > { %v1414_v36 = vpop.f32.mrf.mxu0 }
 0x15a   : > { %v1415_v25 = vadd.f32 %v1414_v36, %v4597_v17 }
 0x15b   : > { %v1416_v16 = vpop.f32.mrf.mxu0 }
 0x15c   : > { %v1417_v19 = vadd.f32 %v1416_v16, %v4600_v13  ;;  %v1605_v24 = vmax.f32 %v1415_v25, 0.0 }
 0x15d   : > { %v1420_v26 = vpop.f32.mrf.mxu0 }
 0x15e   : > { %v1606_v23 = vmax.f32 %v1417_v19, 0.0  ;;  %v1421_v28 = vadd.f32 %v1420_v26, %v4597_v17 }
 0x15f   : > { %v1422_v34 = vpop.f32.mrf.mxu0 }
 0x160   : > { %v1423_v43 = vadd.f32 %v1422_v34, %v4600_v13  ;;  %3564 = vmatprep.mubr.msk.f32.mxu0 %vm1701_vm3, %v1606_v23  ;;  %v1607_v38 = vmax.f32 %v1421_v28, 0.0 }
 0x161   : > { %v1426_v30 = vpop.f32.mrf.mxu0  ;;  %1863 = vmatmul.mubr.f32.vlgmr.msra.gmra.mxu0 %v1605_v24 }
 0x162   : > { %v1608_v33 = vmax.f32 %v1423_v43, 0.0  ;;  %v1427_v37 = vadd.f32 %v1426_v30, %v4597_v17 }
 0x163   : > { %v1428_v39 = vpop.f32.mrf.mxu0 }
 0x164   : > { %v1429_v42 = vadd.f32 %v1428_v39, %v4600_v13  ;;  %3565 = vmatprep.mubr.msk.f32.mxu0 %vm1701_vm3, %v1608_v33  ;;  %v1609_v44 = vmax.f32 %v1427_v37, 0.0 }
 0x165   : > { %v1432_v40 = vpop.f32.mrf.mxu0  ;;  %1868 = vmatmul.mubr.f32.gmra.mxu0 %v1607_v38 }
 0x166   : > { %v1610_v50 = vmax.f32 %v1429_v42, 0.0  ;;  %v1433_v48 = vadd.f32 %v1432_v40, %v4597_v17 }
 0x167   : > { %v1434_v41 = vpop.f32.mrf.mxu0 }
 0x168   : > { %v1435_v46 = vadd.f32 %v1434_v41, %v4600_v13  ;;  %3566 = vmatprep.mubr.msk.f32.mxu0 %vm1701_vm3, %v1610_v50  ;;  %v1611_v22 = vmax.f32 %v1433_v48, 0.0 }
 0x169   : > { %v1438_v47 = vpop.f32.mrf.mxu0  ;;  %1873 = vmatmul.mubr.f32.gmra.mxu0 %v1609_v44 }
 0x16a   : > { %v1612_v53 = vmax.f32 %v1435_v46, 0.0  ;;  %v1439_v51 = vadd.f32 %v1438_v47, %v4597_v17 }
 0x16b   : > { %v1440_v49 = vpop.f32.mrf.mxu0 }
 0x16c   : > { %v1441_v59 = vadd.f32 %v1440_v49, %v4600_v13  ;;  %3567 = vmatprep.mubr.msk.f32.mxu1 %vm1701_vm3, %v1612_v53  ;;  %v1613_v27 = vmax.f32 %v1439_v51, 0.0 }
 0x16d   : > { %v1444_v56 = vpop.f32.mrf.mxu0  ;;  %1878 = vmatmul.mubr.f32.vlgmr.msra.gmra.mxu1 %v1611_v22 }
 0x16e   : > { %v1614_v52 = vmax.f32 %v1441_v59, 0.0  ;;  %v1445_v63 = vadd.f32 %v1444_v56, %v4597_v17 }
 0x16f   : > { %v1446_v55 = vpop.f32.mrf.mxu0 }
 0x170   : > { %v1447_v54 = vadd.f32 %v1446_v55, %v4600_v13  ;;  %3568 = vmatprep.mubr.msk.f32.mxu1 %vm1701_vm3, %v1614_v52  ;;  %v1615_v58 = vmax.f32 %v1445_v63, 0.0 }
 0x171   : > { %v1450_v57 = vpop.f32.mrf.mxu0  ;;  %1883 = vmatmul.mubr.f32.gmra.mxu1 %v1613_v27 }
 0x172   : > { %v1616_v5 = vmax.f32 %v1447_v54, 0.0  ;;  %v1451_v4 = vadd.f32 %v1450_v57, %v4597_v17 }
 0x173   : > { %v1452_v60 = vpop.f32.mrf.mxu0 }
 0x174   : > { %v1453_v14 = vadd.f32 %v1452_v60, %v4600_v13  ;;  %3569 = vmatprep.mubr.msk.f32.mxu1 %vm1701_vm3, %v1616_v5  ;;  %v1617_v62 = vmax.f32 %v1451_v4, 0.0 }
 0x175   : > { %v1456_v29 = vpop.f32.mrf.mxu0  ;;  %1888 = vmatmul.mubr.f32.gmra.mxu1 %v1615_v58 }
 0x176   : > { %v1618_v61 = vmax.f32 %v1453_v14, 0.0  ;;  %v1457_v20 = vadd.f32 %v1456_v29, %v4597_v17 }
 0x177   : > { %v1458_v2 = vpop.f32.mrf.mxu0 }
 0x178   : > { %v1459_v0 = vadd.f32 %v1458_v2, %v4600_v13  ;;  %3570 = vmatprep.mubr.msk.f32.mxu1 %vm1701_vm3, %v1618_v61  ;;  %v1619_v18 = vmax.f32 %v1457_v20, 0.0 }
 0x179   : > { %v1462_v3 = vpop.f32.mrf.mxu0  ;;  %1893 = vmatmul.mubr.f32.gmra.mxu1 %v1617_v62 }
 0x17a   : > { %v1620_v15 = vmax.f32 %v1459_v0, 0.0  ;;  %v1463_v35 = vadd.f32 %v1462_v3, %v4597_v17 }
 0x17b   : > { %v1464_v10 = vpop.f32.mrf.mxu0 }
 0x17c   : > { %v1465_v32 = vadd.f32 %v1464_v10, %v4600_v13  ;;  %3571 = vmatprep.mubr.msk.f32.mxu1 %vm1701_vm3, %v1620_v15  ;;  %v1621_v45 = vmax.f32 %v1463_v35, 0.0 }
 0x17d   : > { %v1468_v6 = vpop.f32.mrf.mxu0  ;;  %1898 = vmatmul.mubr.f32.gmra.mxu1 %v1619_v18 }
 0x17e   : > { %v1622_v8 = vmax.f32 %v1465_v32, 0.0  ;;  %v1469_v36 = vadd.f32 %v1468_v6, %v4597_v17 }
 0x17f   : > { %v1470_v25 = vpop.f32.mrf.mxu0 }
 0x180   : > { %v1471_v16 = vadd.f32 %v1470_v25, %v4600_v13  ;;  %3572 = vmatprep.mubr.msk.f32.mxu1 %vm1701_vm3, %v1622_v8  ;;  %v1623_v9 = vmax.f32 %v1469_v36, 0.0 }
 0x181   : > { %v1474_v19 = vpop.f32.mrf.mxu0  ;;  %1903 = vmatmul.mubr.f32.gmra.mxu1 %v1621_v45 }
 0x182   : > { %v1624_v26 = vmax.f32 %v1471_v16, 0.0  ;;  %v1475_v23 = vadd.f32 %v1474_v19, %v4597_v17 }
 0x183   : > { %v1476_v31 = vpop.f32.mrf.mxu0 }
 0x184   : > { %v1477_v24 = vadd.f32 %v1476_v31, %v4600_v13  ;;  %3573 = vmatprep.mubr.msk.f32.mxu1 %vm1701_vm3, %v1624_v26  ;;  %v1625_v43 = vmax.f32 %v1475_v23, 0.0 }
 0x185   : > { %v1480_v28 = vpop.f32.mrf.mxu0  ;;  %1908 = vmatmul.mubr.f32.gmra.mxu1 %v1623_v9 }
 0x186   : > { %v1626_v34 = vmax.f32 %v1477_v24, 0.0  ;;  %v1481_v30 = vadd.f32 %v1480_v28, %v4597_v17 }
 0x187   : > { %v1482_v33 = vpop.f32.mrf.mxu0 }
 0x188   : > { %v1483_v38 = vadd.f32 %v1482_v33, %v4600_v13  ;;  %3574 = vmatprep.mubr.msk.f32.mxu1 %vm1701_vm3, %v1626_v34  ;;  %v1627_v42 = vmax.f32 %v1481_v30, 0.0 }
 0x189   : > { %v1486_v37 = vpop.f32.mrf.mxu0  ;;  %1913 = vmatmul.mubr.f32.gmra.mxu1 %v1625_v43 }
 0x18a   : > { %v1628_v39 = vmax.f32 %v1483_v38, 0.0  ;;  %v1487_v40 = vadd.f32 %v1486_v37, %v4597_v17 }
 0x18b   : > { %v1488_v50 = vpop.f32.mrf.mxu0 }
 0x18c   : > { %v1489_v44 = vadd.f32 %v1488_v50, %v4600_v13  ;;  %3575 = vmatprep.mubr.msk.f32.mxu1 %vm1701_vm3, %v1628_v39  ;;  %v1629_v46 = vmax.f32 %v1487_v40, 0.0 }
 0x18d   : > { %v1492_v48 = vpop.f32.mrf.mxu0  ;;  %1918 = vmatmul.mubr.f32.gmra.mxu1 %v1627_v42 }
 0x18e   : > { %v1630_v41 = vmax.f32 %v1489_v44, 0.0  ;;  %v1493_v47 = vadd.f32 %v1492_v48, %v4597_v17 }
 0x18f   : > { %v1494_v53 = vpop.f32.mrf.mxu0 }
 0x190   : > { %v1495_v22 = vadd.f32 %v1494_v53, %v4600_v13  ;;  %3576 = vmatprep.mubr.msk.f32.mxu1 %vm1701_vm3, %v1630_v41  ;;  %v1631_v59 = vmax.f32 %v1493_v47, 0.0 }
 0x191   : > { %v1498_v51 = vpop.f32.mrf.mxu0  ;;  %1923 = vmatmul.mubr.f32.gmra.mxu1 %v1629_v46 }
 0x192   : > { %v1632_v49 = vmax.f32 %v1495_v22, 0.0  ;;  %v1499_v56 = vadd.f32 %v1498_v51, %v4597_v17 }
 0x193   : > { %v1500_v52 = vpop.f32.mrf.mxu0 }
 0x194   : > { %v1501_v27 = vadd.f32 %v1500_v52, %v4600_v13  ;;  %3577 = vmatprep.mubr.msk.f32.mxu1 %vm1701_vm3, %v1632_v49  ;;  %v1633_v54 = vmax.f32 %v1499_v56, 0.0 }
 0x195   : > { %v1504_v63 = vpop.f32.mrf.mxu0  ;;  %1928 = vmatmul.mubr.f32.gmra.mxu1 %v1631_v59 }
 0x196   : > { %v1634_v55 = vmax.f32 %v1501_v27, 0.0  ;;  %v1505_v57 = vadd.f32 %v1504_v63, %v4597_v17 }
 0x197   : > { %v1506_v5 = vpop.f32.mrf.mxu0 }
 0x198   : > { %v1507_v58 = vadd.f32 %v1506_v5, %v4600_v13  ;;  %3578 = vmatprep.mubr.msk.f32.mxu1 %vm1701_vm3, %v1634_v55  ;;  %v1635_v14 = vmax.f32 %v1505_v57, 0.0 }
 0x199   : > { %v1510_v4 = vpop.f32.mrf.mxu0  ;;  %1933 = vmatmul.mubr.f32.gmra.mxu1 %v1633_v54 }
 0x19a   : > { %v1636_v60 = vmax.f32 %v1507_v58, 0.0  ;;  %v1511_v29 = vadd.f32 %v1510_v4, %v4597_v17 }
 0x19b   : > { %v1512_v61 = vpop.f32.mrf.mxu0 }
 0x19c   : > { %v1513_v62 = vadd.f32 %v1512_v61, %v4600_v13  ;;  %3579 = vmatprep.mubr.msk.f32.mxu1 %vm1701_vm3, %v1636_v60  ;;  %v1637_v0 = vmax.f32 %v1511_v29, 0.0 }
 0x19d   : > { %v1516_v20 = vpop.f32.mrf.mxu0  ;;  %1938 = vmatmul.mubr.f32.gmra.mxu1 %v1635_v14 }
 0x19e   : > { %v1638_v2 = vmax.f32 %v1513_v62, 0.0  ;;  %v1517_v3 = vadd.f32 %v1516_v20, %v4597_v17 }
 0x19f   : > { %v1518_v15 = vpop.f32.mrf.mxu0 }
 0x1a0   : > { %v1519_v18 = vadd.f32 %v1518_v15, %v4600_v13  ;;  %3580 = vmatprep.mubr.msk.f32.mxu1 %vm1701_vm3, %v1638_v2  ;;  %v1639_v32 = vmax.f32 %v1517_v3, 0.0 }
 0x1a1   : > { %v1522_v35 = vpop.f32.mrf.mxu0  ;;  %1943 = vmatmul.mubr.f32.gmra.mxu1 %v1637_v0 }
 0x1a2   : > { %v1640_v10 = vmax.f32 %v1519_v18, 0.0  ;;  %v1523_v6 = vadd.f32 %v1522_v35, %v4597_v17 }
 0x1a3   : > { %v1524_v8 = vpop.f32.mrf.mxu0 }
 0x1a4   : > { %v1525_v45 = vadd.f32 %v1524_v8, %v4600_v13  ;;  %3581 = vmatprep.mubr.msk.f32.mxu1 %vm1701_vm3, %v1640_v10  ;;  %v1641_v16 = vmax.f32 %v1523_v6, 0.0 }
 0x1a5   : > { %v1528_v36 = vpop.f32.mrf.mxu0  ;;  %1948 = vmatmul.mubr.f32.gmra.mxu1 %v1639_v32 }
 0x1a6   : > { %v1642_v25 = vmax.f32 %v1525_v45, 0.0  ;;  %v1529_v19 = vadd.f32 %v1528_v36, %v4597_v17 }
 0x1a7   : > { %v1530_v26 = vpop.f32.mrf.mxu0 }
 0x1a8   : > { %v1531_v9 = vadd.f32 %v1530_v26, %v4600_v13  ;;  %3582 = vmatprep.mubr.msk.f32.mxu1 %vm1701_vm3, %v1642_v25  ;;  %v1643_v24 = vmax.f32 %v1529_v19, 0.0 }
 0x1a9   : > { %v1534_v23 = vpop.f32.mrf.mxu0  ;;  %1953 = vmatmul.mubr.f32.gmra.mxu1 %v1641_v16 }
 0x1aa   : > { %v1644_v31 = vmax.f32 %v1531_v9, 0.0  ;;  %v1535_v28 = vadd.f32 %v1534_v23, %v4597_v17 }
 0x1ab   : > { %v1536_v34 = vpop.f32.mrf.mxu0 }
 0x1ac   : > { %v1537_v43 = vadd.f32 %v1536_v34, %v4600_v13  ;;  %3583 = vmatprep.mubr.msk.f32.mxu1 %vm1701_vm3, %v1644_v31  ;;  %v1645_v38 = vmax.f32 %v1535_v28, 0.0 }
 0x1ad   : > { %v1540_v30 = vpop.f32.mrf.mxu0  ;;  %1958 = vmatmul.mubr.f32.gmra.mxu1 %v1643_v24 }
 0x1ae   : > { %v1646_v33 = vmax.f32 %v1537_v43, 0.0  ;;  %v1541_v37 = vadd.f32 %v1540_v30, %v4597_v17 }
 0x1af   : > { %v1542_v39 = vpop.f32.mrf.mxu0 }
 0x1b0   : > { %v1543_v42 = vadd.f32 %v1542_v39, %v4600_v13  ;;  %3584 = vmatprep.mubr.msk.f32.mxu1 %vm1701_vm3, %v1646_v33  ;;  %v1647_v44 = vmax.f32 %v1541_v37, 0.0 }
 0x1b1   : > { %v1546_v40 = vpop.f32.mrf.mxu0  ;;  %1963 = vmatmul.mubr.f32.gmra.mxu1 %v1645_v38 }
 0x1b2   : > { %v1648_v50 = vmax.f32 %v1543_v42, 0.0  ;;  %v1547_v48 = vadd.f32 %v1546_v40, %v4597_v17 }
 0x1b3   : > { %v1548_v41 = vpop.f32.mrf.mxu0 }
 0x1b4   : > { %v1549_v46 = vadd.f32 %v1548_v41, %v4600_v13  ;;  %3585 = vmatprep.mubr.msk.f32.mxu1 %vm1701_vm3, %v1648_v50  ;;  %v1649_v22 = vmax.f32 %v1547_v48, 0.0 }
 0x1b5   : > { %v1552_v47 = vpop.f32.mrf.mxu0  ;;  %1968 = vmatmul.mubr.f32.gmra.mxu1 %v1647_v44 }
 0x1b6   : > { %v1650_v53 = vmax.f32 %v1549_v46, 0.0  ;;  %v1553_v51 = vadd.f32 %v1552_v47, %v4597_v17  ;;  %v4701_v46 = vld [vmem:[%s5400_s7] ss:$0 sm:$0xff] }
 0x1b7   : > { %v1554_v49 = vpop.f32.mrf.mxu0 }
 0x1b8   : > { %v1555_v59 = vadd.f32 %v1554_v49, %v4600_v13  ;;  %3586 = vmatprep.mubr.msk.f32.mxu1 %vm1701_vm3, %v1650_v53  ;;  %v1651_v27 = vmax.f32 %v1553_v51, 0.0 }
 0x1b9   : > { %v1558_v56 = vpop.f32.mrf.mxu0  ;;  %1973 = vmatmul.mubr.f32.gmra.mxu1 %v1649_v22 }
 0x1ba   : > { %v1652_v52 = vmax.f32 %v1555_v59, 0.0  ;;  %v1559_v63 = vadd.f32 %v1558_v56, %v4597_v17 }
 0x1bb   : > { %v1560_v55 = vpop.f32.mrf.mxu0 }
 0x1bc   : > { %v1561_v54 = vadd.f32 %v1560_v55, %v4600_v13  ;;  %3587 = vmatprep.mubr.msk.f32.mxu1 %vm1701_vm3, %v1652_v52  ;;  %v1653_v58 = vmax.f32 %v1559_v63, 0.0 }
 0x1bd   : > { %v1564_v57 = vpop.f32.mrf.mxu0  ;;  %1978 = vmatmul.mubr.f32.gmra.mxu1 %v1651_v27 }
 0x1be   : > { %v1654_v5 = vmax.f32 %v1561_v54, 0.0  ;;  %v1565_v4 = vadd.f32 %v1564_v57, %v4597_v17 }
 0x1bf   : > { %v1566_v60 = vpop.f32.mrf.mxu0 }
 0x1c0   : > { %v1567_v14 = vadd.f32 %v1566_v60, %v4600_v13  ;;  %3588 = vmatprep.mubr.msk.f32.mxu1 %vm1701_vm3, %v1654_v5  ;;  %v1655_v62 = vmax.f32 %v1565_v4, 0.0 }
 0x1c1   : > { %v1570_v29 = vpop.f32.mrf.mxu0  ;;  %1983 = vmatmul.mubr.f32.gmra.mxu1 %v1653_v58 }
 0x1c2   : > { %v1656_v61 = vmax.f32 %v1567_v14, 0.0  ;;  %v1571_v20 = vadd.f32 %v1570_v29, %v4597_v17 }
 0x1c3   : > { %v1572_v2 = vpop.f32.mrf.mxu0 }
 0x1c4   : > { %v1573_v0 = vadd.f32 %v1572_v2, %v4600_v13  ;;  %3589 = vmatprep.mubr.msk.f32.mxu1 %vm1701_vm3, %v1656_v61  ;;  %v1657_v18 = vmax.f32 %v1571_v20, 0.0 }
 0x1c5   : > { %v1576_v3 = vpop.f32.mrf.mxu0  ;;  %1988 = vmatmul.mubr.f32.gmra.mxu1 %v1655_v62 }
 0x1c6   : > { %v1658_v15 = vmax.f32 %v1573_v0, 0.0  ;;  %v1577_v35 = vadd.f32 %v1576_v3, %v4597_v17 }
 0x1c7   : > { %v1578_v10 = vpop.f32.mrf.mxu0 }
 0x1c8   : > { %v1579_v32 = vadd.f32 %v1578_v10, %v4600_v13  ;;  %3590 = vmatprep.mubr.msk.f32.mxu1 %vm1701_vm3, %v1658_v15  ;;  %v1659_v45 = vmax.f32 %v1577_v35, 0.0 }
 0x1c9   : > { %v1582_v6 = vpop.f32.mrf.mxu0  ;;  %1993 = vmatmul.mubr.f32.gmra.mxu1 %v1657_v18 }
 0x1ca   : > { %v1660_v8 = vmax.f32 %v1579_v32, 0.0  ;;  %v1583_v36 = vadd.f32 %v1582_v6, %v4597_v17 }
 0x1cb   : > { %v1584_v25 = vpop.f32.mrf.mxu0 }
 0x1cc   : > { %v1585_v16 = vadd.f32 %v1584_v25, %v4600_v13  ;;  %3591 = vmatprep.mubr.msk.f32.mxu1 %vm1701_vm3, %v1660_v8  ;;  %v1661_v9 = vmax.f32 %v1583_v36, 0.0 }
 0x1cd   : > { %v1588_v19 = vpop.f32.mrf.mxu0  ;;  %1998 = vmatmul.mubr.f32.gmra.mxu1 %v1659_v45 }
 0x1ce   : > { %v1662_v26 = vmax.f32 %v1585_v16, 0.0  ;;  %v1589_v23 = vadd.f32 %v1588_v19, %v4597_v17 }
 0x1cf   : > { %v1590_v31 = vpop.f32.mrf.mxu0 }
 0x1d0   : > { %v1591_v24 = vadd.f32 %v1590_v31, %v4600_v13  ;;  %3592 = vmatprep.mubr.msk.f32.mxu1 %vm1701_vm3, %v1662_v26  ;;  %v1663_v43 = vmax.f32 %v1589_v23, 0.0 }
 0x1d1   : > { %v1594_v28 = vpop.f32.mrf.mxu0  ;;  %2003 = vmatmul.mubr.f32.gmra.mxu1 %v1661_v9 }
 0x1d2   : > { %v1664_v34 = vmax.f32 %v1591_v24, 0.0  ;;  %v1595_v30 = vadd.f32 %v1594_v28, %v4597_v17 }
 0x1d3   : > { %v1596_v33 = vpop.f32.mrf.mxu0 }
 0x1d4   : > { %v1597_v38 = vadd.f32 %v1596_v33, %v4600_v13  ;;  %3593 = vmatprep.mubr.msk.f32.mxu1 %vm1701_vm3, %v1664_v34  ;;  %v1665_v42 = vmax.f32 %v1595_v30, 0.0 }
 0x1d5   : > { %v1600_v37 = vpop.f32.mrf.mxu0  ;;  %2008 = vmatmul.mubr.f32.gmra.mxu1 %v1663_v43 }
 0x1d6   : > { %v1666_v39 = vmax.f32 %v1597_v38, 0.0  ;;  %v1601_v40 = vadd.f32 %v1600_v37, %v4597_v17 }
 0x1d7   : > { %v1602_v50 = vpop.f32.mrf.mxu0 }
 0x1d8   : > { %v1603_v44 = vadd.f32 %v1602_v50, %v4600_v13  ;;  %3594 = vmatprep.mubr.msk.f32.mxu1 %vm1701_vm3, %v1666_v39  ;;  %v1667_v41 = vmax.f32 %v1601_v40, 0.0  ;;  %v4707_v13 = vld [vmem:[%s5401_s8] ss:$0 sm:$0xff] }
 0x1d9   : > { %2013 = vmatmul.mubr.f32.gmra.mxu1 %v1665_v42 }
 0x1da   : > { %v1668_v48 = vmax.f32 %v1603_v44, 0.0 }
 0x1dc   : > { %3595 = vmatprep.mubr.msk.f32.mxu1 %vm1701_vm3, %v1668_v48  ;;  %vm3396_vm3 = vcmask 589312  }
 0x1dd   : > { %2018 = vmatmul.mubr.f32.gmra.mxu1 %v1667_v41 }
 0x221   : > { %v1864_v47 = vpop.f32.mrf.mxu0 }
 0x222   : > { %v1865_v53 = vadd.f32 %v4701_v46, %v1864_v47 }
 0x223   : > { %v1866_v17 = vpop.f32.mrf.mxu0 }
 0x224   : > { %v2023_v22 = vmax.f32 %v1865_v53, 0.0 }
 0x225   : > { %v1869_v51 = vpop.f32.mrf.mxu0 }
 0x226   : > { %v1870_v49 = vadd.f32 %v4701_v46, %v1869_v51  ;;  %v2062_v59 = vmul.f32 %v4707_v13, %v2023_v22 }
 0x227   : > { %v1871_v56 = vpop.f32.mrf.mxu0 }
 0x228   : > { %v2024_v52 = vmax.f32 %v1870_v49, 0.0  ;;  %v2095_v27 = vsel %vm2094_vm4, %v2062_v59, 0.0 }
 0x229   : > { %v1874_v63 = vpop.f32.mrf.mxu0  ;;  %2096 = vadd.xlane.f32.xlu0 %v2095_v27 }
 0x22a   : > { %v1875_v55 = vadd.f32 %v4701_v46, %v1874_v63  ;;  %v2063_v54 = vmul.f32 %v4707_v13, %v2024_v52 }
 0x22b   : > { %v1876_v57 = vpop.f32.mrf.mxu0 }
 0x22c   : > { %v2025_v5 = vmax.f32 %v1875_v55, 0.0  ;;  %v2098_v58 = vsel %vm2094_vm4, %v2063_v54, 0.0 }
 0x22d   : > { %v1879_v4 = vpop.f32.mrf.mxu1  ;;  %2099 = vadd.xlane.f32.xlu1 %v2098_v58 }
 0x22e   : > { %v1880_v60 = vadd.f32 %v4701_v46, %v1879_v4  ;;  %v2064_v14 = vmul.f32 %v4707_v13, %v2025_v5 }
 0x22f   : > { %v1881_v29 = vpop.f32.mrf.mxu1 }
 0x230   : > { %v2026_v61 = vmax.f32 %v1880_v60, 0.0  ;;  %v2101_v62 = vsel %vm2094_vm4, %v2064_v14, 0.0 }
 0x231   : > { %v1884_v20 = vpop.f32.mrf.mxu1  ;;  %2102 = vadd.xlane.f32.xlu1 %v2101_v62 }
 0x232   : > { %v1885_v2 = vadd.f32 %v4701_v46, %v1884_v20  ;;  %v2065_v0 = vmul.f32 %v4707_v13, %v2026_v61 }
 0x233   : > { %v1886_v3 = vpop.f32.mrf.mxu1 }
 0x234   : > { %v2027_v15 = vmax.f32 %v1885_v2, 0.0  ;;  %v2104_v18 = vsel %vm2094_vm4, %v2065_v0, 0.0 }
 0x235   : > { %v1889_v35 = vpop.f32.mrf.mxu1  ;;  %2105 = vadd.xlane.f32.xlu1 %v2104_v18 }
 0x236   : > { %v1890_v10 = vadd.f32 %v4701_v46, %v1889_v35  ;;  %v2066_v32 = vmul.f32 %v4707_v13, %v2027_v15 }
 0x237   : > { %v1891_v6 = vpop.f32.mrf.mxu1 }
 0x238   : > { %v2028_v8 = vmax.f32 %v1890_v10, 0.0  ;;  %v2107_v45 = vsel %vm2094_vm4, %v2066_v32, 0.0 }
 0x239   : > { %v1894_v36 = vpop.f32.mrf.mxu1  ;;  %2108 = vadd.xlane.f32.xlu1 %v2107_v45 }
 0x23a   : > { %v1895_v25 = vadd.f32 %v4701_v46, %v1894_v36  ;;  %v2067_v16 = vmul.f32 %v4707_v13, %v2028_v8 }
 0x23b   : > { %v1896_v19 = vpop.f32.mrf.mxu1 }
 0x23c   : > { %v2029_v26 = vmax.f32 %v1895_v25, 0.0  ;;  %v2110_v9 = vsel %vm2094_vm4, %v2067_v16, 0.0 }
 0x23d   : > { %v1899_v23 = vpop.f32.mrf.mxu1  ;;  %2111 = vadd.xlane.f32.xlu1 %v2110_v9 }
 0x23e   : > { %v1900_v31 = vadd.f32 %v4701_v46, %v1899_v23  ;;  %v2068_v24 = vmul.f32 %v4707_v13, %v2029_v26 }
 0x23f   : > { %v1901_v28 = vpop.f32.mrf.mxu1 }
 0x240   : > { %v2030_v34 = vmax.f32 %v1900_v31, 0.0  ;;  %v2113_v43 = vsel %vm2094_vm4, %v2068_v24, 0.0 }
 0x241   : > { %v1904_v30 = vpop.f32.mrf.mxu1  ;;  %2114 = vadd.xlane.f32.xlu1 %v2113_v43 }
 0x242   : > { %v1905_v33 = vadd.f32 %v4701_v46, %v1904_v30  ;;  %v2069_v38 = vmul.f32 %v4707_v13, %v2030_v34 }
 0x243   : > { %v1906_v37 = vpop.f32.mrf.mxu1 }
 0x244   : > { %v2031_v39 = vmax.f32 %v1905_v33, 0.0  ;;  %v2116_v42 = vsel %vm2094_vm4, %v2069_v38, 0.0 }
 0x245   : > { %v1909_v40 = vpop.f32.mrf.mxu1  ;;  %2117 = vadd.xlane.f32.xlu1 %v2116_v42 }
 0x246   : > { %v1910_v50 = vadd.f32 %v4701_v46, %v1909_v40  ;;  %v2070_v44 = vmul.f32 %v4707_v13, %v2031_v39 }
 0x247   : > { %v1911_v48 = vpop.f32.mrf.mxu1 }
 0x248   : > { %v2032_v41 = vmax.f32 %v1910_v50, 0.0  ;;  %v2119_v47 = vsel %vm2094_vm4, %v2070_v44, 0.0 }
 0x249   : > { %v1914_v53 = vpop.f32.mrf.mxu1  ;;  %2120 = vadd.xlane.f32.xlu0 %v2119_v47 }
 0x24a   : > { %v1915_v17 = vadd.f32 %v4701_v46, %v1914_v53  ;;  %v2071_v22 = vmul.f32 %v4707_v13, %v2032_v41 }
 0x24b   : > { %v1916_v51 = vpop.f32.mrf.mxu1 }
 0x24c   : > { %v2033_v49 = vmax.f32 %v1915_v17, 0.0  ;;  %v2122_v59 = vsel %vm2094_vm4, %v2071_v22, 0.0 }
 0x24d   : > { %v1919_v56 = vpop.f32.mrf.mxu1  ;;  %2123 = vadd.xlane.f32.xlu0 %v2122_v59 }
 0x24e   : > { %v1920_v52 = vadd.f32 %v4701_v46, %v1919_v56  ;;  %v2072_v27 = vmul.f32 %v4707_v13, %v2033_v49 }
 0x24f   : > { %v1921_v63 = vpop.f32.mrf.mxu1 }
 0x250   : > { %v2034_v55 = vmax.f32 %v1920_v52, 0.0  ;;  %v2125_v54 = vsel %vm2094_vm4, %v2072_v27, 0.0 }
 0x251   : > { %v1924_v57 = vpop.f32.mrf.mxu1  ;;  %2126 = vadd.xlane.f32.xlu0 %v2125_v54 }
 0x252   : > { %v1925_v5 = vadd.f32 %v4701_v46, %v1924_v57  ;;  %v2073_v58 = vmul.f32 %v4707_v13, %v2034_v55 }
 0x253   : > { %v1926_v4 = vpop.f32.mrf.mxu1 }
 0x254   : > { %v2035_v60 = vmax.f32 %v1925_v5, 0.0  ;;  %v2128_v14 = vsel %vm2094_vm4, %v2073_v58, 0.0 }
 0x255   : > { %v1929_v29 = vpop.f32.mrf.mxu1  ;;  %2129 = vadd.xlane.f32.xlu0 %v2128_v14 }
 0x256   : > { %v1930_v61 = vadd.f32 %v4701_v46, %v1929_v29  ;;  %v2074_v62 = vmul.f32 %v4707_v13, %v2035_v60 }
 0x257   : > { %v1931_v20 = vpop.f32.mrf.mxu1 }
 0x258   : > { %v2036_v2 = vmax.f32 %v1930_v61, 0.0  ;;  %v2131_v0 = vsel %vm2094_vm4, %v2074_v62, 0.0 }
 0x259   : > { %v1934_v3 = vpop.f32.mrf.mxu1  ;;  %2132 = vadd.xlane.f32.xlu0 %v2131_v0 }
 0x25a   : > { %v1935_v15 = vadd.f32 %v4701_v46, %v1934_v3  ;;  %v2075_v18 = vmul.f32 %v4707_v13, %v2036_v2 }
 0x25b   : > { %v1936_v35 = vpop.f32.mrf.mxu1 }
 0x25c   : > { %v2037_v10 = vmax.f32 %v1935_v15, 0.0  ;;  %v2134_v32 = vsel %vm2094_vm4, %v2075_v18, 0.0 }
 0x25d   : > { %v1939_v6 = vpop.f32.mrf.mxu1  ;;  %2135 = vadd.xlane.f32.xlu0 %v2134_v32 }
 0x25e   : > { %v1940_v8 = vadd.f32 %v4701_v46, %v1939_v6  ;;  %v2076_v45 = vmul.f32 %v4707_v13, %v2037_v10 }
 0x25f   : > { %v1941_v36 = vpop.f32.mrf.mxu1 }
 0x260   : > { %v2038_v25 = vmax.f32 %v1940_v8, 0.0  ;;  %v2137_v16 = vsel %vm2094_vm4, %v2076_v45, 0.0 }
 0x261   : > { %v1944_v19 = vpop.f32.mrf.mxu1  ;;  %2138 = vadd.xlane.f32.xlu0 %v2137_v16 }
 0x262   : > { %v1945_v26 = vadd.f32 %v4701_v46, %v1944_v19  ;;  %v2077_v9 = vmul.f32 %v4707_v13, %v2038_v25 }
 0x263   : > { %v1946_v23 = vpop.f32.mrf.mxu1 }
 0x264   : > { %v2039_v31 = vmax.f32 %v1945_v26, 0.0  ;;  %v2140_v24 = vsel %vm2094_vm4, %v2077_v9, 0.0 }
 0x265   : > { %v1949_v28 = vpop.f32.mrf.mxu1  ;;  %2141 = vadd.xlane.f32.xlu0 %v2140_v24 }
 0x266   : > { %v1950_v34 = vadd.f32 %v4701_v46, %v1949_v28  ;;  %v2078_v43 = vmul.f32 %v4707_v13, %v2039_v31 }
 0x267   : > { %v1951_v30 = vpop.f32.mrf.mxu1 }
 0x268   : > { %v2040_v33 = vmax.f32 %v1950_v34, 0.0  ;;  %v2143_v38 = vsel %vm2094_vm4, %v2078_v43, 0.0 }
 0x269   : > { %v1954_v37 = vpop.f32.mrf.mxu1  ;;  %2144 = vadd.xlane.f32.xlu1 %v2143_v38 }
 0x26a   : > { %v1955_v39 = vadd.f32 %v4701_v46, %v1954_v37  ;;  %v2079_v42 = vmul.f32 %v4707_v13, %v2040_v33 }
 0x26b   : > { %v1956_v40 = vpop.f32.mrf.mxu1 }
 0x26c   : > { %v2041_v50 = vmax.f32 %v1955_v39, 0.0  ;;  %v2146_v44 = vsel %vm2094_vm4, %v2079_v42, 0.0 }
 0x26d   : > { %v1959_v48 = vpop.f32.mrf.mxu1  ;;  %2147 = vadd.xlane.f32.xlu0 %v2146_v44 }
 0x26e   : > { %v1960_v41 = vadd.f32 %v4701_v46, %v1959_v48  ;;  %v2080_v47 = vmul.f32 %v4707_v13, %v2041_v50 }
 0x26f   : > { %v1961_v53 = vpop.f32.mrf.mxu1 }
 0x270   : > { %v2042_v17 = vmax.f32 %v1960_v41, 0.0  ;;  %v2149_v22 = vsel %vm2094_vm4, %v2080_v47, 0.0 }
 0x271   : > { %v1964_v51 = vpop.f32.mrf.mxu1  ;;  %2150 = vadd.xlane.f32.xlu1 %v2149_v22 }
 0x272   : > { %v1965_v49 = vadd.f32 %v4701_v46, %v1964_v51  ;;  %v2081_v59 = vmul.f32 %v4707_v13, %v2042_v17 }
 0x273   : > { %v1966_v56 = vpop.f32.mrf.mxu1 }
 0x274   : > { %v2043_v52 = vmax.f32 %v1965_v49, 0.0  ;;  %v2152_v27 = vsel %vm2094_vm4, %v2081_v59, 0.0  ;;  %v498_v49 = vld [vmem:[%s4798_s21 + $0x8] sm:$0xff] }
 0x275   : > { %v1969_v63 = vpop.f32.mrf.mxu1  ;;  %2153 = vadd.xlane.f32.xlu1 %v2152_v27 }
 0x276   : > { %v1970_v55 = vadd.f32 %v4701_v46, %v1969_v63  ;;  %v2082_v54 = vmul.f32 %v4707_v13, %v2043_v52 }
 0x277   : > { %v1971_v57 = vpop.f32.mrf.mxu1 }
 0x278   : > { %v2044_v5 = vmax.f32 %v1970_v55, 0.0  ;;  %v2155_v58 = vsel %vm2094_vm4, %v2082_v54, 0.0  ;;  %v499_v54 = vld [vmem:[%s4798_s21 + $0x10] sm:$0xff] }
 0x279   : > { %v1974_v4 = vpop.f32.mrf.mxu1  ;;  %2156 = vadd.xlane.f32.xlu1 %v2155_v58 }
 0x27a   : > { %v1975_v60 = vadd.f32 %v4701_v46, %v1974_v4  ;;  %v2083_v14 = vmul.f32 %v4707_v13, %v2044_v5 }
 0x27b   : > { %v1976_v29 = vpop.f32.mrf.mxu1 }
 0x27c   : > { %v2045_v61 = vmax.f32 %v1975_v60, 0.0  ;;  %v2158_v62 = vsel %vm2094_vm4, %v2083_v14, 0.0  ;;  %v500_v29 = vld [vmem:[%s4798_s21 + $0x18] sm:$0xff] }
 0x27d   : > { %v1979_v20 = vpop.f32.mrf.mxu1  ;;  %2159 = vadd.xlane.f32.xlu1 %v2158_v62 }
 0x27e   : > { %v1980_v2 = vadd.f32 %v4701_v46, %v1979_v20  ;;  %v2084_v0 = vmul.f32 %v4707_v13, %v2045_v61 }
 0x27f   : > { %v1981_v3 = vpop.f32.mrf.mxu1 }
 0x280   : > { %v2046_v15 = vmax.f32 %v1980_v2, 0.0  ;;  %v2161_v18 = vsel %vm2094_vm4, %v2084_v0, 0.0  ;;  %v4814_v0 = vpop.permute.xlu1 %2198 }
 0x281   : > { %v1984_v35 = vpop.f32.mrf.mxu1  ;;  %2162 = vadd.xlane.f32.xlu1 %v2161_v18 }
 0x282   : > { %v1985_v10 = vadd.f32 %v4701_v46, %v1984_v35  ;;  %v2085_v32 = vmul.f32 %v4707_v13, %v2046_v15 }
 0x283   : > { %v1986_v6 = vpop.f32.mrf.mxu1 }
 0x284   : > { %v2047_v8 = vmax.f32 %v1985_v10, 0.0  ;;  %v2164_v45 = vsel %vm2094_vm4, %v2085_v32, 0.0  ;;  %v497_v32 = vld [vmem:[%s4798_s21] sm:$0xff] }
 0x285   : > { %v1989_v36 = vpop.f32.mrf.mxu1  ;;  %2165 = vadd.xlane.f32.xlu1 %v2164_v45 }
 0x286   : > { %v1990_v25 = vadd.f32 %v4701_v46, %v1989_v36  ;;  %v2086_v16 = vmul.f32 %v4707_v13, %v2047_v8 }
 0x287   : > { %v1991_v19 = vpop.f32.mrf.mxu1 }
 0x288   : > { %v2048_v26 = vmax.f32 %v1990_v25, 0.0  ;;  %v2167_v9 = vsel %vm2094_vm4, %v2086_v16, 0.0 }
 0x289   : > { %v1994_v23 = vpop.f32.mrf.mxu1  ;;  %2168 = vadd.xlane.f32.xlu1 %v2167_v9 }
 0x28a   : > { %v1995_v31 = vadd.f32 %v4701_v46, %v1994_v23  ;;  %v2087_v24 = vmul.f32 %v4707_v13, %v2048_v26 }
 0x28b   : > { %v1996_v28 = vpop.f32.mrf.mxu1 }
 0x28c   : > { %v2049_v34 = vmax.f32 %v1995_v31, 0.0  ;;  %v2170_v43 = vsel %vm2094_vm4, %v2087_v24, 0.0 }
 0x28d   : > { %v1999_v30 = vpop.f32.mrf.mxu1  ;;  %2171 = vadd.xlane.f32.xlu0 %v2170_v43 }
 0x28e   : > { %v2000_v33 = vadd.f32 %v4701_v46, %v1999_v30  ;;  %v2088_v38 = vmul.f32 %v4707_v13, %v2049_v34 }
 0x28f   : > { %v2001_v37 = vpop.f32.mrf.mxu1 }
 0x290   : > { %v2050_v39 = vmax.f32 %v2000_v33, 0.0  ;;  %v2173_v42 = vsel %vm2094_vm4, %v2088_v38, 0.0 }
 0x291   : > { %v2004_v40 = vpop.f32.mrf.mxu1  ;;  %2174 = vadd.xlane.f32.xlu0 %v2173_v42 }
 0x292   : > { %v2005_v50 = vadd.f32 %v4701_v46, %v2004_v40  ;;  %v2089_v44 = vmul.f32 %v4707_v13, %v2050_v39 }
 0x293   : > { %v2006_v48 = vpop.f32.mrf.mxu1 }
 0x294   : > { %v2051_v41 = vmax.f32 %v2005_v50, 0.0  ;;  %v2176_v47 = vsel %vm2094_vm4, %v2089_v44, 0.0 }
 0x295   : > { %v2009_v53 = vpop.f32.mrf.mxu1  ;;  %2177 = vadd.xlane.f32.xlu0 %v2176_v47 }
 0x296   : > { %v2010_v17 = vadd.f32 %v4701_v46, %v2009_v53  ;;  %v2090_v22 = vmul.f32 %v4707_v13, %v2051_v41 }
 0x297   : > { %v2011_v51 = vpop.f32.mrf.mxu1 }
 0x298   : > { %v2052_v59 = vmax.f32 %v2010_v17, 0.0  ;;  %v2179_v56 = vsel %vm2094_vm4, %v2090_v22, 0.0 }
 0x299   : > { %v2014_v52 = vpop.f32.mrf.mxu1  ;;  %2180 = vadd.xlane.f32.xlu0 %v2179_v56 }
 0x29a   : > { %v2015_v27 = vadd.f32 %v4701_v46, %v2014_v52  ;;  %2239 = vperm.xlu1 %3700, %v498_v49   ;;  %v2091_v63 = vmul.f32 %v4707_v13, %v2052_v59 }
 0x29b   : > { %v2016_v55 = vpop.f32.mrf.mxu1 }
 0x29c   : > { %v2053_v57 = vmax.f32 %v2015_v27, 0.0  ;;  %v2182_v5 = vsel %vm2094_vm4, %v2091_v63, 0.0 }
 0x29d   : > { %2183 = vadd.xlane.f32.xlu0 %v2182_v5  ;;  %v2019_v58 = vpop.f32.mrf.mxu1 }
 0x29e   : > { %v2020_v4 = vadd.f32 %v4701_v46, %v2019_v58  ;;  %2242 = vperm.xlu1 %3700, %v499_v54   ;;  %v2092_v60 = vmul.f32 %v4707_v13, %v2053_v57  ;;  %v4817_v46 = vand.u32 127, %v509_v1 }
 0x29f   : > { %v2021_v14 = vpop.f32.mrf.mxu1 }
 0x2a0   : > { %v2054_v61 = vmax.f32 %v2020_v4, 0.0  ;;  %v2185_v62 = vsel %vm2094_vm4, %v2092_v60, 0.0  ;;  %v4823_v10 = vsub.s32 %v4817_v46, %v3942_v7 }
 0x2a1   : > { %2186 = vadd.xlane.f32.xlu0 %v2185_v62 }
 0x2a2   : > { %2245 = vperm.xlu1 %3700, %v500_v29   ;;  %v2093_v20 = vmul.f32 %v4707_v13, %v2054_v61 }
 0x2a4   : > { %v2188_v2 = vsel %vm2094_vm4, %v2093_v20, 0.0  ;;  %vm3401_vm4 = vcmask 1048128  }
 0x2a5   : > { %2189 = vadd.xlane.f32.xlu0 %v2188_v2 }
 0x2b2   : > { %v2097_v3 = vpop.xlane.xlu0 %2096 }
 0x2b3   : > { %v2201_v35 = vadd.f32 %v4814_v0, %v2097_v3 }
 0x2b5   : > { %v2286_v1 = vrot.slane %v2201_v35, %v4823_v10 }
 0x2b6   : > { %v2100_v15 = vpop.xlane.xlu1 %2099 }
 0x2b7   : > { %v2202_v18 = vadd.f32 %v4814_v0, %v2100_v15 }
 0x2b9   : > { %v2290_v13 = vrot.slane %v2202_v18, %v4823_v10 }
 0x2ba   : > { %v2103_v6 = vpop.xlane.xlu1 %2102 }
 0x2bb   : > { %v2203_v8 = vadd.f32 %v4814_v0, %v2103_v6  ;;  %2236 = vperm.xlu0 %3701, %v497_v32   ;;  %v2412_v36 = vsel %vm2411_vm5, %v2290_v13, %v2286_v1 }
 0x2bd   : > { %v2294_v45 = vrot.slane %v2203_v8, %v4823_v10 }
 0x2be   : > { %v2106_v25 = vpop.xlane.xlu1 %2105 }
 0x2bf   : > { %v2414_v16 = vsel %vm2413_vm6, %v2294_v45, %v2412_v36  ;;  %v2204_v19 = vadd.f32 %v4814_v0, %v2106_v25 }
 0x2c1   : > { %v2298_v26 = vrot.slane %v2204_v19, %v4823_v10 }
 0x2c2   : > { %v2109_v9 = vpop.xlane.xlu1 %2108 }
 0x2c3   : > { %v2416_v23 = vsel %vm2415_vm7, %v2298_v26, %v2414_v16  ;;  %v2205_v31 = vadd.f32 %v4814_v0, %v2109_v9 }
 0x2c5   : > { %v2302_v24 = vrot.slane %v2205_v31, %v4823_v10 }
 0x2c6   : > { %v2112_v28 = vpop.xlane.xlu1 %2111 }
 0x2c7   : > { %v2418_v34 = vsel %vm2417_vm8, %v2302_v24, %v2416_v23  ;;  %v2206_v43 = vadd.f32 %v4814_v0, %v2112_v28 }
 0x2c9   : > { %v2306_v30 = vrot.slane %v2206_v43, %v4823_v10 }
 0x2ca   : > { %v2115_v33 = vpop.xlane.xlu1 %2114 }
 0x2cb   : > { %v2207_v38 = vadd.f32 %v4814_v0, %v2115_v33  ;;  %v2420_v37 = vsel %vm2419_vm9, %v2306_v30, %v2418_v34 }
 0x2cd   : > { %v2310_v39 = vrot.slane %v2207_v38, %v4823_v10 }
 0x2ce   : > { %v2118_v42 = vpop.xlane.xlu1 %2117 }
 0x2cf   : > { %v2208_v40 = vadd.f32 %v4814_v0, %v2118_v42  ;;  %v2422_v50 = vsel %vm2421_vm10, %v2310_v39, %v2420_v37 }
 0x2d1   : > { %v2314_v44 = vrot.slane %v2208_v40, %v4823_v10 }
 0x2d2   : > { %v2121_v41 = vpop.xlane.xlu0 %2120 }
 0x2d3   : > { %v4847_v48 = vsel %vm2423_vm11, %v2314_v44, %v2422_v50  ;;  %v2209_v5 = vadd.f32 %v4814_v0, %v2121_v41 }
 0x2d5   : > { %v2318_v2 = vrot.slane %v2209_v5, %v4823_v10 }
 0x2d6   : > { %v2124_v47 = vpop.xlane.xlu0 %2123 }
 0x2d7   : > { %v2210_v55 = vadd.f32 %v4814_v0, %v2124_v47 }
 0x2d9   : > { %v2322_v14 = vrot.slane %v2210_v55, %v4823_v10 }
 0x2da   : > { %v2127_v53 = vpop.xlane.xlu0 %2126 }
 0x2db   : > { %v2211_v54 = vadd.f32 %v4814_v0, %v2127_v53  ;;  %v2425_v35 = vsel %vm2411_vm5, %v2322_v14, %v2318_v2 }
 0x2dd   : > { %v2326_v61 = vrot.slane %v2211_v54, %v4823_v10 }
 0x2de   : > { %v2130_v17 = vpop.xlane.xlu0 %2129 }
 0x2df   : > { %v2212_v58 = vadd.f32 %v4814_v0, %v2130_v17  ;;  %v2426_v13 = vsel %vm2413_vm6, %v2326_v61, %v2425_v35 }
 0x2e1   : > { %v2330_v3 = vrot.slane %v2212_v58, %v4823_v10 }
 0x2e2   : > { %v2133_v51 = vpop.xlane.xlu0 %2132 }
 0x2e3   : > { %v2213_v4 = vadd.f32 %v4814_v0, %v2133_v51  ;;  %v2427_v45 = vsel %vm2415_vm7, %v2330_v3, %v2426_v13 }
 0x2e5   : > { %v2334_v18 = vrot.slane %v2213_v4, %v4823_v10 }
 0x2e6   : > { %v2136_v56 = vpop.xlane.xlu0 %2135 }
 0x2e7   : > { %v2214_v29 = vadd.f32 %v4814_v0, %v2136_v56  ;;  %v2428_v25 = vsel %vm2417_vm8, %v2334_v18, %v2427_v45 }
 0x2e9   : > { %v2338_v32 = vrot.slane %v2214_v29, %v4823_v10 }
 0x2ea   : > { %v2139_v27 = vpop.xlane.xlu0 %2138 }
 0x2eb   : > { %v2215_v62 = vadd.f32 %v4814_v0, %v2139_v27  ;;  %v2429_v16 = vsel %vm2419_vm9, %v2338_v32, %v2428_v25 }
 0x2ed   : > { %v2342_v6 = vrot.slane %v2215_v62, %v4823_v10 }
 0x2ee   : > { %v2142_v60 = vpop.xlane.xlu0 %2141 }
 0x2ef   : > { %v2216_v15 = vadd.f32 %v4814_v0, %v2142_v60  ;;  %v2430_v26 = vsel %vm2421_vm10, %v2342_v6, %v2429_v16 }
 0x2f1   : > { %v2346_v36 = vrot.slane %v2216_v15, %v4823_v10 }
 0x2f2   : > { %v2145_v22 = vpop.xlane.xlu1 %2144 }
 0x2f3   : > { %v2431_v23 = vsel %vm2423_vm11, %v2346_v36, %v2430_v26  ;;  %v2217_v39 = vadd.f32 %v4814_v0, %v2145_v22 }
 0x2f5   : > { %v2350_v22 = vrot.slane %v2217_v39, %v4823_v10 }
 0x2f6   : > { %v2148_v8 = vpop.xlane.xlu0 %2147 }
 0x2f7   : > { %v2218_v33 = vadd.f32 %v4814_v0, %v2148_v8 }
 0x2f9   : > { %v2354_v44 = vrot.slane %v2218_v33, %v4823_v10 }
 0x2fa   : > { %v2151_v49 = vpop.xlane.xlu1 %2150 }
 0x2fb   : > { %v2219_v37 = vadd.f32 %v4814_v0, %v2151_v49  ;;  %v2432_v5 = vsel %vm2411_vm5, %v2354_v44, %v2350_v22 }
 0x2fd   : > { %v2358_v53 = vrot.slane %v2219_v37, %v4823_v10 }
 0x2fe   : > { %v2154_v59 = vpop.xlane.xlu1 %2153 }
 0x2ff   : > { %v2220_v42 = vadd.f32 %v4814_v0, %v2154_v59 }
 0x301   : > { %v2362_v49 = vrot.slane %v2220_v42, %v4823_v10 }
 0x302   : > { %v2157_v52 = vpop.xlane.xlu1 %2156 }
 0x303   : > { %v2221_v40 = vadd.f32 %v4814_v0, %v2157_v52 }
 0x305   : > { %v2366_v27 = vrot.slane %v2221_v40, %v4823_v10 }
 0x306   : > { %v2160_v63 = vpop.xlane.xlu1 %2159 }
 0x307   : > { %v2222_v41 = vadd.f32 %v4814_v0, %v2160_v63 }
 0x309   : > { %v2370_v58 = vrot.slane %v2222_v41, %v4823_v10 }
 0x30a   : > { %v2163_v57 = vpop.xlane.xlu1 %2162 }
 0x30b   : > { %v2223_v59 = vadd.f32 %v4814_v0, %v2163_v57  ;;  %v2433_v57 = vsel %vm2413_vm6, %v2358_v53, %v2432_v5 }
 0x30c   : > { %v2434_v62 = vsel %vm2415_vm7, %v2362_v49, %v2433_v57 }
 0x30d   : > { %v2435_v15 = vsel %vm2417_vm8, %v2366_v27, %v2434_v62 }
 0x30e   : > { %v2166_v20 = vpop.xlane.xlu1 %2165  ;;  %v2436_v6 = vsel %vm2419_vm9, %v2370_v58, %v2435_v15 }
 0x30f   : > { %v2224_v63 = vadd.f32 %v4814_v0, %v2166_v20  ;;  %v2374_v20 = vrot.slane %v2223_v59, %v4823_v10 }
 0x311   : > { %v2378_v18 = vrot.slane %v2224_v63, %v4823_v10  ;;  %v2437_v36 = vsel %vm2421_vm10, %v2374_v20, %v2436_v6  ;;  %v2543_v6 = vsub.s32 6, %v3942_v7 }
 0x312   : > { %v2169_v1 = vpop.xlane.xlu1 %2168 }
 0x313   : > { %v2225_v17 = vadd.f32 %v4814_v0, %v2169_v1 }
 0x315   : > { %v2382_v14 = vrot.slane %v2225_v17, %v4823_v10 }
 0x316   : > { %v2172_v19 = vpop.xlane.xlu0 %2171  ;;  %v2240_v9 = vpop.permute.xlu1 %2239 }
 0x317   : > { %vm2248_vm13 = vcmp.lt.s32.totalorder %v4817_v46, %v2240_v9  ;;  %v2226_v50 = vadd.f32 %v4814_v0, %v2172_v19  ;;  %v2438_v19 = vsel %vm2423_vm11, %v2378_v18, %v2437_v36  ;;  %v2536_v18 = vsub.s32 5, %v3942_v7 }
 0x318   : > { %v4873_v31 = vsel %vm2248_vm13, %v2431_v23, -1024.0 }
 0x319   : > { %v2458_v24 = vsel %vm2454_vm12, %v4873_v31, -inf  ;;  %v2386_v55 = vrot.slane %v2226_v50, %v4823_v10 }
 0x31a   : > { %v2175_v28 = vpop.xlane.xlu0 %2174  ;;  %2459 = vmax.xlane.f32.xlu0 %v2458_v24  ;;  %v2243_v2 = vpop.permute.xlu1 %2242 }
 0x31b   : > { %v2227_v47 = vadd.f32 %v4814_v0, %v2175_v28  ;;  %v2439_v35 = vsel %vm2411_vm5, %v2386_v55, %v2382_v14  ;;  %vm2249_vm14 = vcmp.lt.s32.totalorder %v4817_v46, %v2243_v2  ;;  %v2529_v2 = vsub.s32 4, %v3942_v7 }
 0x31c   : > { %v4928_v23 = vsel %vm2249_vm14, %v2438_v19, -1024.0 }
 0x31d   : > { %v2390_v4 = vrot.slane %v2227_v47, %v4823_v10 }
 0x31e   : > { %v2178_v34 = vpop.xlane.xlu0 %2177  ;;  %v2246_v24 = vpop.permute.xlu1 %2245 }
 0x31f   : > { %v2228_v51 = vadd.f32 %v4814_v0, %v2178_v34  ;;  %v2440_v13 = vsel %vm2413_vm6, %v2390_v4, %v2439_v35  ;;  %vm2250_vm1 = vcmp.lt.s32.totalorder %v4817_v46, %v2246_v24  ;;  %v2515_v4 = vsub.s32 2, %v3942_v7 }
 0x321   : > { %v2394_v29 = vrot.slane %v2228_v51, %v4823_v10 }
 0x322   : > { %v2181_v43 = vpop.xlane.xlu0 %2180 }
 0x323   : > { %v2229_v56 = vadd.f32 %v4814_v0, %v2181_v43  ;;  %v2441_v1 = vsel %vm2415_vm7, %v2394_v29, %v2440_v13  ;;  %v2522_v29 = vsub.s32 3, %v3942_v7 }
 0x325   : > { %v2398_v3 = vrot.slane %v2229_v56, %v4823_v10 }
 0x326   : > { %v2184_v30 = vpop.xlane.xlu0 %2183 }
 0x327   : > { %v2230_v54 = vadd.f32 %v4814_v0, %v2184_v30  ;;  %v2442_v25 = vsel %vm2417_vm8, %v2398_v3, %v2441_v1 }
 0x329   : > { %v2402_v32 = vrot.slane %v2230_v54, %v4823_v10 }
 0x32a   : > { %v2187_v38 = vpop.xlane.xlu0 %2186 }
 0x32b   : > { %v2231_v60 = vadd.f32 %v4814_v0, %v2187_v38  ;;  %v2443_v26 = vsel %vm2419_vm9, %v2402_v32, %v2442_v25 }
 0x32e   : > { %v2190_v52 = vpop.xlane.xlu0 %2189 }
 0x32f   : > { %v2232_v61 = vadd.f32 %v4814_v0, %v2190_v52  ;;  %v2406_v0 = vrot.slane %v2231_v60, %v4823_v10 }
 0x331   : > { %v2410_v45 = vrot.slane %v2232_v61, %v4823_v10  ;;  %v2444_v10 = vsel %vm2421_vm10, %v2406_v0, %v2443_v26 }
 0x333   : > { %v2445_v28 = vsel %vm2423_vm11, %v2410_v45, %v2444_v10  ;;  %v2550_v10 = vsub.s32 7, %v3942_v7 }
 0x334   : > { %v4935_v34 = vsel %vm2250_vm1, %v2445_v28, -1024.0 }
 0x335   : > { %v2464_v43 = vsel %vm2454_vm12, %v4935_v34, -inf }
 0x336   : > { %v2237_v8 = vpop.permute.xlu0 %2236 }
 0x337   : > { %vm2247_vm15 = vcmp.lt.s32.totalorder %v4817_v46, %v2237_v8 }
 0x338   : > { %v4922_v16 = vsel %vm2247_vm15, %v4847_v48, -1024.0  ;;  %v2461_v48 = vsel %vm2454_vm12, %v4928_v23, -inf }
 0x339   : > { %v2455_v9 = vsel %vm2454_vm12, %v4922_v16, -inf }
 0x33a   : > { %2456 = vmax.xlane.f32.xlu1 %v2455_v9 }
 0x33e   : > { %2462 = vmax.xlane.f32.xlu1 %v2461_v48 }
 0x342   : > { %2465 = vmax.xlane.f32.xlu1 %v2464_v43 }
 0x3a3   : > { %v2460_v30 = vpop.xlane.xlu0 %2459 }
 0x3a4   : > { %v2468_v33 = vsub.f32 %v4873_v31, %v2460_v30 }
 0x3a6   : > { %v2473_v39 = vmul.f32 1.442695, %v2468_v33 }
 0x3c3   : > { %v2457_v38 = vpop.xlane.xlu1 %2456 }
 0x3c4   : > { %v2467_v37 = vsub.f32 %v4922_v16, %v2457_v38 }
 0x3c6   : > { %v2471_v42 = vmul.f32 1.442695, %v2467_v37 }
 0x3c7   : > { %v2463_v40 = vpop.xlane.xlu1 %2462 }
 0x3c8   : > { %3706 = vpow2.f32 %v2471_v42  ;;  %v2469_v46 = vsub.f32 %v4928_v23, %v2463_v40 }
 0x3c9   : > { %3708 = vpow2.f32 %v2473_v39 }
 0x3ca   : > { %v2475_v50 = vmul.f32 1.442695, %v2469_v46 }
 0x3cb   : > { %v2466_v44 = vpop.xlane.xlu1 %2465 }
 0x3cc   : > { %3710 = vpow2.f32 %v2475_v50  ;;  %v2470_v41 = vsub.f32 %v4935_v34, %v2466_v44 }
 0x3ce   : > { %v2477_v47 = vmul.f32 1.442695, %v2470_v41 }
 0x3d0   : > { %3712 = vpow2.f32 %v2477_v47 }
 0x3d5   : > { %v3707_v53 = vpop.eup %3706 }
 0x3d6   : > { %v2479_v17 = vsel %vm2454_vm12, %v3707_v53, 0.0  ;;  %v3709_v51 = vpop.eup %3708 }
 0x3d7   : > { %2480 = vadd.xlane.f32.xlu1 %v2479_v17  ;;  %v2482_v49 = vsel %vm2454_vm12, %v3709_v51, 0.0 }
 0x3d9   : > { %v3711_v22 = vpop.eup %3710 }
 0x3da   : > { %v2485_v59 = vsel %vm2454_vm12, %v3711_v22, 0.0 }
 0x3db   : > { %2483 = vadd.xlane.f32.xlu1 %v2482_v49  ;;  %2486 = vadd.xlane.f32.xlu0 %v2485_v59  ;;  %v3723_v59 = vld [vmem:[%s3968_s13 + $0x8] sm:$0xff] }
 0x3dd   : > { %v3713_v56 = vpop.eup %3712 }
 0x3de   : > { %v2488_v52 = vsel %vm2454_vm12, %v3713_v56, 0.0 }
 0x3df   : > { %2489 = vadd.xlane.f32.xlu1 %v2488_v52  ;;  %v467_v52 = vld [vmem:[%s4980_s14 + $0x10] sm:$0xff] }
 0x460   : > { %v2481_v27 = vpop.xlane.xlu1 %2480 }
 0x461   : > { %3714 = vrcp.f32 %v2481_v27 }
 0x464   : > { %v2484_v63 = vpop.xlane.xlu1 %2483  ;;  %v2487_v61 = vpop.xlane.xlu0 %2486 }
 0x465   : > { %3716 = vrcp.f32 %v2484_v63 }
 0x466   : > { %3718 = vrcp.f32 %v2487_v61  ;;  %v3724_v61 = vld [vmem:[%s3968_s13 + $0x10] sm:$0xff] }
 0x468   : > { %v2490_v32 = vpop.xlane.xlu1 %2489 }
 0x469   : > { %3720 = vrcp.f32 %v2490_v32 }
 0x46e   : > { %v3715_v55 = vpop.eup %3714 }
 0x46f   : > { %v4947_v54 = vmul.f32 %v3715_v55, %v3707_v53  ;;  %v466_v53 = vld [vmem:[%s4980_s14 + $0x8] sm:$0xff] }
 0x471   : > { %v2509_v5 = vrot.slane %v4947_v54, %v4594_v11  ;;  %v2502_v58 = vrot.slane %v4947_v54, %v3994_v21  ;;  %v2516_v14 = vrot.slane %v4947_v54, %v2515_v4  ;;  %v2523_v20 = vrot.slane %v4947_v54, %v2522_v29 }
 0x472   : > { %v3717_v60 = vpop.eup %3716  ;;  %v2530_v15 = vrot.slane %v4947_v54, %v2529_v2  ;;  %v2537_v13 = vrot.slane %v4947_v54, %v2536_v18  ;;  %v2544_v8 = vrot.slane %v4947_v54, %v2543_v6 }
 0x473   : > { %2511 = vbcast.lane.b32.xlu1 %v2509_v5, 256  ;;  %2504 = vbcast.lane.b32.xlu0 %v2502_v58, 256  ;;  %v2494_v57 = vmul.f32 %v3717_v60, %v3709_v51  ;;  %v3719_v1 = vpop.eup %3718 }
 0x474   : > { %v2496_v36 = vmul.f32 %v3719_v1, %v3711_v22  ;;  %v3722_v22 = vld [vmem:[%s3968_s13] sm:$0xff] }
 0x475   : > { %v2565_v62 = vrot.slane %v2494_v57, %v4594_v11  ;;  %v2572_v3 = vrot.slane %v2494_v57, %v2515_v4  ;;  %v2579_v35 = vrot.slane %v2494_v57, %v2522_v29  ;;  %v2586_v0 = vrot.slane %v2494_v57, %v2529_v2 }
 0x476   : > { %v2593_v45 = vrot.slane %v2494_v57, %v2536_v18  ;;  %v2558_v25 = vrot.slane %v2494_v57, %v3994_v21  ;;  %v2600_v19 = vrot.slane %v2494_v57, %v2543_v6  ;;  %v2614_v26 = vrot.slane %v2496_v36, %v3994_v21  ;;  %v3721_v24 = vpop.eup %3720 }
 0x477   : > { %2518 = vbcast.lane.b32.xlu1 %v2516_v14, 256  ;;  %2567 = vbcast.lane.b32.xlu0 %v2565_v62, 256  ;;  %v2621_v9 = vrot.slane %v2496_v36, %v4594_v11  ;;  %v2628_v28 = vrot.slane %v2496_v36, %v2515_v4  ;;  %v2498_v48 = vmul.f32 %v3721_v24, %v3713_v56 }
 0x478   : > { %v2607_v43 = vrot.slane %v2494_v57, %v2550_v10  ;;  %v2635_v30 = vrot.slane %v2496_v36, %v2522_v29  ;;  %v2642_v38 = vrot.slane %v2496_v36, %v2529_v2  ;;  %v2649_v39 = vrot.slane %v2496_v36, %v2536_v18  ;;  %v474_v57 = vld [vmem:[%s4980_s14 + $0x48] sm:$0xff] }
 0x479   : > { %v2677_v33 = vrot.slane %v2498_v48, %v4594_v11  ;;  %v2684_v37 = vrot.slane %v2498_v48, %v2515_v4  ;;  %v2691_v42 = vrot.slane %v2498_v48, %v2522_v29  ;;  %v2656_v40 = vrot.slane %v2496_v36, %v2543_v6 }
 0x47a   : > { %v2698_v7 = vrot.slane %v2498_v48, %v2529_v2  ;;  %v2670_v46 = vrot.slane %v2498_v48, %v3994_v21  ;;  %v2705_v50 = vrot.slane %v2498_v48, %v2536_v18  ;;  %v2551_v11 = vrot.slane %v4947_v54, %v2550_v10  ;;  %v465_v21 = vld [vmem:[%s4980_s14] sm:$0xff] }
 0x47b   : > { %2525 = vbcast.lane.b32.xlu1 %v2523_v20, 256  ;;  %2574 = vbcast.lane.b32.xlu0 %v2572_v3, 256  ;;  %v2712_v44 = vrot.slane %v2498_v48, %v2543_v6  ;;  %v2663_v41 = vrot.slane %v2496_v36, %v2550_v10  ;;  %v2719_v47 = vrot.slane %v2498_v48, %v2550_v10 }
 0x47f   : > { %2532 = vbcast.lane.b32.xlu1 %v2530_v15, 256  ;;  %2581 = vbcast.lane.b32.xlu0 %v2579_v35, 256  ;;  %v3725_v35 = vld [vmem:[%s3968_s13 + $0x48] sm:$0xff] }
 0x483   : > { %2539 = vbcast.lane.b32.xlu1 %v2537_v13, 256  ;;  %2588 = vbcast.lane.b32.xlu0 %v2586_v0, 256 }
 0x487   : > { %2546 = vbcast.lane.b32.xlu1 %v2544_v8, 256  ;;  %2595 = vbcast.lane.b32.xlu0 %v2593_v45, 256 }
 0x48b   : > { %2560 = vbcast.lane.b32.xlu1 %v2558_v25, 256  ;;  %2602 = vbcast.lane.b32.xlu0 %v2600_v19, 256 }
 0x48f   : > { %2616 = vbcast.lane.b32.xlu1 %v2614_v26, 256  ;;  %2623 = vbcast.lane.b32.xlu0 %v2621_v9, 256 }
 0x493   : > { %2630 = vbcast.lane.b32.xlu1 %v2628_v28, 256  ;;  %2609 = vbcast.lane.b32.xlu0 %v2607_v43, 256 }
 0x497   : > { %2637 = vbcast.lane.b32.xlu1 %v2635_v30, 256  ;;  %2679 = vbcast.lane.b32.xlu0 %v2677_v33, 256 }
 0x49b   : > { %2644 = vbcast.lane.b32.xlu1 %v2642_v38, 256  ;;  %2686 = vbcast.lane.b32.xlu0 %v2684_v37, 256 }
 0x49f   : > { %2651 = vbcast.lane.b32.xlu1 %v2649_v39, 256  ;;  %2693 = vbcast.lane.b32.xlu0 %v2691_v42, 256 }
 0x4a3   : > { %2658 = vbcast.lane.b32.xlu1 %v2656_v40, 256  ;;  %2700 = vbcast.lane.b32.xlu0 %v2698_v7, 256 }
 0x4a7   : > { %2672 = vbcast.lane.b32.xlu1 %v2670_v46, 256  ;;  %2707 = vbcast.lane.b32.xlu0 %v2705_v50, 256 }
 0x4ab   : > { %2553 = vbcast.lane.b32.xlu1 %v2551_v11, 256  ;;  %2714 = vbcast.lane.b32.xlu0 %v2712_v44, 256  ;;  %v475_v44 = vld [vmem:[%s4980_s14 + $0x50] sm:$0xff] }
 0x4af   : > { %2665 = vbcast.lane.b32.xlu1 %v2663_v41, 256  ;;  %2721 = vbcast.lane.b32.xlu0 %v2719_v47, 256 }
 0x4b3   : > { %3384 = vrot.lane.b32.xlu1 %v4922_v16, %s3819_s11  ;;  %3386 = vrot.lane.b32.xlu0 %v4873_v31, %s3819_s11 }
 0x4e5   : > { %v2505_v17 = vpop.permute.xlu0 %2504  ;;  %v2512_v51 = vpop.permute.xlu1 %2511 }
 0x4e6   : > { %v2723_v49 = vmul.f32 %v3722_v22, %v2505_v17  ;;  %v2979_v16 = vmul.f32 %v2505_v17, %v465_v21  ;;  %v2724_v31 = vmul.f32 %v3723_v59, %v2512_v51  ;;  %v2980_v56 = vmul.f32 %v2512_v51, %v466_v53 }
 0x4e8   : > { %v2755_v27 = vsel %vm1149_vm0, %v2723_v49, 0.0  ;;  %v3011_v63 = vsel %vm1149_vm0, %v2979_v16, 0.0  ;;  %v2762_v55 = vsel %vm1149_vm0, %v2724_v31, 0.0  ;;  %v3018_v54 = vsel %vm1149_vm0, %v2980_v56, 0.0  ;;  %v468_v31 = vld [vmem:[%s4980_s14 + $0x18] sm:$0xff]  ;;  %v3726_v56 = vld [vmem:[%s3968_s13 + $0x50] sm:$0xff] }
 0x4e9   : > { %v2756_v5 = vrot.slane %v2755_v27, 4  ;;  %v3012_v58 = vrot.slane %v3011_v63, 4  ;;  %v2763_v4 = vrot.slane %v2762_v55, 4  ;;  %v3019_v60 = vrot.slane %v3018_v54, 4  ;;  %v2519_v14 = vpop.permute.xlu1 %2518  ;;  %v2568_v29 = vpop.permute.xlu0 %2567 }
 0x4ea   : > { %v2725_v62 = vmul.f32 %v3724_v61, %v2519_v14  ;;  %v2981_v20 = vmul.f32 %v2519_v14, %v467_v52  ;;  %v2732_v32 = vmul.f32 %v3725_v35, %v2568_v29  ;;  %v2988_v13 = vmul.f32 %v2568_v29, %v474_v57  ;;  %v469_v35 = vld [vmem:[%s4980_s14 + $0x20] sm:$0xff] }
 0x4eb   : > { %v2757_v2 = vadd.f32 %v2756_v5, %v2755_v27  ;;  %v3013_v3 = vadd.f32 %v3012_v58, %v3011_v63  ;;  %v2764_v15 = vadd.f32 %v2763_v4, %v2762_v55  ;;  %v3020_v18 = vadd.f32 %v3019_v60, %v3018_v54  ;;  %v3727_v60 = vld [vmem:[%s3968_s13 + $0x18] sm:$0xff] }
 0x4ec   : > { %v2769_v6 = vsel %vm1149_vm0, %v2725_v62, 0.0  ;;  %v3025_v0 = vsel %vm1149_vm0, %v2981_v20, 0.0  ;;  %v2818_v25 = vsel %vm1149_vm0, %v2732_v32, 0.0  ;;  %v3074_v19 = vsel %vm1149_vm0, %v2988_v13, 0.0 }
 0x4ed   : > { %v2758_v8 = vrot.slane %v2757_v2, 2  ;;  %v3014_v1 = vrot.slane %v3013_v3, 2  ;;  %v2765_v45 = vrot.slane %v2764_v15, 2  ;;  %v3021_v36 = vrot.slane %v3020_v18, 2  ;;  %v2575_v41 = vpop.permute.xlu0 %2574  ;;  %v2526_v51 = vpop.permute.xlu1 %2525 }
 0x4ee   : > { %v2770_v26 = vrot.slane %v2769_v6, 4  ;;  %v3026_v9 = vrot.slane %v3025_v0, 4  ;;  %v2819_v43 = vrot.slane %v2818_v25, 4  ;;  %v3075_v30 = vrot.slane %v3074_v19, 4 }
 0x4ef   : > { %v2759_v24 = vadd.f32 %v2758_v8, %v2757_v2  ;;  %v3015_v10 = vadd.f32 %v3014_v1, %v3013_v3  ;;  %v2766_v28 = vadd.f32 %v2765_v45, %v2764_v15  ;;  %v3022_v48 = vadd.f32 %v3021_v36, %v3020_v18  ;;  %v476_v15 = vld [vmem:[%s4980_s14 + $0x58] sm:$0xff] }
 0x4f0   : > { %v2771_v33 = vadd.f32 %v2770_v26, %v2769_v6  ;;  %v3027_v38 = vadd.f32 %v3026_v9, %v3025_v0  ;;  %v2820_v7 = vadd.f32 %v2819_v43, %v2818_v25  ;;  %v3076_v46 = vadd.f32 %v3075_v30, %v3074_v19  ;;  %v3728_v19 = vld [vmem:[%s3968_s13 + $0x58] sm:$0xff] }
 0x4f1   : > { %v2760_v37 = vrot.slane %v2759_v24, 1  ;;  %v3016_v39 = vrot.slane %v3015_v10, 1  ;;  %v2767_v42 = vrot.slane %v2766_v28, 1  ;;  %v3023_v40 = vrot.slane %v3022_v48, 1  ;;  %v2582_v18 = vpop.permute.xlu0 %2581  ;;  %v2533_v32 = vpop.permute.xlu1 %2532 }
 0x4f2   : > { %v2772_v50 = vrot.slane %v2771_v33, 2  ;;  %v3028_v11 = vrot.slane %v3027_v38, 2  ;;  %v2821_v22 = vrot.slane %v2820_v7, 2  ;;  %v3077_v49 = vrot.slane %v3076_v46, 2 }
 0x4f3   : > { %v2761_v47 = vadd.f32 %v2760_v37, %v2759_v24  ;;  %v3017_v21 = vadd.f32 %v3016_v39, %v3015_v10  ;;  %v2768_v53 = vadd.f32 %v2767_v42, %v2766_v28  ;;  %v3024_v17 = vadd.f32 %v3023_v40, %v3022_v48  ;;  %v3729_v24 = vld [vmem:[%s3968_s13 + $0x20] sm:$0xff] }
 0x4f4   : > { %v2773_v16 = vadd.f32 %v2772_v50, %v2771_v33  ;;  %v3029_v59 = vadd.f32 %v3028_v11, %v3027_v38  ;;  %v2733_v52 = vmul.f32 %v3726_v56, %v2575_v41  ;;  %v2989_v27 = vmul.f32 %v2575_v41, %v475_v44 }
 0x4f5   : > { %v2822_v63 = vadd.f32 %v2821_v22, %v2820_v7  ;;  %v3078_v55 = vadd.f32 %v3077_v49, %v3076_v46  ;;  %v2726_v57 = vmul.f32 %v3727_v60, %v2526_v51  ;;  %v2982_v14 = vmul.f32 %v2526_v51, %v468_v31  ;;  %v477_v31 = vld [vmem:[%s4980_s14 + $0x60] sm:$0xff]  ;;  %v2589_v56 = vpop.permute.xlu0 %2588  ;;  %v2540_v60 = vpop.permute.xlu1 %2539 }
 0x4f6   : > { %v2774_v54 = vrot.slane %v2773_v16, 1  ;;  %v3030_v5 = vrot.slane %v3029_v59, 1  ;;  %v2825_v58 = vsel %vm1149_vm0, %v2733_v52, 0.0  ;;  %v3081_v4 = vsel %vm1149_vm0, %v2989_v27, 0.0 }
 0x4f7   : > { %v3267_v29 = vsel %vm2411_vm5, %v2768_v53, %v2761_v47  ;;  %v5006_v61 = vsel %vm2411_vm5, %v3024_v17, %v3017_v21  ;;  %v2826_v62 = vrot.slane %v2825_v58, 4  ;;  %v3082_v20 = vrot.slane %v3081_v4, 4 }
 0x4f8   : > { %v2776_v2 = vsel %vm1149_vm0, %v2726_v57, 0.0  ;;  %v3032_v3 = vsel %vm1149_vm0, %v2982_v14, 0.0  ;;  %v2823_v13 = vrot.slane %v2822_v63, 1  ;;  %v3079_v6 = vrot.slane %v3078_v55, 1 }
 0x4f9   : > { %v2775_v0 = vadd.f32 %v2774_v54, %v2773_v16  ;;  %v3031_v8 = vadd.f32 %v3030_v5, %v3029_v59  ;;  %v2827_v1 = vadd.f32 %v2826_v62, %v2825_v58  ;;  %v3083_v45 = vadd.f32 %v3082_v20, %v3081_v4  ;;  %v3730_v62 = vld [vmem:[%s3968_s13 + $0x60] sm:$0xff] }
 0x4fa   : > { %v2777_v36 = vrot.slane %v2776_v2, 4  ;;  %v3033_v25 = vrot.slane %v3032_v3, 4  ;;  %v2734_v26 = vmul.f32 %v3728_v19, %v2582_v18  ;;  %v2990_v9 = vmul.f32 %v2582_v18, %v476_v15 }
 0x4fb   : > { %v2727_v10 = vmul.f32 %v3729_v24, %v2533_v32  ;;  %v2983_v28 = vmul.f32 %v2533_v32, %v469_v35  ;;  %v2828_v48 = vrot.slane %v2827_v1, 2  ;;  %v3084_v43 = vrot.slane %v3083_v45, 2  ;;  %v470_v32 = vld [vmem:[%s4980_s14 + $0x28] sm:$0xff] }
 0x4fc   : > { %v2778_v30 = vadd.f32 %v2777_v36, %v2776_v2  ;;  %v3034_v33 = vadd.f32 %v3033_v25, %v3032_v3  ;;  %v2832_v38 = vsel %vm1149_vm0, %v2734_v26, 0.0  ;;  %v3088_v37 = vsel %vm1149_vm0, %v2990_v9, 0.0 }
 0x4fd   : > { %v2783_v39 = vsel %vm1149_vm0, %v2727_v10, 0.0  ;;  %v3039_v42 = vsel %vm1149_vm0, %v2983_v28, 0.0  ;;  %v2829_v40 = vadd.f32 %v2828_v48, %v2827_v1  ;;  %v3085_v7 = vadd.f32 %v3084_v43, %v3083_v45  ;;  %v3731_v45 = vld [vmem:[%s3968_s13 + $0x28] sm:$0xff]  ;;  %v2596_v10 = vpop.permute.xlu0 %2595 }
 0x4fe   : > { %v2779_v46 = vrot.slane %v2778_v30, 2  ;;  %v3035_v50 = vrot.slane %v3034_v33, 2  ;;  %v2833_v11 = vrot.slane %v2832_v38, 4  ;;  %v3089_v44 = vrot.slane %v3088_v37, 4 }
 0x4ff   : > { %v2784_v41 = vrot.slane %v2783_v39, 4  ;;  %v3040_v47 = vrot.slane %v3039_v42, 4  ;;  %v5018_v21 = vadd.f32 %v2823_v13, %v2822_v63  ;;  %v5020_v53 = vadd.f32 %v3079_v6, %v3078_v55 }
 0x500   : > { %v2780_v17 = vadd.f32 %v2779_v46, %v2778_v30  ;;  %v3036_v51 = vadd.f32 %v3035_v50, %v3034_v33  ;;  %v2834_v22 = vadd.f32 %v2833_v11, %v2832_v38  ;;  %v3090_v49 = vadd.f32 %v3089_v44, %v3088_v37  ;;  %v2547_v33 = vpop.permute.xlu1 %2546  ;;  %v3732_v50 = vld [vmem:[%s3968_s13 + $0x68] sm:$0xff] }
 0x501   : > { %v2785_v16 = vadd.f32 %v2784_v41, %v2783_v39  ;;  %v3041_v59 = vadd.f32 %v3040_v47, %v3039_v42  ;;  %v2830_v52 = vrot.slane %v2829_v40, 1  ;;  %v3086_v27 = vrot.slane %v3085_v7, 1 }
 0x502   : > { %v2781_v54 = vrot.slane %v2780_v17, 1  ;;  %v3037_v5 = vrot.slane %v3036_v51, 1  ;;  %v2835_v58 = vrot.slane %v2834_v22, 2  ;;  %v3091_v4 = vrot.slane %v3090_v49, 2 }
 0x503   : > { %v2786_v63 = vrot.slane %v2785_v16, 2  ;;  %v3042_v55 = vrot.slane %v3041_v59, 2  ;;  %v3268_v57 = vsel %vm2413_vm6, %v2775_v0, %v3267_v29  ;;  %v2735_v20 = vmul.f32 %v3730_v62, %v2589_v56 }
 0x504   : > { %v2782_v14 = vadd.f32 %v2781_v54, %v2780_v17  ;;  %v2991_v2 = vmul.f32 %v2589_v56, %v477_v31  ;;  %v2836_v3 = vadd.f32 %v2835_v58, %v2834_v22  ;;  %v3092_v15 = vadd.f32 %v3091_v4, %v3090_v49 }
 0x505   : > { %v2787_v18 = vadd.f32 %v2786_v63, %v2785_v16  ;;  %v3043_v35 = vadd.f32 %v3042_v55, %v3041_v59  ;;  %v5028_v13 = vsel %vm2413_vm6, %v3031_v8, %v5006_v61  ;;  %v2839_v6 = vsel %vm1149_vm0, %v2735_v20, 0.0  ;;  %v478_v8 = vld [vmem:[%s4980_s14 + $0x68] sm:$0xff] }
 0x506   : > { %v3095_v1 = vsel %vm1149_vm0, %v2991_v2, 0.0  ;;  %v2728_v29 = vmul.f32 %v3731_v45, %v2540_v60  ;;  %v5033_v0 = vadd.f32 %v2830_v52, %v2829_v40  ;;  %v5035_v36 = vadd.f32 %v3086_v27, %v3085_v7  ;;  %v471_v40 = vld [vmem:[%s4980_s14 + $0x30] sm:$0xff] }
 0x507   : > { %v5037_v25 = vadd.f32 %v3037_v5, %v3036_v51  ;;  %v2837_v19 = vrot.slane %v2836_v3, 1  ;;  %v2840_v26 = vrot.slane %v2839_v6, 4  ;;  %v3096_v9 = vrot.slane %v3095_v1, 4  ;;  %v3733_v51 = vld [vmem:[%s3968_s13 + $0x30] sm:$0xff] }
 0x508   : > { %v2790_v24 = vsel %vm1149_vm0, %v2728_v29, 0.0  ;;  %v2984_v61 = vmul.f32 %v2540_v60, %v470_v32  ;;  %v3269_v28 = vsel %vm2415_vm7, %v2782_v14, %v3268_v57  ;;  %v3093_v48 = vrot.slane %v3092_v15, 1  ;;  %v479_v32 = vld [vmem:[%s4980_s14 + $0x70] sm:$0xff] }
 0x509   : > { %v2788_v43 = vrot.slane %v2787_v18, 1  ;;  %v3044_v30 = vrot.slane %v3043_v35, 1  ;;  %v2841_v38 = vadd.f32 %v2840_v26, %v2839_v6  ;;  %v3097_v37 = vadd.f32 %v3096_v9, %v3095_v1  ;;  %v2603_v6 = vpop.permute.xlu0 %2602 }
 0x50a   : > { %v2791_v39 = vrot.slane %v2790_v24, 4  ;;  %v3046_v42 = vsel %vm1149_vm0, %v2984_v61, 0.0  ;;  %v5044_v7 = vadd.f32 %v2837_v19, %v2836_v3  ;;  %v2736_v11 = vmul.f32 %v3732_v50, %v2596_v10 }
 0x50b   : > { %v3047_v46 = vrot.slane %v3046_v42, 4  ;;  %v2992_v44 = vmul.f32 %v2596_v10, %v478_v8  ;;  %v2842_v41 = vrot.slane %v2841_v38, 2  ;;  %v3098_v47 = vrot.slane %v3097_v37, 2  ;;  %v3734_v8 = vld [vmem:[%s3968_s13 + $0x70] sm:$0xff] }
 0x50c   : > { %v2792_v17 = vadd.f32 %v2791_v39, %v2790_v24  ;;  %v2729_v22 = vmul.f32 %v3733_v51, %v2547_v33  ;;  %v2846_v16 = vsel %vm1149_vm0, %v2736_v11, 0.0  ;;  %v2985_v31 = vmul.f32 %v2547_v33, %v471_v40 }
 0x50d   : > { %v3048_v49 = vadd.f32 %v3047_v46, %v3046_v42  ;;  %v3102_v59 = vsel %vm1149_vm0, %v2992_v44, 0.0  ;;  %v2843_v56 = vadd.f32 %v2842_v41, %v2841_v38  ;;  %v3099_v52 = vadd.f32 %v3098_v47, %v3097_v37  ;;  %v2624_v47 = vpop.permute.xlu0 %2623 }
 0x50e   : > { %v2793_v27 = vrot.slane %v2792_v17, 2  ;;  %v2847_v54 = vrot.slane %v2846_v16, 4  ;;  %v3103_v58 = vrot.slane %v3102_v59, 4  ;;  %v2797_v4 = vsel %vm1149_vm0, %v2729_v22, 0.0  ;;  %v3735_v22 = vld [vmem:[%s3968_s13 + $0x40] sm:$0xff] }
 0x50f   : > { %v3049_v5 = vrot.slane %v3048_v49, 2  ;;  %v3053_v63 = vsel %vm1149_vm0, %v2985_v31, 0.0  ;;  %v5052_v55 = vadd.f32 %v3093_v48, %v3092_v15  ;;  %v2789_v60 = vadd.f32 %v2788_v43, %v2787_v18  ;;  %v2561_v43 = vpop.permute.xlu1 %2560 }
 0x510   : > { %v2794_v57 = vadd.f32 %v2793_v27, %v2792_v17  ;;  %v2848_v14 = vadd.f32 %v2847_v54, %v2846_v16  ;;  %v3104_v20 = vadd.f32 %v3103_v58, %v3102_v59  ;;  %v2798_v2 = vrot.slane %v2797_v4, 4  ;;  %v3736_v58 = vld [vmem:[%s3968_s13 + $0x88] sm:$0xff] }
 0x511   : > { %v3050_v62 = vadd.f32 %v3049_v5, %v3048_v49  ;;  %v3054_v3 = vrot.slane %v3053_v63, 4  ;;  %v5055_v1 = vadd.f32 %v3044_v30, %v3043_v35  ;;  %v2844_v45 = vrot.slane %v2843_v56, 1  ;;  %v473_v30 = vld [vmem:[%s4980_s14 + $0x40] sm:$0xff] }
 0x512   : > { %v2795_v29 = vrot.slane %v2794_v57, 1  ;;  %v2849_v19 = vrot.slane %v2848_v14, 2  ;;  %v3100_v26 = vrot.slane %v3099_v52, 1  ;;  %v3105_v9 = vrot.slane %v3104_v20, 2 }
 0x513   : > { %v2799_v15 = vadd.f32 %v2798_v2, %v2797_v4  ;;  %v3055_v24 = vadd.f32 %v3054_v3, %v3053_v63  ;;  %v3051_v18 = vrot.slane %v3050_v62, 1  ;;  %v2737_v10 = vmul.f32 %v3734_v8, %v2603_v6  ;;  %v2617_v63 = vpop.permute.xlu1 %2616 }
 0x514   : > { %v2850_v61 = vadd.f32 %v2849_v19, %v2848_v14  ;;  %v2993_v48 = vmul.f32 %v2603_v6, %v479_v32  ;;  %v2796_v33 = vadd.f32 %v2795_v29, %v2794_v57  ;;  %v3106_v38 = vadd.f32 %v3105_v9, %v3104_v20  ;;  %v481_v20 = vld [vmem:[%s4980_s14 + $0x80] sm:$0xff] }
 0x515   : > { %v2800_v37 = vrot.slane %v2799_v15, 2  ;;  %v3056_v35 = vrot.slane %v3055_v24, 2  ;;  %v3270_v39 = vsel %vm2417_vm8, %v2789_v60, %v3269_v28  ;;  %v5060_v42 = vadd.f32 %v2844_v45, %v2843_v56 }
 0x516   : > { %v2853_v40 = vsel %vm1149_vm0, %v2737_v10, 0.0  ;;  %v3109_v46 = vsel %vm1149_vm0, %v2993_v48, 0.0  ;;  %v5064_v50 = vadd.f32 %v3100_v26, %v3099_v52  ;;  %v2851_v11 = vrot.slane %v2850_v61, 1  ;;  %v482_v52 = vld [vmem:[%s4980_s14 + $0x88] sm:$0xff]  ;;  %v3737_v26 = vld [vmem:[%s3968_s13 + $0x80] sm:$0xff] }
 0x517   : > { %v3107_v44 = vrot.slane %v3106_v38, 1  ;;  %v2854_v41 = vrot.slane %v2853_v40, 4  ;;  %v5066_v17 = vadd.f32 %v3051_v18, %v3050_v62  ;;  %v3110_v51 = vrot.slane %v3109_v46, 4 }
 0x518   : > { %v2731_v49 = vmul.f32 %v3735_v22, %v2561_v43  ;;  %v2987_v28 = vmul.f32 %v2561_v43, %v473_v30  ;;  %v5070_v16 = vsel %vm2419_vm9, %v2796_v33, %v3270_v39  ;;  %v2801_v59 = vadd.f32 %v2800_v37, %v2799_v15  ;;  %v2610_v30 = vpop.permute.xlu0 %2609 }
 0x519   : > { %v3057_v31 = vadd.f32 %v3056_v35, %v3055_v24  ;;  %v2855_v56 = vadd.f32 %v2854_v41, %v2853_v40  ;;  %v3111_v27 = vadd.f32 %v3110_v51, %v3109_v46  ;;  %v2740_v4 = vmul.f32 %v3736_v58, %v2624_v47 }
 0x51a   : > { %v2811_v54 = vsel %vm1149_vm0, %v2731_v49, 0.0  ;;  %v3067_v5 = vsel %vm1149_vm0, %v2987_v28, 0.0  ;;  %v5076_v60 = vadd.f32 %v2851_v11, %v2850_v61  ;;  %v5078_v57 = vadd.f32 %v3107_v44, %v3106_v38  ;;  %v480_v44 = vld [vmem:[%s4980_s14 + $0x78] sm:$0xff] }
 0x51b   : > { %v2856_v14 = vrot.slane %v2855_v56, 2  ;;  %v2812_v62 = vrot.slane %v2811_v54, 4  ;;  %v3112_v2 = vrot.slane %v3111_v27, 2  ;;  %v3068_v3 = vrot.slane %v3067_v5, 4 }
 0x51c   : > { %v2874_v32 = vsel %vm1149_vm0, %v2740_v4, 0.0  ;;  %v2996_v6 = vmul.f32 %v2624_v47, %v482_v52  ;;  %v2739_v9 = vmul.f32 %v3737_v26, %v2617_v63  ;;  %v2995_v61 = vmul.f32 %v2617_v63, %v481_v20  ;;  %v3738_v52 = vld [vmem:[%s3968_s13 + $0x78] sm:$0xff] }
 0x51d   : > { %v2857_v45 = vadd.f32 %v2856_v14, %v2855_v56  ;;  %v2813_v29 = vadd.f32 %v2812_v62, %v2811_v54  ;;  %v2875_v19 = vrot.slane %v2874_v32, 4  ;;  %v3113_v15 = vadd.f32 %v3112_v2, %v3111_v27 }
 0x51e   : > { %v3069_v24 = vadd.f32 %v3068_v3, %v3067_v5  ;;  %v3130_v18 = vsel %vm1149_vm0, %v2996_v6, 0.0  ;;  %v2802_v8 = vrot.slane %v2801_v59, 1  ;;  %v3058_v33 = vrot.slane %v3057_v31, 1 }
 0x51f   : > { %v2814_v10 = vrot.slane %v2813_v29, 2  ;;  %v2876_v48 = vadd.f32 %v2875_v19, %v2874_v32  ;;  %v3131_v43 = vrot.slane %v3130_v18, 4  ;;  %v2867_v37 = vsel %vm1149_vm0, %v2739_v9, 0.0  ;;  %v483_v9 = vld [vmem:[%s4980_s14 + $0x90] sm:$0xff] }
 0x520   : > { %v3070_v38 = vrot.slane %v3069_v24, 2  ;;  %v3123_v35 = vsel %vm1149_vm0, %v2995_v61, 0.0  ;;  %v2858_v39 = vrot.slane %v2857_v45, 1  ;;  %v3114_v41 = vrot.slane %v3113_v15, 1 }
 0x521   : > { %v2815_v40 = vadd.f32 %v2814_v10, %v2813_v29  ;;  %v2877_v46 = vrot.slane %v2876_v48, 2  ;;  %v3132_v11 = vadd.f32 %v3131_v43, %v3130_v18  ;;  %v2868_v51 = vrot.slane %v2867_v37, 4  ;;  %v490_v10 = vld [vmem:[%s4980_s14 + $0xc8] sm:$0xff] }
 0x522   : > { %v3071_v47 = vadd.f32 %v3070_v38, %v3069_v24  ;;  %v3124_v22 = vrot.slane %v3123_v35, 4  ;;  %v2738_v27 = vmul.f32 %v3738_v52, %v2610_v30  ;;  %v2994_v4 = vmul.f32 %v2610_v30, %v480_v44  ;;  %v2631_v24 = vpop.permute.xlu1 %2630 }
 0x523   : > { %v2816_v49 = vrot.slane %v2815_v40, 1  ;;  %v2878_v28 = vadd.f32 %v2877_v46, %v2876_v48  ;;  %v3133_v56 = vrot.slane %v3132_v11, 2  ;;  %v2869_v5 = vadd.f32 %v2868_v51, %v2867_v37  ;;  %v2680_v48 = vpop.permute.xlu0 %2679  ;;  %v3739_v37 = vld [vmem:[%s3968_s13 + $0x90] sm:$0xff]  ;;  %v3740_v46 = vld [vmem:[%s3968_s13 + $0xc8] sm:$0xff] }
 0x524   : > { %v3072_v54 = vrot.slane %v3071_v47, 1  ;;  %v3125_v58 = vadd.f32 %v3124_v22, %v3123_v35  ;;  %v5088_v63 = vadd.f32 %v2802_v8, %v2801_v59  ;;  %v2860_v20 = vsel %vm1149_vm0, %v2738_v27, 0.0  ;;  %v484_v27 = vld [vmem:[%s4980_s14 + $0x98] sm:$0xff] }
 0x525   : > { %v2817_v14 = vadd.f32 %v2816_v49, %v2815_v40  ;;  %v3134_v62 = vadd.f32 %v3133_v56, %v3132_v11  ;;  %v5091_v2 = vadd.f32 %v3058_v33, %v3057_v31  ;;  %v2870_v3 = vrot.slane %v2869_v5, 2 }
 0x526   : > { %v3126_v32 = vrot.slane %v3125_v58, 2  ;;  %v2861_v6 = vrot.slane %v2860_v20, 4  ;;  %v5093_v29 = vadd.f32 %v2858_v39, %v2857_v45  ;;  %v5095_v19 = vadd.f32 %v3114_v41, %v3113_v15 }
 0x527   : > { %v3274_v26 = vsel %vm2411_vm5, %v5018_v21, %v2817_v14  ;;  %v3116_v59 = vsel %vm1149_vm0, %v2994_v4, 0.0  ;;  %v3073_v18 = vadd.f32 %v3072_v54, %v3071_v47  ;;  %v2879_v61 = vrot.slane %v2878_v28, 1  ;;  %v2638_v54 = vpop.permute.xlu1 %2637 }
 0x528   : > { %v2871_v31 = vadd.f32 %v2870_v3, %v2869_v5  ;;  %v3127_v8 = vadd.f32 %v3126_v32, %v3125_v58  ;;  %v3275_v45 = vsel %vm2413_vm6, %v5033_v0, %v3274_v26  ;;  %v3135_v15 = vrot.slane %v3134_v62, 1  ;;  %v3741_v26 = vld [vmem:[%s3968_s13 + $0x98] sm:$0xff] }
 0x529   : > { %v2862_v43 = vadd.f32 %v2861_v6, %v2860_v20  ;;  %v3117_v33 = vrot.slane %v3116_v59, 4  ;;  %v2741_v35 = vmul.f32 %v3739_v37, %v2631_v24  ;;  %v2997_v30 = vmul.f32 %v2631_v24, %v483_v9 }
 0x52a   : > { %v2872_v38 = vrot.slane %v2871_v31, 1  ;;  %v3128_v21 = vrot.slane %v3127_v8, 1  ;;  %v2748_v11 = vmul.f32 %v3740_v46, %v2680_v48  ;;  %v3004_v44 = vmul.f32 %v2680_v48, %v490_v10  ;;  %v2687_v10 = vpop.permute.xlu0 %2686 }
 0x52b   : > { %v2863_v39 = vrot.slane %v2862_v43, 2  ;;  %v3118_v40 = vadd.f32 %v3117_v33, %v3116_v59  ;;  %v5108_v41 = vsel %vm2411_vm5, %v5020_v53, %v3073_v18  ;;  %v2880_v47 = vadd.f32 %v2879_v61, %v2878_v28  ;;  %v491_v61 = vld [vmem:[%s4980_s14 + $0xd0] sm:$0xff] }
 0x52c   : > { %v2881_v0 = vsel %vm1149_vm0, %v2741_v35, 0.0  ;;  %v3137_v51 = vsel %vm1149_vm0, %v2997_v30, 0.0  ;;  %v5115_v5 = vsel %vm2415_vm7, %v5044_v7, %v3275_v45  ;;  %v3136_v58 = vadd.f32 %v3135_v15, %v3134_v62  ;;  %v3742_v35 = vld [vmem:[%s3968_s13 + $0xd0] sm:$0xff] }
 0x52d   : > { %v2864_v22 = vadd.f32 %v2863_v39, %v2862_v43  ;;  %v3119_v49 = vrot.slane %v3118_v40, 2  ;;  %v2882_v56 = vrot.slane %v2881_v0, 4  ;;  %v3138_v52 = vrot.slane %v3137_v51, 4 }
 0x52e   : > { %v2930_v53 = vsel %vm1149_vm0, %v2748_v11, 0.0  ;;  %v3186_v28 = vsel %vm1149_vm0, %v3004_v44, 0.0  ;;  %v2873_v4 = vadd.f32 %v2872_v38, %v2871_v31  ;;  %v3129_v14 = vadd.f32 %v3128_v21, %v3127_v8 }
 0x52f   : > { %v2883_v20 = vadd.f32 %v2882_v56, %v2881_v0  ;;  %v3139_v3 = vadd.f32 %v3138_v52, %v3137_v51  ;;  %v2931_v32 = vrot.slane %v2930_v53, 4  ;;  %v3187_v6 = vrot.slane %v3186_v28, 4  ;;  %v2645_v52 = vpop.permute.xlu1 %2644 }
 0x530   : > { %v2742_v59 = vmul.f32 %v3741_v26, %v2638_v54  ;;  %v2998_v9 = vmul.f32 %v2638_v54, %v484_v27  ;;  %v2865_v24 = vrot.slane %v2864_v22, 1  ;;  %v5120_v18 = vadd.f32 %v3119_v49, %v3118_v40  ;;  %v485_v26 = vld [vmem:[%s4980_s14 + $0xa0] sm:$0xff] }
 0x531   : > { %v2884_v7 = vrot.slane %v2883_v20, 2  ;;  %v3140_v62 = vrot.slane %v3139_v3, 2  ;;  %v2932_v48 = vadd.f32 %v2931_v32, %v2930_v53  ;;  %v3188_v45 = vadd.f32 %v3187_v6, %v3186_v28 }
 0x532   : > { %v2888_v31 = vsel %vm1149_vm0, %v2742_v59, 0.0  ;;  %v3144_v8 = vsel %vm1149_vm0, %v2998_v9, 0.0  ;;  %v2749_v30 = vmul.f32 %v3742_v35, %v2687_v10  ;;  %v3005_v39 = vmul.f32 %v2687_v10, %v491_v61  ;;  %v492_v61 = vld [vmem:[%s4980_s14 + $0xd8] sm:$0xff]  ;;  %v2694_v10 = vpop.permute.xlu0 %2693 }
 0x533   : > { %v2885_v15 = vadd.f32 %v2884_v7, %v2883_v20  ;;  %v3141_v43 = vadd.f32 %v3140_v62, %v3139_v3  ;;  %v2889_v33 = vrot.slane %v2888_v31, 4  ;;  %v3145_v38 = vrot.slane %v3144_v8, 4 }
 0x534   : > { %v2933_v21 = vrot.slane %v2932_v48, 2  ;;  %v3189_v37 = vrot.slane %v3188_v45, 2  ;;  %v2937_v49 = vsel %vm1149_vm0, %v2749_v30, 0.0  ;;  %v3193_v56 = vsel %vm1149_vm0, %v3005_v39, 0.0 }
 0x535   : > { %v2886_v40 = vrot.slane %v2885_v15, 1  ;;  %v3142_v46 = vrot.slane %v3141_v43, 1  ;;  %v2890_v11 = vadd.f32 %v2889_v33, %v2888_v31  ;;  %v3146_v44 = vadd.f32 %v3145_v38, %v3144_v8 }
 0x536   : > { %v2934_v0 = vadd.f32 %v2933_v21, %v2932_v48  ;;  %v3190_v51 = vadd.f32 %v3189_v37, %v3188_v45  ;;  %v3281_v27 = vsel %vm2411_vm5, %v2880_v47, %v2873_v4  ;;  %v3349_v20 = vsel %vm2411_vm5, %v3136_v58, %v3129_v14  ;;  %v3743_v14 = vld [vmem:[%s3968_s13 + $0xa0] sm:$0xff]  ;;  %v2652_v21 = vpop.permute.xlu1 %2651 }
 0x537   : > { %v2887_v54 = vadd.f32 %v2886_v40, %v2885_v15  ;;  %v2891_v53 = vrot.slane %v2890_v11, 2  ;;  %v3147_v28 = vrot.slane %v3146_v44, 2  ;;  %v5130_v3 = vadd.f32 %v2865_v24, %v2864_v22 }
 0x538   : > { %v2938_v32 = vrot.slane %v2937_v49, 4  ;;  %v3194_v6 = vrot.slane %v3193_v56, 4  ;;  %v3143_v59 = vadd.f32 %v3142_v46, %v3141_v43  ;;  %v2935_v9 = vrot.slane %v2934_v0, 1  ;;  %v3744_v43 = vld [vmem:[%s3968_s13 + $0xd8] sm:$0xff] }
 0x539   : > { %v2892_v7 = vadd.f32 %v2891_v53, %v2890_v11  ;;  %v3148_v62 = vadd.f32 %v3147_v28, %v3146_v44  ;;  %v3121_v47 = vrot.slane %v5120_v18, 1  ;;  %v3191_v4 = vrot.slane %v3190_v51, 1 }
 0x53a   : > { %v2939_v48 = vadd.f32 %v2938_v32, %v2937_v49  ;;  %v3195_v45 = vadd.f32 %v3194_v6, %v3193_v56  ;;  %v5136_v58 = vsel %vm2413_vm6, %v2887_v54, %v3281_v27  ;;  %v2743_v24 = vmul.f32 %v3743_v14, %v2645_v52  ;;  %v486_v49 = vld [vmem:[%s4980_s14 + $0xa8] sm:$0xff]  ;;  %v493_v14 = vld [vmem:[%s4980_s14 + $0xe0] sm:$0xff] }
 0x53b   : > { %v2893_v22 = vrot.slane %v2892_v7, 1  ;;  %v2999_v31 = vmul.f32 %v2645_v52, %v485_v26  ;;  %v3149_v8 = vrot.slane %v3148_v62, 1  ;;  %v2750_v33 = vmul.f32 %v3744_v43, %v2694_v10  ;;  %v3745_v54 = vld [vmem:[%s3968_s13 + $0xa8] sm:$0xff]  ;;  %v3746_v43 = vld [vmem:[%s3968_s13 + $0xe0] sm:$0xff] }
 0x53c   : > { %v2940_v15 = vrot.slane %v2939_v48, 2  ;;  %v3006_v38 = vmul.f32 %v2694_v10, %v492_v61  ;;  %v5141_v37 = vsel %vm2413_vm6, %v3143_v59, %v3349_v20  ;;  %v5143_v35 = vadd.f32 %v2935_v9, %v2934_v0 }
 0x53d   : > { %v2895_v30 = vsel %vm1149_vm0, %v2743_v24, 0.0  ;;  %v3151_v39 = vsel %vm1149_vm0, %v2999_v31, 0.0  ;;  %v3196_v46 = vrot.slane %v3195_v45, 2  ;;  %v5148_v56 = vadd.f32 %v3191_v4, %v3190_v51  ;;  %v2701_v51 = vpop.permute.xlu0 %2700 }
 0x53e   : > { %v2941_v40 = vadd.f32 %v2940_v15, %v2939_v48  ;;  %v2896_v11 = vrot.slane %v2895_v30, 4  ;;  %v3152_v44 = vrot.slane %v3151_v39, 4  ;;  %v2944_v52 = vsel %vm1149_vm0, %v2750_v33, 0.0 }
 0x53f   : > { %v3200_v27 = vsel %vm1149_vm0, %v3006_v38, 0.0  ;;  %v2744_v53 = vmul.f32 %v3745_v54, %v2652_v21  ;;  %v2894_v0 = vadd.f32 %v2893_v22, %v2892_v7  ;;  %v5153_v28 = vadd.f32 %v3149_v8, %v3148_v62 }
 0x540   : > { %v2897_v20 = vadd.f32 %v2896_v11, %v2895_v30  ;;  %v3153_v32 = vadd.f32 %v3152_v44, %v3151_v39  ;;  %v2945_v6 = vrot.slane %v2944_v52, 4  ;;  %v3201_v26 = vrot.slane %v3200_v27, 4 }
 0x541   : > { %v2902_v59 = vsel %vm1149_vm0, %v2744_v53, 0.0  ;;  %v3000_v9 = vmul.f32 %v2652_v21, %v486_v49  ;;  %v2942_v61 = vrot.slane %v2941_v40, 1  ;;  %v3197_v10 = vadd.f32 %v3196_v46, %v3195_v45  ;;  %v2659_v53 = vpop.permute.xlu1 %2658 }
 0x542   : > { %v2898_v4 = vrot.slane %v2897_v20, 2  ;;  %v3154_v48 = vrot.slane %v3153_v32, 2  ;;  %v2946_v24 = vadd.f32 %v2945_v6, %v2944_v52  ;;  %v3202_v31 = vadd.f32 %v3201_v26, %v3200_v27 }
 0x543   : > { %v2903_v15 = vrot.slane %v2902_v59, 4  ;;  %v3158_v7 = vsel %vm1149_vm0, %v3000_v9, 0.0  ;;  %v2751_v33 = vmul.f32 %v3746_v43, %v2701_v51  ;;  %v3007_v21 = vmul.f32 %v2701_v51, %v493_v14 }
 0x544   : > { %v2899_v62 = vadd.f32 %v2898_v4, %v2897_v20  ;;  %v3155_v22 = vadd.f32 %v3154_v48, %v3153_v32  ;;  %v3159_v8 = vrot.slane %v3158_v7, 4  ;;  %v2947_v38 = vrot.slane %v2946_v24, 2  ;;  %v487_v48 = vld [vmem:[%s4980_s14 + $0xb0] sm:$0xff] }
 0x545   : > { %v3203_v30 = vrot.slane %v3202_v31, 2  ;;  %v2904_v39 = vadd.f32 %v2903_v15, %v2902_v59  ;;  %v3198_v11 = vrot.slane %v3197_v10, 1  ;;  %v2951_v46 = vsel %vm1149_vm0, %v2751_v33, 0.0 }
 0x546   : > { %v2900_v44 = vrot.slane %v2899_v62, 1  ;;  %v3160_v45 = vadd.f32 %v3159_v8, %v3158_v7  ;;  %v2948_v49 = vadd.f32 %v2947_v38, %v2946_v24  ;;  %v2952_v54 = vrot.slane %v2951_v46, 4 }
 0x547   : > { %v3204_v52 = vadd.f32 %v3203_v30, %v3202_v31  ;;  %v2905_v27 = vrot.slane %v2904_v39, 2  ;;  %v3156_v32 = vrot.slane %v3155_v22, 1  ;;  %v3207_v26 = vsel %vm1149_vm0, %v3007_v21, 0.0  ;;  %v3747_v31 = vld [vmem:[%s3968_s13 + $0xb0] sm:$0xff] }
 0x548   : > { %v2901_v20 = vadd.f32 %v2900_v44, %v2899_v62  ;;  %v3161_v6 = vrot.slane %v3160_v45, 2  ;;  %v2949_v9 = vrot.slane %v2948_v49, 1  ;;  %v2953_v4 = vadd.f32 %v2952_v54, %v2951_v46 }
 0x549   : > { %v3205_v59 = vrot.slane %v3204_v52, 1  ;;  %v2906_v51 = vadd.f32 %v2905_v27, %v2904_v39  ;;  %v3283_v14 = vsel %vm2415_vm7, %v2894_v0, %v5136_v58  ;;  %v5164_v15 = vadd.f32 %v2942_v61, %v2941_v40  ;;  %v494_v61 = vld [vmem:[%s4980_s14 + $0xe8] sm:$0xff] }
 0x54a   : > { %v3208_v24 = vrot.slane %v3207_v26, 4  ;;  %v2745_v7 = vmul.f32 %v3747_v31, %v2659_v53  ;;  %v5167_v8 = vadd.f32 %v3198_v11, %v3197_v10  ;;  %v3162_v43 = vadd.f32 %v3161_v6, %v3160_v45  ;;  %v2708_v10 = vpop.permute.xlu0 %2707 }
 0x54b   : > { %v2907_v62 = vrot.slane %v2906_v51, 1  ;;  %v2954_v33 = vrot.slane %v2953_v4, 2  ;;  %v5169_v38 = vadd.f32 %v3156_v32, %v3155_v22  ;;  %v3001_v21 = vmul.f32 %v2659_v53, %v487_v48  ;;  %v3748_v32 = vld [vmem:[%s3968_s13 + $0xe8] sm:$0xff] }
 0x54c   : > { %v3209_v30 = vadd.f32 %v3208_v24, %v3207_v26  ;;  %v2909_v39 = vsel %vm1149_vm0, %v2745_v7, 0.0  ;;  %v3284_v44 = vsel %vm2417_vm8, %v2901_v20, %v3283_v14  ;;  %v5173_v58 = vadd.f32 %v2949_v9, %v2948_v49 }
 0x54d   : > { %v5175_v40 = vadd.f32 %v3205_v59, %v3204_v52  ;;  %v2910_v0 = vrot.slane %v2909_v39, 4  ;;  %v2955_v11 = vadd.f32 %v2954_v33, %v2953_v4  ;;  %v3165_v45 = vsel %vm1149_vm0, %v3001_v21, 0.0 }
 0x54e   : > { %v3210_v46 = vrot.slane %v3209_v30, 2  ;;  %v3343_v22 = vsel %vm2413_vm6, %v5035_v36, %v5108_v41  ;;  %v2908_v27 = vadd.f32 %v2907_v62, %v2906_v51  ;;  %v3163_v54 = vrot.slane %v3162_v43, 1  ;;  %v2673_v41 = vpop.permute.xlu1 %2672  ;;  %v495_v62 = vld [vmem:[%s4980_s14 + $0xf0] sm:$0xff] }
 0x54f   : > { %v2911_v53 = vadd.f32 %v2910_v0, %v2909_v39  ;;  %v3166_v20 = vrot.slane %v3165_v45, 4  ;;  %v3122_v49 = vadd.f32 %v3121_v47, %v5120_v18  ;;  %v3344_v52 = vsel %vm2415_vm7, %v5052_v55, %v3343_v22  ;;  %v489_v47 = vld [vmem:[%s4980_s14 + $0xc0] sm:$0xff]  ;;  %v3750_v22 = vld [vmem:[%s3968_s13 + $0xf0] sm:$0xff] }
 0x550   : > { %v2752_v6 = vmul.f32 %v3748_v32, %v2708_v10  ;;  %v3008_v26 = vmul.f32 %v2708_v10, %v494_v61  ;;  %v3211_v9 = vadd.f32 %v3210_v46, %v3209_v30  ;;  %v3345_v36 = vsel %vm2417_vm8, %v5064_v50, %v3344_v52  ;;  %v2715_v50 = vpop.permute.xlu0 %2714 }
 0x551   : > { %v2912_v59 = vrot.slane %v2911_v53, 2  ;;  %v3167_v4 = vadd.f32 %v3166_v20, %v3165_v45  ;;  %v2956_v51 = vrot.slane %v2955_v11, 1  ;;  %v3346_v48 = vsel %vm2419_vm9, %v5078_v57, %v3345_v36  ;;  %v3749_v57 = vld [vmem:[%s3968_s13 + $0xc0] sm:$0xff] }
 0x552   : > { %v2958_v18 = vsel %vm1149_vm0, %v2752_v6, 0.0  ;;  %v3214_v55 = vsel %vm1149_vm0, %v3008_v26, 0.0  ;;  %v3347_v31 = vsel %vm2421_vm10, %v5095_v19, %v3346_v48  ;;  %v5198_v33 = vadd.f32 %v3163_v54, %v3162_v43 }
 0x553   : > { %v2913_v14 = vadd.f32 %v2912_v59, %v2911_v53  ;;  %v3168_v24 = vrot.slane %v3167_v4, 2  ;;  %v2959_v7 = vrot.slane %v2958_v18, 4  ;;  %v3348_v30 = vsel %vm2423_vm11, %v3122_v49, %v3347_v31  ;;  %v472_v59 = vld [vmem:[%s4980_s14 + $0x38] sm:$0xff] }
 0x554   : > { %v3215_v39 = vrot.slane %v3214_v55, 4  ;;  %v2747_v21 = vmul.f32 %v3749_v57, %v2673_v41  ;;  %v5203_v0 = vsel %vm2419_vm9, %v2908_v27, %v3284_v44  ;;  %v3212_v61 = vrot.slane %v3211_v9, 1  ;;  %3365 = vrot.lane.b32.xlu0 %v3348_v30, %s5410_s28  ;;  %v2554_v44 = vpop.permute.xlu1 %2553 }
 0x555   : > { %v2960_v10 = vadd.f32 %v2959_v7, %v2958_v18  ;;  %v3003_v19 = vmul.f32 %v2673_v41, %v489_v47  ;;  %v2753_v43 = vmul.f32 %v3750_v22, %v2715_v50  ;;  %v3009_v54 = vmul.f32 %v2715_v50, %v495_v62 }
 0x556   : > { %v3216_v46 = vadd.f32 %v3215_v39, %v3214_v55  ;;  %v2923_v45 = vsel %vm1149_vm0, %v2747_v21, 0.0  ;;  %v5208_v53 = vadd.f32 %v2956_v51, %v2955_v11  ;;  %v2914_v20 = vrot.slane %v2913_v14, 1 }
 0x557   : > { %v3169_v49 = vadd.f32 %v3168_v24, %v3167_v4  ;;  %v2924_v52 = vrot.slane %v2923_v45, 4  ;;  %v3179_v32 = vsel %vm1149_vm0, %v3003_v19, 0.0  ;;  %v2965_v6 = vsel %vm1149_vm0, %v2753_v43, 0.0  ;;  %v3751_v4 = vld [vmem:[%s3968_s13 + $0x38] sm:$0xff] }
 0x558   : > { %v3217_v27 = vrot.slane %v3216_v46, 2  ;;  %v3221_v26 = vsel %vm1149_vm0, %v3009_v54, 0.0  ;;  %v5214_v36 = vadd.f32 %v3212_v61, %v3211_v9  ;;  %v2961_v41 = vrot.slane %v2960_v10, 2 }
 0x559   : > { %v2925_v48 = vadd.f32 %v2924_v52, %v2923_v45  ;;  %v3180_v18 = vrot.slane %v3179_v32, 4  ;;  %v2966_v51 = vrot.slane %v2965_v6, 4  ;;  %v3222_v55 = vrot.slane %v3221_v26, 4  ;;  %v2722_v45 = vpop.permute.xlu0 %2721 }
 0x55a   : > { %v3218_v11 = vadd.f32 %v3217_v27, %v3216_v46  ;;  %v2730_v47 = vmul.f32 %v3751_v4, %v2554_v44  ;;  %v5217_v24 = vadd.f32 %v2914_v20, %v2913_v14  ;;  %v2986_v62 = vmul.f32 %v2554_v44, %v472_v59  ;;  %v496_v46 = vld [vmem:[%s4980_s14 + $0xf8] sm:$0xff] }
 0x55b   : > { %v2926_v31 = vrot.slane %v2925_v48, 2  ;;  %v3181_v7 = vadd.f32 %v3180_v18, %v3179_v32  ;;  %v3170_v50 = vrot.slane %v3169_v49, 1  ;;  %v2967_v30 = vadd.f32 %v2966_v51, %v2965_v6 }
 0x55c   : > { %v3223_v39 = vadd.f32 %v3222_v55, %v3221_v26  ;;  %v2804_v9 = vsel %vm1149_vm0, %v2730_v47, 0.0  ;;  %v5220_v57 = vadd.f32 %v2961_v41, %v2960_v10  ;;  %v3219_v22 = vrot.slane %v3218_v11, 1  ;;  %v3752_v10 = vld [vmem:[%s3968_s13 + $0xf8] sm:$0xff] }
 0x55d   : > { %v2927_v21 = vadd.f32 %v2926_v31, %v2925_v48  ;;  %v3182_v61 = vrot.slane %v3181_v7, 2  ;;  %v2805_v19 = vrot.slane %v2804_v9, 4  ;;  %v2968_v43 = vrot.slane %v2967_v30, 2 }
 0x55e   : > { %v3224_v14 = vrot.slane %v3223_v39, 2  ;;  %v3060_v54 = vsel %vm1149_vm0, %v2986_v62, 0.0  ;;  %v2754_v26 = vmul.f32 %v3752_v10, %v2722_v45  ;;  %v3010_v59 = vmul.f32 %v2722_v45, %v496_v46 }
 0x55f   : > { %v2928_v20 = vrot.slane %v2927_v21, 1  ;;  %v3183_v52 = vadd.f32 %v3182_v61, %v3181_v7  ;;  %v2806_v44 = vadd.f32 %v2805_v19, %v2804_v9  ;;  %v3061_v27 = vrot.slane %v3060_v54, 4  ;;  %v488_v9 = vld [vmem:[%s4980_s14 + $0xb8] sm:$0xff]  ;;  %v2666_v61 = vpop.permute.xlu1 %2665  ;;  %s3760_s14 = scalar_lea.vmem %s3759_s30, 1024 }
 0x560   : > { %v2969_v32 = vadd.f32 %v2968_v43, %v2967_v30  ;;  %v3225_v6 = vadd.f32 %v3224_v14, %v3223_v39  ;;  %v5225_v55 = vadd.f32 %v3170_v50, %v3169_v49  ;;  %v2972_v47 = vsel %vm1149_vm0, %v2754_v26, 0.0 }
 0x561   : > { %v2929_v41 = vadd.f32 %v2928_v20, %v2927_v21  ;;  %v3184_v48 = vrot.slane %v3183_v52, 1  ;;  %v2807_v18 = vrot.slane %v2806_v44, 2  ;;  %v3062_v51 = vadd.f32 %v3061_v27, %v3060_v54 }
 0x562   : > { %v3226_v4 = vrot.slane %v3225_v6, 1  ;;  %v3228_v31 = vsel %vm1149_vm0, %v3010_v59, 0.0  ;;  %v2963_v21 = vrot.slane %v5220_v57, 1  ;;  %v3220_v19 = vadd.f32 %v3219_v22, %v3218_v11 }
 0x563   : > { %v3185_v7 = vadd.f32 %v3184_v48, %v3183_v52  ;;  %v3288_v62 = vsel %vm2411_vm5, %v5143_v35, %v2929_v41  ;;  %v2808_v30 = vadd.f32 %v2807_v18, %v2806_v44  ;;  %v3063_v39 = vrot.slane %v3062_v51, 2  ;;  %v3753_v35 = vld [vmem:[%s3968_s13 + $0xb8] sm:$0xff]  ;;  %s3522_s13 = sshll.u32 %s401_s26, 5 }
 0x564   : > { %v2970_v46 = vrot.slane %v2969_v32, 1  ;;  %v2973_v49 = vrot.slane %v2972_v47, 4  ;;  %v3289_v50 = vsel %vm2413_vm6, %v5164_v15, %v3288_v62  ;;  %v3227_v43 = vadd.f32 %v3226_v4, %v3225_v6  ;;  %s5289_s29 = scalar_lea.vmem [#allocation3], %s3522_s13 }
 0x565   : > { %v3356_v45 = vsel %vm2411_vm5, %v5148_v56, %v3185_v7  ;;  %v3064_v14 = vadd.f32 %v3063_v39, %v3062_v51  ;;  %v3229_v20 = vrot.slane %v3228_v31, 4  ;;  %v2746_v52 = vmul.f32 %v3753_v35, %v2666_v61 }
 0x566   : > { %v2974_v54 = vadd.f32 %v2973_v49, %v2972_v47  ;;  %v3002_v44 = vmul.f32 %v2666_v61, %v488_v9  ;;  %v2809_v27 = vrot.slane %v2808_v30, 1  ;;  %v3337_v11 = vsel %vm2415_vm7, %v5037_v25, %v5028_v13 }
 0x567   : > { %v3065_v10 = vrot.slane %v3064_v14, 1  ;;  %v3357_v22 = vsel %vm2413_vm6, %v5167_v8, %v3356_v45  ;;  %v3230_v26 = vadd.f32 %v3229_v20, %v3228_v31  ;;  %v2916_v56 = vsel %vm1149_vm0, %v2746_v52, 0.0 }
 0x568   : > { %v2975_v15 = vrot.slane %v2974_v54, 2  ;;  %v3172_v6 = vsel %vm1149_vm0, %v3002_v44, 0.0  ;;  %v2917_v59 = vrot.slane %v2916_v56, 4  ;;  %v3338_v18 = vsel %vm2417_vm8, %v5055_v1, %v3337_v11 }
 0x569   : > { %v3173_v41 = vrot.slane %v3172_v6, 4  ;;  %v3066_v48 = vadd.f32 %v3065_v10, %v3064_v14  ;;  %v3231_v4 = vrot.slane %v3230_v26, 2  ;;  %v3339_v13 = vsel %vm2419_vm9, %v5066_v17, %v3338_v18 }
 0x56a   : > { %v2976_v51 = vadd.f32 %v2975_v15, %v2974_v54  ;;  %v3358_v25 = vsel %vm2415_vm7, %v5175_v40, %v3357_v22  ;;  %v2918_v8 = vadd.f32 %v2917_v59, %v2916_v56  ;;  %v3340_v31 = vsel %vm2421_vm10, %v5091_v2, %v3339_v13 }
 0x56b   : > { %v3174_v47 = vadd.f32 %v3173_v41, %v3172_v6  ;;  %v3359_v7 = vsel %vm2417_vm8, %v5214_v36, %v3358_v25  ;;  %v3232_v1 = vadd.f32 %v3231_v4, %v3230_v26  ;;  %v3341_v39 = vsel %vm2423_vm11, %v3066_v48, %v3340_v31 }
 0x56c   : > { %v2977_v62 = vrot.slane %v2976_v51, 1  ;;  %v3360_v9 = vsel %vm2419_vm9, %v3220_v19, %v3359_v7  ;;  %v2964_v17 = vadd.f32 %v2963_v21, %v5220_v57  ;;  %v2971_v61 = vadd.f32 %v2970_v46, %v2969_v32  ;;  %3363 = vrot.lane.b32.xlu1 %v3341_v39, %s5410_s28 }
 0x56d   : > { %v2919_v40 = vrot.slane %v2918_v8, 2  ;;  %v3175_v49 = vrot.slane %v3174_v47, 2  ;;  %v3290_v2 = vsel %vm2415_vm7, %v5173_v58, %v3289_v50  ;;  %v2810_v45 = vadd.f32 %v2809_v27, %v2808_v30 }
 0x56e   : > { %v3233_v14 = vrot.slane %v3232_v1, 1  ;;  %v3351_v36 = vsel %vm2415_vm7, %v5153_v28, %v5141_v37  ;;  %v3361_v57 = vsel %vm2421_vm10, %v3227_v43, %v3360_v9  ;;  %v2978_v21 = vadd.f32 %v2977_v62, %v2976_v51 }
 0x56f   : > { %v2920_v54 = vadd.f32 %v2919_v40, %v2918_v8  ;;  %v3176_v19 = vadd.f32 %v3175_v49, %v3174_v47  ;;  %v3352_v32 = vsel %vm2417_vm8, %v5169_v38, %v3351_v36  ;;  %v3277_v30 = vsel %vm2417_vm8, %v5060_v42, %v5115_v5 }
 0x570   : > { %v3234_v46 = vadd.f32 %v3233_v14, %v3232_v1  ;;  %v3353_v58 = vsel %vm2419_vm9, %v5198_v33, %v3352_v32  ;;  %v3278_v28 = vsel %vm2419_vm9, %v5076_v60, %v3277_v30  ;;  %v3272_v43 = vsel %vm2421_vm10, %v5088_v63, %v5070_v16 }
 0x571   : > { %v2921_v50 = vrot.slane %v2920_v54, 1  ;;  %v3177_v37 = vrot.slane %v3176_v19, 1  ;;  %v3279_v20 = vsel %vm2421_vm10, %v5093_v29, %v3278_v28  ;;  %v3273_v33 = vsel %vm2423_vm11, %v2810_v45, %v3272_v43 }
 0x572   : > { %v3362_v38 = vsel %vm2423_vm11, %v3234_v46, %v3361_v57  ;;  %v3291_v35 = vsel %vm2417_vm8, %v5208_v53, %v3290_v2  ;;  %v3280_v60 = vsel %vm2423_vm11, %v5130_v3, %v3279_v20  ;;  %3299 = vst.msk [vmem:[%s5289_s29] sm:$0xff] %vm1149_vm0, %v3273_v33  ;;  %v3354_v63 = vsel %vm2421_vm10, %v5225_v55, %v3353_v58 }
 0x573   : > { %v2922_v42 = vadd.f32 %v2921_v50, %v2920_v54  ;;  %3369 = vrot.lane.b32.xlu0 %v3362_v38, %s5410_s28  ;;  %v3178_v5 = vadd.f32 %v3177_v37, %v3176_v19  ;;  %v3292_v16 = vsel %vm2419_vm9, %v2964_v17, %v3291_v35  ;;  %3300 = vst.msk [vmem:[%s5289_s29 + $0x8] sm:$0xff] %vm1149_vm0, %v3280_v60 }
 0x574   : > { %v3293_v29 = vsel %vm2421_vm10, %v2971_v61, %v3292_v16  ;;  %v3286_v3 = vsel %vm2421_vm10, %v5217_v24, %v5203_v0  ;;  %v3387_v0 = vpop.permute.xlu0 %3386 }
 0x575   : > { %v3355_v53 = vsel %vm2423_vm11, %v3178_v5, %v3354_v63  ;;  %v3294_v52 = vsel %vm2423_vm11, %v2978_v21, %v3293_v29  ;;  %v3287_v44 = vsel %vm2423_vm11, %v2922_v42, %v3286_v3 }
 0x576   : > { %3367 = vrot.lane.b32.xlu1 %v3355_v53, %s5410_s28  ;;  %3302 = vst.msk [vmem:[%s5289_s29 + $0x18] sm:$0xff] %vm1149_vm0, %v3294_v52  ;;  %3301 = vst.msk [vmem:[%s5289_s29 + $0x10] sm:$0xff] %vm1149_vm0, %v3287_v44  ;;  %s3420_s28 = sshll.u32 %s5289_s29, 4  ;;  %s5344_s28 = int_to_ptr.vmem [resolvable:$true] %s3420_s28 }
 0x577   : > { %3390 = vrot.lane.b32.xlu0 %v4935_v34, %s3819_s11  ;;  %v3385_v34 = vpop.permute.xlu1 %3384  ;;  %s3754_s27 = scalar_lea.vmem %s5344_s28, 512  ;;  %p3761_p1 = scmp.lt.s32.totalorder %s5344_s28, %s3759_s30 }
 0x578   : > { %p3755_p12 = scmp.ne.s32.totalorder %s5344_s28, %s3754_s27  ;;  %p3762_p2 = scmp.lt.s32.totalorder %s3760_s14, %s3754_s27 }
 0x57a   : > { %3388 = vrot.lane.b32.xlu1 %v4928_v23, %s3819_s11  ;;  %s3603_s11 = sshll.u32 %s3903_s9, 9  ;;  %s5353_s9 = scalar_lea.sflag [#allocation4], %s401_s26 }
 0x57b   : > { %s5342_s21 = scalar_lea.hbm %s5403_s10, %s3603_s11  ;;  %p3756_p13 = pnand %p3755_p12, %p3920_p5 }
 0x57c   : > { %p3763_p3 = por %p3762_p2, %p3761_p1 }
 0x57d   : > { %p3757_p0 = pneg %p3756_p13 }
 0x57f   : > { %p3764_p4 = pnand %p3763_p3, %p3757_p0 }
 0x5c6   : > { %v3366_v24 = vpop.permute.xlu0 %3365 }
 0x5c7   : > { %3377 = vst.msk [vmem:[%s5289_s29 + $0x8] sm:$0xff] %vm3375_vm2, %v3366_v24 }
 0x5c8   : > { %3398 = vst.msk [vmem:[%s5289_s29 + $0x8] sm:$0xff] %vm3396_vm3, %v3387_v0 }
 0x5c9   : > { %3403 = vst.msk [vmem:[%s5289_s29 + $0x8] sm:$0xff] %vm3401_vm4, %v3817_v12 }
 0x5de   : > { %v3364_v55 = vpop.permute.xlu1 %3363 }
 0x5df   : > { %3376 = vst.msk [vmem:[%s5289_s29] sm:$0xff] %vm3375_vm2, %v3364_v55 }
 0x5e0   : > { %3397 = vst.msk [vmem:[%s5289_s29] sm:$0xff] %vm3396_vm3, %v3385_v34 }
 0x5e1   : > { %3402 = vst.msk [vmem:[%s5289_s29] sm:$0xff] %vm3401_vm4, %v3817_v12 }
 0x5e5   : > { %v3370_v23 = vpop.permute.xlu0 %3369 }
 0x5e6   : > { %3379 = vst.msk [vmem:[%s5289_s29 + $0x18] sm:$0xff] %vm3375_vm2, %v3370_v23 }
 0x5e8   : > { %v3368_v27 = vpop.permute.xlu1 %3367 }
 0x5e9   : > { %3378 = vst.msk [vmem:[%s5289_s29 + $0x10] sm:$0xff] %vm3375_vm2, %v3368_v27  ;;  %v3391_v10 = vpop.permute.xlu0 %3390 }
 0x5ea   : > { %3400 = vst.msk [vmem:[%s5289_s29 + $0x18] sm:$0xff] %vm3396_vm3, %v3391_v10 }
 0x5eb   : > { %3405 = vst.msk [vmem:[%s5289_s29 + $0x18] sm:$0xff] %vm3401_vm4, %v3817_v12 }
 0x5ec   : > { %v3389_v11 = vpop.permute.xlu1 %3388 }
 0x5ed   : > { %3399 = vst.msk [vmem:[%s5289_s29 + $0x10] sm:$0xff] %vm3396_vm3, %v3389_v11 }
 0x5ee   : > { %3404 = vst.msk [vmem:[%s5289_s29 + $0x10] sm:$0xff] %vm3401_vm4, %v3817_v12 }
 0x5ef   : > { %3767 = shalt.err (!%p3764_p4)
}
 0x5f0   : > { %s3768_s26 = scalar_lea.hbm %s5342_s21, 512  ;;  %s3772_s11 = scalar_lea.hbm %s5403_s10, 1024 }
 0x5f1   : > { %p3769_p7 = scmp.ne.s32.totalorder %s5342_s21, %s3768_s26  ;;  %p3773_p10 = scmp.lt.s32.totalorder %s5342_s21, %s5403_s10 }
 0x5f2   : > { %p3774_p11 = scmp.lt.s32.totalorder %s3772_s11, %s3768_s26 }
 0x5f3   : > { %p3770_p8 = pnand %p3769_p7, %p3920_p5 }
 0x5f4   : > { %p3775_p12 = por %p3774_p11, %p3773_p10 }
 0x5f5   : > { %p3771_p9 = pneg %p3770_p8 }
 0x5f7   : > { %p3776_p13 = pnand %p3775_p12, %p3771_p9 }
 0x5f9   : > { %3779 = shalt.err (!%p3776_p13)
}
 0x5fa   : > { %s3822_s27 = smov 128   ;;  %s3823_s22 = smov 8  }
 0x5fb   : > { %3654 = dma.vmem_to_hbm [thread:$0]  (%p3920_p5), %s5344_s28, 512, %s5342_s21, %s5353_s9, %s3822_s27, %s3822_s27, %s3823_s22  }
 0x5fc PF: > { %p3660_p0 = scmp.ge.s32.totalorder %s3814_s18, 2  ;;  %s3435_s30 = sand.u32 1, %s3802_s15  }
 0x5fd   : > { %s3436_s14 = scalar_lea.sflag [#allocation4], %s3435_s30 }
 0x5fe   : > { %p3657_p1 = pnand %p3660_p0, %p3924_p6 }
 0x600   : > { %p3658_p2 = pneg %p3657_p1 }
 0x602   : > { %3797 = dma.done.wait (%p3658_p2), %s3436_s14, 512  }
 0x603   : > { %3799 = vsyncadd (%p3658_p2), %s3436_s14, 4294966784  ;;  %p22_p3 = scmp.ge.s32.totalorder %s3907_s20, 4   ;;  %s5413_s15 = smov %s3806_s16 }
 0x604   : > { %s5414_s16 = smov %s3810_s17  ;;  %s5415_s17 = smov %s3918_s23 }
 0x605   : > { %s5416_s18 = smov %s3907_s20  ;;  %24 = sbr.rel (!%p22_p3) target bundleno = 6 (0x6), region = 104 }
 0x60a   :  { %3441 = vsyncpa [#allocation4], 1 }
 0x60b   :  { %3443 = vsyncpa [#allocation4 + $0x1], 1 }

</bundles_post_ra>
